<compile_context>
chip_gen: v5e
topology: v5e:2x2
jax: 0.10.0
libtpu: 0.0.40
codegen_flags: <defaults>
</compile_context>

<pallas_src>
import jax
import jax.numpy as jnp
from jax import lax
from jax.experimental import pallas as pl
from jax.experimental.pallas import tpu as pltpu


def _pick_batch_block(B, N):
    """Batch elements per grid step: fill ~256 MXU rows at small N, but keep
    at least two grid steps (v7x has 2 TensorCores) when the batch allows."""
    if N >= 256 or N % 8 != 0:
        return 1
    b_blk = min(B, max(1, 256 // N))
    while b_blk > 1 and B // b_blk < 2:
        b_blk -= 1
    while B % b_blk:
        b_blk -= 1
    return b_blk


def _make_kernel(b_blk, N, C, transpose_out):
    f32, bf16 = jnp.float32, jnp.bfloat16
    M = b_blk * N

    def kernel(x_ref,       # (b_blk, N, C)  f32
               convw_ref,   # (2, C, C)      bf16  BN-folded conv1/conv2 (Cin, Cout)
               convb_ref,   # (2, 1, C)      f32   folded BN bias
               wqk_ref,     # (4, C, C//4)   bf16  shared q/k weights
               wv_ref,      # (4, C, C)      bf16  v_conv weights
               bv_ref,      # (4, 1, C)      f32   v_conv bias
               wt_ref,      # (4, C, C)      bf16  after_norm-folded trans_conv
               bt_ref,      # (4, 1, C)      f32   folded trans_conv bias
               out_ref):    # (b_blk, 4, C, N) or (b_blk, 4, N, C)  f32
        # Flatten the batch block so channel matmuls present M = b_blk*N rows
        # to the MXU (better row utilization at small N).
        if b_blk == 1:
            x = x_ref[0]
        else:
            x = x_ref[...].reshape(M, C)

        # x = relu(bn(conv(x))) twice; BN scale folded into the bf16 weights,
        # only bias-add + relu here.
        for i in range(2):
            y = jnp.dot(x.astype(bf16), convw_ref[i], preferred_element_type=f32)
            x = jnp.maximum(y + convb_ref[i], 0.0)

        def store_layer(i, x):
            for bb in range(b_blk):
                xb = x[bb * N:(bb + 1) * N] if b_blk > 1 else x
                if transpose_out:
                    out_ref[bb, i] = xb.T          # (C, N): lane-dense store
                else:
                    out_ref[bb, i] = xb            # (N, C)

        def sa_layer(i, x):
            # Dynamic weight indexing inside lax.fori_loop bounds live ranges:
            # only one layer's (N, N) temporaries are alive at a time.
            x_bf = x.astype(bf16)
            q = jnp.dot(x_bf, wqk_ref[i], preferred_element_type=f32).astype(bf16)
            v = jnp.dot(x_bf, wv_ref[i], preferred_element_type=f32) + bv_ref[i]

            x_r_parts = []
            for bb in range(b_blk):
                qb = q[bb * N:(bb + 1) * N] if b_blk > 1 else q
                vb = v[bb * N:(bb + 1) * N] if b_blk > 1 else v
                # q_conv and k_conv share weights (bias=False) => energy is
                # q @ q.T (symmetric).  The nt-form dot_general lowers to a
                # transposed-rhs MXU matmul; no XLU transpose of q.
                e = lax.dot_general(qb, qb, (((1,), (1,)), ((), ())),
                                    preferred_element_type=f32)          # (N, N)
                # Symmetry of e lets us build the TRANSPOSED softmax numerator
                # directly (pT[n, m] == p[m, n]): column max / column sum.
                m_row = jnp.max(e, axis=0, keepdims=True)                # (1, N)
                # bf16 numerator (halved EUP exp + halved footprint);
                # reductions accumulate in f32.
                pT = jnp.exp((e - m_row).astype(bf16))                   # (N, N) bf16
                rowsum = jnp.sum(pT, axis=0, keepdims=True,
                                 dtype=f32)                              # (1, N) f32
                # w[n, m] = attention[m, n]  (softmax over torch dim=-1),
                # kept entirely in bf16.
                w = pT * pl.reciprocal(rowsum, approx=True).astype(bf16)  # (N, N) bf16
                # attention.sum(dim=1)[n] = lane-sum of w, accumulated in f32.
                colsum = jnp.sum(w, axis=-1, keepdims=True, dtype=f32)   # (N, 1)
                inv_col = pl.reciprocal(1e-9 + colsum, approx=True)      # (N, 1)
                # x_r[n, c] = inv_col[n] * sum_m attention[m, n] * v[m, c]
                x_r_parts.append(
                    jnp.dot(w, vb.astype(bf16),
                            preferred_element_type=f32) * inv_col)       # (N, C)
            x_r = (jnp.concatenate(x_r_parts, axis=0) if b_blk > 1
                   else x_r_parts[0])

            # x_r = relu(after_norm(trans_conv(x - x_r))); after_norm scale is
            # pre-folded into wt/bt.
            t = jnp.dot((x - x_r).astype(bf16), wt_ref[i],
                        preferred_element_type=f32) + bt_ref[i]
            x = x + jnp.maximum(t, 0.0)
            store_layer(i, x)
            return x

        lax.fori_loop(0, 4, sa_layer, x)

    return kernel


def point_transformer_last(x_bcn, params):
    """x_bcn: (B, C, N) float32 -> (B, 4*C, N) float32 (torch convention)."""
    B, C, N = x_bcn.shape
    bf16 = jnp.bfloat16

    (conv_w, bn_scale, bn_bias, wqk, wv, bv, wt, bt, sa_scale, sa_bias) = params

    # Fold the inference-mode BatchNorm / after_norm scales into the bf16
    # weights (free at trace time); only bias-add + relu remain in-kernel.
    convw_f = (conv_w * bn_scale[:, None, :]).astype(bf16)        # (2, C, C)
    convb = bn_bias.reshape(2, 1, C)
    wqk_bf = wqk.astype(bf16)                                     # (4, C, C/4)
    wv_bf = wv.astype(bf16)                                       # (4, C, C)
    bv_r = bv.reshape(4, 1, C)
    wt_f = (wt * sa_scale[:, None, :]).astype(bf16)               # (4, C, C)
    bt_f = (bt * sa_scale + sa_bias).reshape(4, 1, C)
    weight_args = (convw_f, convb, wqk_bf, wv_bf, bv_r, wt_f, bt_f)

    b_blk = _pick_batch_block(B, N)
    grid = (B // b_blk,)

    # Emit (C, N) per layer in-kernel only when the stores stay lane-dense.
    transpose_out = (N % 128 == 0) and (C % 8 == 0)

    x_bnc = jnp.transpose(x_bcn, (0, 2, 1))          # (B, N, C): C lane-dense
    kernel = _make_kernel(b_blk, N, C, transpose_out)

    def const_spec(a):
        nd = a.ndim
        # Weights never change across the grid -> single pipeline buffer.
        return pl.BlockSpec(a.shape, lambda g, _nd=nd: (0,) * _nd,
                            pipeline_mode=pl.Buffered(1))

    weight_bytes = sum(int(a.size) * a.dtype.itemsize for a in weight_args)
    est = (2 * b_blk * N * C * 4              # double-buffered input blocks
           + 2 * b_blk * 4 * N * C * 4        # double-buffered output blocks
           + weight_bytes                     # single-buffered weights
           + 8 * N * N                        # e (f32) + pT/w (bf16) live set
           + 12 * b_blk * N * C * 4)          # (M, C)-sized temporaries

    # Generation-aware scoped-VMEM cap: ~85% of physical per-core VMEM
    # (~54 MiB on v7x, ~108 MiB on v5e/v6e) instead of a hard-coded 64 MiB.
    cap = 64 << 20
    try:
        info = pltpu.get_tpu_info()
        cap = int(getattr(info, "vmem_capacity_bytes", cap))
    except Exception:
        pass
    vmem_limit = int(min(max(2 * est, 32 << 20), int(0.85 * cap)))

    flops_per_b = (2 * 2 * N * C * C                       # conv1 + conv2
                   + 4 * (2 * N * C * (C // 4)             # q
                          + 2 * N * N * (C // 4)           # energy
                          + 2 * N * C * C                  # v
                          + 2 * N * N * C                  # att @ v
                          + 2 * N * C * C))                # trans_conv
    cost = pl.CostEstimate(
        flops=B * flops_per_b,
        transcendentals=B * 4 * N * N,
        bytes_accessed=int(x_bcn.size) * 4 + B * 4 * N * C * 4 + weight_bytes,
    )

    if transpose_out:
        out_block = (b_blk, 4, C, N)
        out_shape = jax.ShapeDtypeStruct((B, 4, C, N), jnp.float32)
    else:
        out_block = (b_blk, 4, N, C)
        out_shape = jax.ShapeDtypeStruct((B, 4, N, C), jnp.float32)

    out = pl.pallas_call(
        kernel,
        out_shape=out_shape,
        grid_spec=pltpu.PrefetchScalarGridSpec(
            num_scalar_prefetch=0,
            grid=grid,
            in_specs=[pl.BlockSpec((b_blk, N, C), lambda g: (g, 0, 0))]
                     + [const_spec(a) for a in weight_args],
            out_specs=pl.BlockSpec(out_block, lambda g: (g, 0, 0, 0)),
        ),
        compiler_params=pltpu.CompilerParams(
            dimension_semantics=("parallel",),
            vmem_limit_bytes=vmem_limit,
        ),
        cost_estimate=cost,
    )(x_bnc, *weight_args)

    if transpose_out:
        # Kernel already produced torch-oriented (B, 4, C, N): reshape only.
        return out.reshape(B, 4 * C, N)
    # Fallback for N not a multiple of 128: one XLA transpose.
    return jnp.transpose(out, (0, 1, 3, 2)).reshape(B, 4 * C, N)


def _fold_bn(gamma, beta, mean, var, eps=1e-5):
    scale = gamma / jnp.sqrt(var + eps)
    bias = beta - mean * scale
    return scale, bias


def init_params(key, C):
    """Deterministic synthetic parameters matching the torch module shapes."""
    state = {"key": key}

    def next_key():
        state["key"], sub = jax.random.split(state["key"])
        return sub

    def nrm(shape, s=0.05):
        return s * jax.random.normal(next_key(), shape, dtype=jnp.float32)

    def bn_params():
        gamma = 1.0 + 0.1 * jax.random.normal(next_key(), (C,), dtype=jnp.float32)
        beta = 0.1 * jax.random.normal(next_key(), (C,), dtype=jnp.float32)
        mean = 0.1 * jax.random.normal(next_key(), (C,), dtype=jnp.float32)
        var = 0.5 + jax.random.uniform(next_key(), (C,), dtype=jnp.float32)
        return _fold_bn(gamma, beta, mean, var)

    # conv1 / conv2 : torch weight (Cout, Cin, 1) -> stored pre-transposed (Cin, Cout)
    conv_w = jnp.stack([nrm((C, C)).T, nrm((C, C)).T], axis=0)
    s1, b1 = bn_params()
    s2, b2 = bn_params()
    bn_scale = jnp.stack([s1, s2], axis=0)
    bn_bias = jnp.stack([b1, b2], axis=0)

    wqk, wv, bv, wt, bt, sas, sab = [], [], [], [], [], [], []
    for _ in range(4):
        wqk.append(nrm((C // 4, C)).T)          # (C, C/4)
        wv.append(nrm((C, C)).T)                # (C, C)
        bv.append(nrm((C,), 0.02))
        wt.append(nrm((C, C)).T)
        bt.append(nrm((C,), 0.02))
        s, b = bn_params()
        sas.append(s)
        sab.append(b)

    return (
        conv_w,
        bn_scale,
        bn_bias,
        jnp.stack(wqk, 0),
        jnp.stack(wv, 0),
        jnp.stack(bv, 0),
        jnp.stack(wt, 0),
        jnp.stack(bt, 0),
        jnp.stack(sas, 0),
        jnp.stack(sab, 0),
    )


if __name__ == "__main__":
    # Small shapes; exercises batch blocking (b_blk=2) and the in-kernel
    # output transpose (N % 128 == 0).  Module default channels=256 also works.
    B, C, N = 4, 128, 128
    key = jax.random.PRNGKey(0)
    kx, kp = jax.random.split(key)
    x = jax.random.normal(kx, (B, C, N), dtype=jnp.float32)
    params = init_params(kp, C)

    out = jax.jit(point_transformer_last)(x, params)
    out = jax.block_until_ready(out)
    assert out.shape == (B, 4 * C, N), out.shape
    assert bool(jnp.all(jnp.isfinite(out)))
    print("KERNEL_OK")
</pallas_src>

<mosaic_0001>
module attributes {stable_mosaic.version = 11 : i64} {
  func.func @kernel(%arg0: i32, %arg1: memref<2x128x128xf32, #tpu.memory_space<vmem>>, %arg2: memref<2x128x128xbf16, #tpu.memory_space<vmem>>, %arg3: memref<2x1x128xf32, #tpu.memory_space<vmem>>, %arg4: memref<4x128x32xbf16, #tpu.memory_space<vmem>>, %arg5: memref<4x128x128xbf16, #tpu.memory_space<vmem>>, %arg6: memref<4x1x128xf32, #tpu.memory_space<vmem>>, %arg7: memref<4x128x128xbf16, #tpu.memory_space<vmem>>, %arg8: memref<4x1x128xf32, #tpu.memory_space<vmem>>, %arg9: memref<2x4x128x128xf32, #tpu.memory_space<vmem>>) attributes {dimension_semantics = [#tpu.dimension_semantics<parallel>], iteration_bounds = array<i64: 2>, scalar_prefetch = 0 : i64, scratch_operands = 0 : i64, tpu.core_type = #tpu.core_type<tc>, window_params = [{transform_indices = @transform_0, window_bounds = array<i64: 2, 128, 128>}, {pipeline_mode = #tpu.pipeline_mode<synchronous>, transform_indices = @transform_1, window_bounds = array<i64: 2, 128, 128>}, {pipeline_mode = #tpu.pipeline_mode<synchronous>, transform_indices = @transform_2, window_bounds = array<i64: 2, 1, 128>}, {pipeline_mode = #tpu.pipeline_mode<synchronous>, transform_indices = @transform_3, window_bounds = array<i64: 4, 128, 32>}, {pipeline_mode = #tpu.pipeline_mode<synchronous>, transform_indices = @transform_4, window_bounds = array<i64: 4, 128, 128>}, {pipeline_mode = #tpu.pipeline_mode<synchronous>, transform_indices = @transform_5, window_bounds = array<i64: 4, 1, 128>}, {pipeline_mode = #tpu.pipeline_mode<synchronous>, transform_indices = @transform_6, window_bounds = array<i64: 4, 128, 128>}, {pipeline_mode = #tpu.pipeline_mode<synchronous>, transform_indices = @transform_7, window_bounds = array<i64: 4, 1, 128>}, {transform_indices = @transform_8, window_bounds = array<i64: 2, 4, 128, 128>}]} {
    %c0 = arith.constant 0 : index
    %c0_0 = arith.constant 0 : index
    %c0_1 = arith.constant 0 : index
    %0 = vector.load %arg1[%c0, %c0_0, %c0_1] : memref<2x128x128xf32, #tpu.memory_space<vmem>>, vector<2x128x128xf32>
    %1 = vector.shape_cast %0 : vector<2x128x128xf32> to vector<256x128xf32>
    %2 = arith.truncf %1 : vector<256x128xf32> to vector<256x128xbf16>
    %c0_2 = arith.constant 0 : index
    %c0_3 = arith.constant 0 : index
    %c0_4 = arith.constant 0 : index
    %3 = vector.load %arg2[%c0_2, %c0_3, %c0_4] : memref<2x128x128xbf16, #tpu.memory_space<vmem>>, vector<1x128x128xbf16>
    %4 = vector.shape_cast %3 : vector<1x128x128xbf16> to vector<128x128xbf16>
    %cst = arith.constant dense<0.000000e+00> : vector<256x128xf32>
    %5 = tpu.matmul %2, %4, %cst {dimension_numbers = #tpu.dot_dimension_numbers<[1], [0], [0], [1], [0, 0, 1, 1], [], []>} : vector<256x128xbf16>, vector<128x128xbf16>, vector<256x128xf32> -> vector<256x128xf32>
    %c0_5 = arith.constant 0 : index
    %c0_6 = arith.constant 0 : index
    %c0_7 = arith.constant 0 : index
    %6 = vector.load %arg3[%c0_5, %c0_6, %c0_7] : memref<2x1x128xf32, #tpu.memory_space<vmem>>, vector<1x1x128xf32>
    %7 = vector.shape_cast %6 : vector<1x1x128xf32> to vector<1x128xf32>
    %8 = vector.broadcast %7 : vector<1x128xf32> to vector<256x128xf32>
    %9 = arith.addf %5, %8 : vector<256x128xf32>
    %cst_8 = arith.constant 0.000000e+00 : f32
    %10 = vector.broadcast %cst_8 : f32 to vector<256x128xf32>
    %11 = arith.maximumf %9, %10 : vector<256x128xf32>
    %12 = arith.truncf %11 : vector<256x128xf32> to vector<256x128xbf16>
    %c1 = arith.constant 1 : index
    %c0_9 = arith.constant 0 : index
    %c0_10 = arith.constant 0 : index
    %13 = vector.load %arg2[%c1, %c0_9, %c0_10] : memref<2x128x128xbf16, #tpu.memory_space<vmem>>, vector<1x128x128xbf16>
    %14 = vector.shape_cast %13 : vector<1x128x128xbf16> to vector<128x128xbf16>
    %cst_11 = arith.constant dense<0.000000e+00> : vector<256x128xf32>
    %15 = tpu.matmul %12, %14, %cst_11 {dimension_numbers = #tpu.dot_dimension_numbers<[1], [0], [0], [1], [0, 0, 1, 1], [], []>} : vector<256x128xbf16>, vector<128x128xbf16>, vector<256x128xf32> -> vector<256x128xf32>
    %c1_12 = arith.constant 1 : index
    %c0_13 = arith.constant 0 : index
    %c0_14 = arith.constant 0 : index
    %16 = vector.load %arg3[%c1_12, %c0_13, %c0_14] : memref<2x1x128xf32, #tpu.memory_space<vmem>>, vector<1x1x128xf32>
    %17 = vector.shape_cast %16 : vector<1x1x128xf32> to vector<1x128xf32>
    %18 = vector.broadcast %17 : vector<1x128xf32> to vector<256x128xf32>
    %19 = arith.addf %15, %18 : vector<256x128xf32>
    %cst_15 = arith.constant 0.000000e+00 : f32
    %20 = vector.broadcast %cst_15 : f32 to vector<256x128xf32>
    %21 = arith.maximumf %19, %20 : vector<256x128xf32>
    %c0_i32 = arith.constant 0 : i32
    %c4_i32 = arith.constant 4 : i32
    %22 = arith.addi %c0_i32, %c4_i32 : i32
    %c1_i32 = arith.constant 1 : i32
    %23 = scf.for %arg10 = %c0_i32 to %22 step %c1_i32 iter_args(%arg11 = %21) -> (vector<256x128xf32>)  : i32 {
      %24 = arith.truncf %arg11 : vector<256x128xf32> to vector<256x128xbf16>
      %25 = arith.index_cast %arg10 : i32 to index
      %c0_17 = arith.constant 0 : index
      %c0_18 = arith.constant 0 : index
      %26 = vector.load %arg4[%25, %c0_17, %c0_18] : memref<4x128x32xbf16, #tpu.memory_space<vmem>>, vector<1x128x32xbf16>
      %27 = vector.shape_cast %26 : vector<1x128x32xbf16> to vector<128x32xbf16>
      %cst_19 = arith.constant dense<0.000000e+00> : vector<256x32xf32>
      %28 = tpu.matmul %24, %27, %cst_19 {dimension_numbers = #tpu.dot_dimension_numbers<[1], [0], [0], [1], [0, 0, 1, 1], [], []>} : vector<256x128xbf16>, vector<128x32xbf16>, vector<256x32xf32> -> vector<256x32xf32>
      %29 = arith.truncf %28 : vector<256x32xf32> to vector<256x32xbf16>
      %30 = arith.index_cast %arg10 : i32 to index
      %c0_20 = arith.constant 0 : index
      %c0_21 = arith.constant 0 : index
      %31 = vector.load %arg5[%30, %c0_20, %c0_21] : memref<4x128x128xbf16, #tpu.memory_space<vmem>>, vector<1x128x128xbf16>
      %32 = vector.shape_cast %31 : vector<1x128x128xbf16> to vector<128x128xbf16>
      %cst_22 = arith.constant dense<0.000000e+00> : vector<256x128xf32>
      %33 = tpu.matmul %24, %32, %cst_22 {dimension_numbers = #tpu.dot_dimension_numbers<[1], [0], [0], [1], [0, 0, 1, 1], [], []>} : vector<256x128xbf16>, vector<128x128xbf16>, vector<256x128xf32> -> vector<256x128xf32>
      %34 = arith.index_cast %arg10 : i32 to index
      %c0_23 = arith.constant 0 : index
      %c0_24 = arith.constant 0 : index
      %35 = vector.load %arg6[%34, %c0_23, %c0_24] : memref<4x1x128xf32, #tpu.memory_space<vmem>>, vector<1x1x128xf32>
      %36 = vector.shape_cast %35 : vector<1x1x128xf32> to vector<1x128xf32>
      %37 = vector.broadcast %36 : vector<1x128xf32> to vector<256x128xf32>
      %38 = arith.addf %33, %37 : vector<256x128xf32>
      %39 = vector.extract_strided_slice %29 {offsets = [0, 0], sizes = [128, 32], strides = [1, 1]} : vector<256x32xbf16> to vector<128x32xbf16>
      %40 = vector.extract_strided_slice %38 {offsets = [0, 0], sizes = [128, 128], strides = [1, 1]} : vector<256x128xf32> to vector<128x128xf32>
      %cst_25 = arith.constant dense<0.000000e+00> : vector<128x128xf32>
      %41 = tpu.matmul %39, %39, %cst_25 {dimension_numbers = #tpu.dot_dimension_numbers<[1], [1], [0], [0], [0, 0, 1, 0], [], []>} : vector<128x32xbf16>, vector<128x32xbf16>, vector<128x128xf32> -> vector<128x128xf32>
      %cst_26 = arith.constant dense<0xFF800000> : vector<128xf32>
      %42 = vector.multi_reduction <maximumf>, %41, %cst_26 [0] : vector<128x128xf32> to vector<128xf32>
      %43 = vector.shape_cast %42 : vector<128xf32> to vector<1x128xf32>
      %44 = vector.broadcast %43 : vector<1x128xf32> to vector<128x128xf32>
      %45 = arith.subf %41, %44 : vector<128x128xf32>
      %46 = arith.truncf %45 : vector<128x128xf32> to vector<128x128xbf16>
      %47 = math.exp %46 : vector<128x128xbf16>
      %48 = arith.extf %47 : vector<128x128xbf16> to vector<128x128xf32>
      %cst_27 = arith.constant dense<0.000000e+00> : vector<128xf32>
      %49 = vector.multi_reduction <add>, %48, %cst_27 [0] : vector<128x128xf32> to vector<128xf32>
      %50 = vector.shape_cast %49 : vector<128xf32> to vector<1x128xf32>
      %51 = tpu.reciprocal %50 {approx = true} : vector<1x128xf32> -> vector<1x128xf32>
      %52 = arith.truncf %51 : vector<1x128xf32> to vector<1x128xbf16>
      %53 = vector.broadcast %52 : vector<1x128xbf16> to vector<128x128xbf16>
      %54 = arith.mulf %47, %53 : vector<128x128xbf16>
      %55 = arith.extf %54 : vector<128x128xbf16> to vector<128x128xf32>
      %cst_28 = arith.constant dense<0.000000e+00> : vector<128xf32>
      %56 = vector.multi_reduction <add>, %55, %cst_28 [1] : vector<128x128xf32> to vector<128xf32>
      %57 = vector.shape_cast %56 : vector<128xf32> to vector<128x1xf32>
      %cst_29 = arith.constant 9.99999971E-10 : f32
      %58 = vector.broadcast %cst_29 : f32 to vector<128x1xf32>
      %59 = arith.addf %58, %57 : vector<128x1xf32>
      %60 = tpu.reciprocal %59 {approx = true} : vector<128x1xf32> -> vector<128x1xf32>
      %61 = arith.truncf %40 : vector<128x128xf32> to vector<128x128xbf16>
      %cst_30 = arith.constant dense<0.000000e+00> : vector<128x128xf32>
      %62 = tpu.matmul %54, %61, %cst_30 {dimension_numbers = #tpu.dot_dimension_numbers<[1], [0], [0], [1], [0, 0, 1, 1], [], []>} : vector<128x128xbf16>, vector<128x128xbf16>, vector<128x128xf32> -> vector<128x128xf32>
      %63 = vector.broadcast %60 : vector<128x1xf32> to vector<128x128xf32>
      %64 = arith.mulf %62, %63 : vector<128x128xf32>
      %65 = vector.extract_strided_slice %29 {offsets = [128, 0], sizes = [128, 32], strides = [1, 1]} : vector<256x32xbf16> to vector<128x32xbf16>
      %66 = vector.extract_strided_slice %38 {offsets = [128, 0], sizes = [128, 128], strides = [1, 1]} : vector<256x128xf32> to vector<128x128xf32>
      %cst_31 = arith.constant dense<0.000000e+00> : vector<128x128xf32>
      %67 = tpu.matmul %65, %65, %cst_31 {dimension_numbers = #tpu.dot_dimension_numbers<[1], [1], [0], [0], [0, 0, 1, 0], [], []>} : vector<128x32xbf16>, vector<128x32xbf16>, vector<128x128xf32> -> vector<128x128xf32>
      %cst_32 = arith.constant dense<0xFF800000> : vector<128xf32>
      %68 = vector.multi_reduction <maximumf>, %67, %cst_32 [0] : vector<128x128xf32> to vector<128xf32>
      %69 = vector.shape_cast %68 : vector<128xf32> to vector<1x128xf32>
      %70 = vector.broadcast %69 : vector<1x128xf32> to vector<128x128xf32>
      %71 = arith.subf %67, %70 : vector<128x128xf32>
      %72 = arith.truncf %71 : vector<128x128xf32> to vector<128x128xbf16>
      %73 = math.exp %72 : vector<128x128xbf16>
      %74 = arith.extf %73 : vector<128x128xbf16> to vector<128x128xf32>
      %cst_33 = arith.constant dense<0.000000e+00> : vector<128xf32>
      %75 = vector.multi_reduction <add>, %74, %cst_33 [0] : vector<128x128xf32> to vector<128xf32>
      %76 = vector.shape_cast %75 : vector<128xf32> to vector<1x128xf32>
      %77 = tpu.reciprocal %76 {approx = true} : vector<1x128xf32> -> vector<1x128xf32>
      %78 = arith.truncf %77 : vector<1x128xf32> to vector<1x128xbf16>
      %79 = vector.broadcast %78 : vector<1x128xbf16> to vector<128x128xbf16>
      %80 = arith.mulf %73, %79 : vector<128x128xbf16>
      %81 = arith.extf %80 : vector<128x128xbf16> to vector<128x128xf32>
      %cst_34 = arith.constant dense<0.000000e+00> : vector<128xf32>
      %82 = vector.multi_reduction <add>, %81, %cst_34 [1] : vector<128x128xf32> to vector<128xf32>
      %83 = vector.shape_cast %82 : vector<128xf32> to vector<128x1xf32>
      %cst_35 = arith.constant 9.99999971E-10 : f32
      %84 = vector.broadcast %cst_35 : f32 to vector<128x1xf32>
      %85 = arith.addf %84, %83 : vector<128x1xf32>
      %86 = tpu.reciprocal %85 {approx = true} : vector<128x1xf32> -> vector<128x1xf32>
      %87 = arith.truncf %66 : vector<128x128xf32> to vector<128x128xbf16>
      %cst_36 = arith.constant dense<0.000000e+00> : vector<128x128xf32>
      %88 = tpu.matmul %80, %87, %cst_36 {dimension_numbers = #tpu.dot_dimension_numbers<[1], [0], [0], [1], [0, 0, 1, 1], [], []>} : vector<128x128xbf16>, vector<128x128xbf16>, vector<128x128xf32> -> vector<128x128xf32>
      %89 = vector.broadcast %86 : vector<128x1xf32> to vector<128x128xf32>
      %90 = arith.mulf %88, %89 : vector<128x128xf32>
      %91 = tpu.concatenate %64, %90 in 0 : vector<128x128xf32>, vector<128x128xf32> -> vector<256x128xf32>
      %92 = arith.subf %arg11, %91 : vector<256x128xf32>
      %93 = arith.truncf %92 : vector<256x128xf32> to vector<256x128xbf16>
      %94 = arith.index_cast %arg10 : i32 to index
      %c0_37 = arith.constant 0 : index
      %c0_38 = arith.constant 0 : index
      %95 = vector.load %arg7[%94, %c0_37, %c0_38] : memref<4x128x128xbf16, #tpu.memory_space<vmem>>, vector<1x128x128xbf16>
      %96 = vector.shape_cast %95 : vector<1x128x128xbf16> to vector<128x128xbf16>
      %cst_39 = arith.constant dense<0.000000e+00> : vector<256x128xf32>
      %97 = tpu.matmul %93, %96, %cst_39 {dimension_numbers = #tpu.dot_dimension_numbers<[1], [0], [0], [1], [0, 0, 1, 1], [], []>} : vector<256x128xbf16>, vector<128x128xbf16>, vector<256x128xf32> -> vector<256x128xf32>
      %98 = arith.index_cast %arg10 : i32 to index
      %c0_40 = arith.constant 0 : index
      %c0_41 = arith.constant 0 : index
      %99 = vector.load %arg8[%98, %c0_40, %c0_41] : memref<4x1x128xf32, #tpu.memory_space<vmem>>, vector<1x1x128xf32>
      %100 = vector.shape_cast %99 : vector<1x1x128xf32> to vector<1x128xf32>
      %101 = vector.broadcast %100 : vector<1x128xf32> to vector<256x128xf32>
      %102 = arith.addf %97, %101 : vector<256x128xf32>
      %cst_42 = arith.constant 0.000000e+00 : f32
      %103 = vector.broadcast %cst_42 : f32 to vector<256x128xf32>
      %104 = arith.maximumf %102, %103 : vector<256x128xf32>
      %105 = arith.addf %arg11, %104 : vector<256x128xf32>
      %106 = vector.extract_strided_slice %105 {offsets = [0, 0], sizes = [128, 128], strides = [1, 1]} : vector<256x128xf32> to vector<128x128xf32>
      %107 = tpu.transpose %106, [1, 0] : vector<128x128xf32> -> vector<128x128xf32>
      %c0_43 = arith.constant 0 : index
      %108 = arith.index_cast %arg10 : i32 to index
      %c0_44 = arith.constant 0 : index
      %c0_45 = arith.constant 0 : index
      %109 = vector.load %arg9[%c0_43, %108, %c0_44, %c0_45] : memref<2x4x128x128xf32, #tpu.memory_space<vmem>>, vector<1x1x128x128xf32>
      %110 = vector.shape_cast %109 : vector<1x1x128x128xf32> to vector<128x128xf32>
      %111 = vector.shape_cast %107 : vector<128x128xf32> to vector<1x1x128x128xf32>
      tpu.vector_store %arg9[%c0_43, %108, %c0_44, %c0_45], %111 {strides = array<i32>} : memref<2x4x128x128xf32, #tpu.memory_space<vmem>>, vector<1x1x128x128xf32>,
      %112 = vector.extract_strided_slice %105 {offsets = [128, 0], sizes = [128, 128], strides = [1, 1]} : vector<256x128xf32> to vector<128x128xf32>
      %113 = tpu.transpose %112, [1, 0] : vector<128x128xf32> -> vector<128x128xf32>
      %c1_46 = arith.constant 1 : index
      %114 = arith.index_cast %arg10 : i32 to index
      %c0_47 = arith.constant 0 : index
      %c0_48 = arith.constant 0 : index
      %115 = vector.load %arg9[%c1_46, %114, %c0_47, %c0_48] : memref<2x4x128x128xf32, #tpu.memory_space<vmem>>, vector<1x1x128x128xf32>
      %116 = vector.shape_cast %115 : vector<1x1x128x128xf32> to vector<128x128xf32>
      %117 = vector.shape_cast %113 : vector<128x128xf32> to vector<1x1x128x128xf32>
      tpu.vector_store %arg9[%c1_46, %114, %c0_47, %c0_48], %117 {strides = array<i32>} : memref<2x4x128x128xf32, #tpu.memory_space<vmem>>, vector<1x1x128x128xf32>,
      scf.yield %105 : vector<256x128xf32>
    }
    %c4_i32_16 = arith.constant 4 : i32
    return
  }
  func.func @transform_0(%arg0: i32) -> (i32, i32, i32) {
    %c0_i32 = arith.constant 0 : i32
    %c0_i32_0 = arith.constant 0 : i32
    %c0_i32_1 = arith.constant 0 : i32
    return %arg0, %c0_i32, %c0_i32_0 : i32, i32, i32
  }
  func.func @transform_1(%arg0: i32) -> (i32, i32, i32) {
    %c0_i32 = arith.constant 0 : i32
    %c0_i32_0 = arith.constant 0 : i32
    %c0_i32_1 = arith.constant 0 : i32
    %c0_i32_2 = arith.constant 0 : i32
    return %c0_i32, %c0_i32_0, %c0_i32_1 : i32, i32, i32
  }
  func.func @transform_2(%arg0: i32) -> (i32, i32, i32) {
    %c0_i32 = arith.constant 0 : i32
    %c0_i32_0 = arith.constant 0 : i32
    %c0_i32_1 = arith.constant 0 : i32
    %c0_i32_2 = arith.constant 0 : i32
    return %c0_i32, %c0_i32_0, %c0_i32_1 : i32, i32, i32
  }
  func.func @transform_3(%arg0: i32) -> (i32, i32, i32) {
    %c0_i32 = arith.constant 0 : i32
    %c0_i32_0 = arith.constant 0 : i32
    %c0_i32_1 = arith.constant 0 : i32
    %c0_i32_2 = arith.constant 0 : i32
    return %c0_i32, %c0_i32_0, %c0_i32_1 : i32, i32, i32
  }
  func.func @transform_4(%arg0: i32) -> (i32, i32, i32) {
    %c0_i32 = arith.constant 0 : i32
    %c0_i32_0 = arith.constant 0 : i32
    %c0_i32_1 = arith.constant 0 : i32
    %c0_i32_2 = arith.constant 0 : i32
    return %c0_i32, %c0_i32_0, %c0_i32_1 : i32, i32, i32
  }
  func.func @transform_5(%arg0: i32) -> (i32, i32, i32) {
    %c0_i32 = arith.constant 0 : i32
    %c0_i32_0 = arith.constant 0 : i32
    %c0_i32_1 = arith.constant 0 : i32
    %c0_i32_2 = arith.constant 0 : i32
    return %c0_i32, %c0_i32_0, %c0_i32_1 : i32, i32, i32
  }
  func.func @transform_6(%arg0: i32) -> (i32, i32, i32) {
    %c0_i32 = arith.constant 0 : i32
    %c0_i32_0 = arith.constant 0 : i32
    %c0_i32_1 = arith.constant 0 : i32
    %c0_i32_2 = arith.constant 0 : i32
    return %c0_i32, %c0_i32_0, %c0_i32_1 : i32, i32, i32
  }
  func.func @transform_7(%arg0: i32) -> (i32, i32, i32) {
    %c0_i32 = arith.constant 0 : i32
    %c0_i32_0 = arith.constant 0 : i32
    %c0_i32_1 = arith.constant 0 : i32
    %c0_i32_2 = arith.constant 0 : i32
    return %c0_i32, %c0_i32_0, %c0_i32_1 : i32, i32, i32
  }
  func.func @transform_8(%arg0: i32) -> (i32, i32, i32, i32) {
    %c0_i32 = arith.constant 0 : i32
    %c0_i32_0 = arith.constant 0 : i32
    %c0_i32_1 = arith.constant 0 : i32
    %c0_i32_2 = arith.constant 0 : i32
    return %arg0, %c0_i32, %c0_i32_0, %c0_i32_1 : i32, i32, i32, i32
  }
}

</mosaic_0001>

<bundles_post_ra>
// kernel: point_transformer_last.1
= control target key start
LH: loop header
LB: loop body
LE: loop exit
PB: predicated region body
PF: predicated region fallthrough
CT: control target
= control target key end

     0   :  { %s5017_s0 = inlined_call_operand.vmem [shape: f32[4,128,128], index: 0, kind: input, shape index: {}]   ;;  %s5018_s1 = inlined_call_operand.vmem [shape: bf16[2,128,128], index: 1, kind: input, shape index: {}]   ;;  %s5019_s2 = inlined_call_operand.vmem [shape: f32[2,1,128], index: 2, kind: input, shape index: {}]   ;;  %s5020_s3 = inlined_call_operand.vmem [shape: bf16[4,128,32], index: 3, kind: input, shape index: {}]   ;;  %s5021_s4 = inlined_call_operand.vmem [shape: bf16[4,128,128], index: 4, kind: input, shape index: {}]   ;;  %s5022_s5 = inlined_call_operand.vmem [shape: f32[4,1,128], index: 5, kind: input, shape index: {}]   ;;  %s5023_s6 = inlined_call_operand.vmem [shape: bf16[4,128,128], index: 6, kind: input, shape index: {}]   ;;  %s5024_s7 = inlined_call_operand.vmem [shape: f32[4,1,128], index: 7, kind: input, shape index: {}]   ;;  %s5025_s8 = inlined_call_operand.hbm [shape: f32[4,4,128,128], index: 8, kind: output, shape index: {}]  }
   0x1   :  { %5061 = sst [smem:[#allocation22_spill]] %s5017_s0 }
   0x2   :  { %13 = vsyncpa [#allocation3], 0 }
   0x3   :  { %15 = vsyncpa [#allocation3 + $0x1], 0  ;;  %s3755_s27 = smov 0   ;;  %s3757_s28 = smov 0  }
   0x4   :  { %s3759_s29 = smov 0   ;;  %s3761_s30 = smov 0  }
   0x5 LB: > { %s3776_s9 = sadd.s32 4294967295, %s3574_s30   ;;  %s2616_s10 = sadd.s32 4294967294, %s3574_s30   ;;  %s3574_s30 = sphi %s3761_s30, %s5109_s30   ;;  %s3570_s29 = sphi %s3759_s29, %s5108_s29   ;;  %s3566_s28 = sphi %s3757_s28, %s5107_s28   ;;  %s3562_s27 = sphi %s3755_s27, %s5106_s27  }
   0x6   : > { %s3780_s11 = sadd.s32 1, %s3574_s30   ;;  %s201_s12 = sadd.s32 1, %s3570_s29 }
   0x7   : > { %s198_s13 = ssub.s32 %s3574_s30, %s3780_s11  ;;  %p211_p0 = scmp.ne.s32.totalorder %s3570_s29, %s3566_s28 }
   0x8   : > { %p199_p1 = scmp.eq.s32.totalorder %s198_s13, 0  ;;  %p212_p2 = scmp.eq.s32.totalorder %s3776_s9, 1 }
   0x9   : > { %p217_p3 = scmp.ne.s32.totalorder %s3566_s28, %s3562_s27  ;;  %p218_p4 = scmp.eq.s32.totalorder %s2616_s10, 1 }
   0xa   : > { %s3791_s14 = scalar_select %p199_p1, %s3570_s29, %s201_s12  }
   0xb   : > { %p3793_p5 = por %p212_p2, %p211_p0  ;;  %p3797_p6 = por %p218_p4, %p217_p3 }
   0xc   : > { %p2619_p7 = scmp.ge.s32.totalorder %s3574_s30, 1  ;;  %p267_p8 = scmp.lt.s32.totalorder %s3574_s30, 3 }
   0xe   : > { %p268_p9 = pnand %p2619_p7, %p267_p8 }
   0xf   : > { %s5026_s17 = sand.u32 (!%p268_p9), 1, %s3566_s28   ;;  %s2621_s25 = sshll.u32 (!%p268_p9), %s3776_s9, 1 }
  0x10   : > { %271 = sbr.rel (%p268_p9) target bundleno = 2136 (0x858), region = 52  ;;  %s3809_s20 = sshll.u32 (!%p268_p9), %s5026_s17, 10 }
  0x11   : > { %p303_p10 = scmp.lt.s32.totalorder (!%p268_p9), %s2621_s25, 3  ;;  %s5064_s0 = sld [smem:[#allocation22_spill]] (!%p268_p9) }
  0x12   : > { %s301_s13 = scalar_lea.vmem (!%p268_p9), [#allocation2], %s3809_s20 }
  0x15   : > { %v2853_v0 = vld [vmem:[%s5018_s1 + $0x38] sm:$0xff]  ;;  %v2852_v1 = vld [vmem:[%s5018_s1 + $0x30] sm:$0xff]  ;;  %v2851_v2 = vld [vmem:[%s5018_s1 + $0x28] sm:$0xff]  ;;  %s5111_s25 = smov (!%p303_p10, %s2621_s25), 3 }
  0x16   : > { %426 = vmatpush.bf16.msra.mxu0 %v2853_v0  ;;  %2891 = vmatpush.bf16.msra.mxu2 %v2853_v0  ;;  %v2850_v3 = vld [vmem:[%s5018_s1 + $0x20] sm:$0xff]  ;;  %v2849_v4 = vld [vmem:[%s5018_s1 + $0x18] sm:$0xff]  ;;  %v2848_v5 = vld [vmem:[%s5018_s1 + $0x10] sm:$0xff]  ;;  %s2845_s21 = sshll.u32 %s5111_s25, 7  ;;  %s4116_s25 = smov 0  }
  0x17   : > { %v2847_v6 = vld [vmem:[%s5018_s1 + $0x8] sm:$0xff]  ;;  %s3833_s10 = scalar_lea.vmem %s5064_s0, %s2845_s21  ;;  %v2846_v7 = vld [vmem:[%s5018_s1] sm:$0xff]  ;;  %v2861_v38 = vld [vmem:[%s5018_s1 + $0x78] sm:$0xff] }
  0x18   : > { %v310_v8 = vld [vmem:[%s3833_s10] sm:$0xff]  ;;  %v311_v9 = vld [vmem:[%s3833_s10 + $0x8] sm:$0xff]  ;;  %v312_v14 = vld [vmem:[%s3833_s10 + $0x10] sm:$0xff]  ;;  %633 = vmatpush.bf16.msra.mxu1 %v2861_v38  ;;  %2899 = vmatpush.bf16.msra.mxu3 %v2861_v38 }
  0x19   : > { %v326_v10 = vld [vmem:[%s3833_s10 + $0x80] sm:$0xff]  ;;  %v327_v11 = vld [vmem:[%s3833_s10 + $0x88] sm:$0xff]  ;;  %v342_v12 = vpack.c.bf16 %v311_v9, %v310_v8  ;;  %v313_v15 = vld [vmem:[%s3833_s10 + $0x18] sm:$0xff] }
  0x1a   : > { %427 = vmatpush.bf16.msra.mxu0 %v2852_v1  ;;  %2892 = vmatpush.bf16.msra.mxu2 %v2852_v1  ;;  %v350_v13 = vpack.c.bf16 %v327_v11, %v326_v10  ;;  %v328_v16 = vld [vmem:[%s3833_s10 + $0x90] sm:$0xff]  ;;  %v329_v17 = vld [vmem:[%s3833_s10 + $0x98] sm:$0xff]  ;;  %v343_v18 = vpack.c.bf16 %v313_v15, %v312_v14  ;;  %v314_v20 = vld [vmem:[%s3833_s10 + $0x20] sm:$0xff] }
  0x1b   : > { %v351_v19 = vpack.c.bf16 %v329_v17, %v328_v16  ;;  %v315_v21 = vld [vmem:[%s3833_s10 + $0x28] sm:$0xff]  ;;  %v330_v22 = vld [vmem:[%s3833_s10 + $0xa0] sm:$0xff]  ;;  %v316_v26 = vld [vmem:[%s3833_s10 + $0x30] sm:$0xff] }
  0x1c   : > { %v331_v23 = vld [vmem:[%s3833_s10 + $0xa8] sm:$0xff]  ;;  %v344_v24 = vpack.c.bf16 %v315_v21, %v314_v20  ;;  %v317_v27 = vld [vmem:[%s3833_s10 + $0x38] sm:$0xff]  ;;  %v332_v28 = vld [vmem:[%s3833_s10 + $0xb0] sm:$0xff] }
  0x1d   : > { %v352_v25 = vpack.c.bf16 %v331_v23, %v330_v22  ;;  %v333_v29 = vld [vmem:[%s3833_s10 + $0xb8] sm:$0xff]  ;;  %v345_v30 = vpack.c.bf16 %v317_v27, %v316_v26  ;;  %v318_v32 = vld [vmem:[%s3833_s10 + $0x40] sm:$0xff]  ;;  %v319_v33 = vld [vmem:[%s3833_s10 + $0x48] sm:$0xff] }
  0x1e   : > { %428 = vmatpush.bf16.msra.mxu0 %v2851_v2  ;;  %2893 = vmatpush.bf16.msra.mxu2 %v2851_v2  ;;  %v353_v31 = vpack.c.bf16 %v333_v29, %v332_v28  ;;  %v334_v34 = vld [vmem:[%s3833_s10 + $0xc0] sm:$0xff]  ;;  %v335_v35 = vld [vmem:[%s3833_s10 + $0xc8] sm:$0xff]  ;;  %v346_v36 = vpack.c.bf16 %v319_v33, %v318_v32  ;;  %v320_v39 = vld [vmem:[%s3833_s10 + $0x50] sm:$0xff] }
  0x1f   : > { %v354_v37 = vpack.c.bf16 %v335_v35, %v334_v34  ;;  %v321_v40 = vld [vmem:[%s3833_s10 + $0x58] sm:$0xff]  ;;  %v336_v41 = vld [vmem:[%s3833_s10 + $0xd0] sm:$0xff]  ;;  %v2859_v46 = vld [vmem:[%s5018_s1 + $0x68] sm:$0xff] }
  0x20   : > { %v337_v42 = vld [vmem:[%s3833_s10 + $0xd8] sm:$0xff]  ;;  %v347_v43 = vpack.c.bf16 %v321_v40, %v320_v39  ;;  %v2860_v45 = vld [vmem:[%s5018_s1 + $0x70] sm:$0xff]  ;;  %v2858_v47 = vld [vmem:[%s5018_s1 + $0x60] sm:$0xff] }
  0x21   : > { %v355_v44 = vpack.c.bf16 %v337_v42, %v336_v41  ;;  %634 = vmatpush.bf16.msra.mxu1 %v2860_v45  ;;  %2900 = vmatpush.bf16.msra.mxu3 %v2860_v45  ;;  %v322_v48 = vld [vmem:[%s3833_s10 + $0x60] sm:$0xff]  ;;  %v323_v49 = vld [vmem:[%s3833_s10 + $0x68] sm:$0xff]  ;;  %v2857_v52 = vld [vmem:[%s5018_s1 + $0x58] sm:$0xff] }
  0x22   : > { %429 = vmatpush.bf16.msra.mxu0 %v2850_v3  ;;  %2894 = vmatpush.bf16.msra.mxu2 %v2850_v3  ;;  %v338_v50 = vld [vmem:[%s3833_s10 + $0xe0] sm:$0xff]  ;;  %v339_v51 = vld [vmem:[%s3833_s10 + $0xe8] sm:$0xff]  ;;  %v348_v53 = vpack.c.bf16 %v323_v49, %v322_v48  ;;  %v2856_v55 = vld [vmem:[%s5018_s1 + $0x50] sm:$0xff] }
  0x23   : > { %v356_v54 = vpack.c.bf16 %v339_v51, %v338_v50  ;;  %v2855_v56 = vld [vmem:[%s5018_s1 + $0x48] sm:$0xff]  ;;  %v2854_v57 = vld [vmem:[%s5018_s1 + $0x40] sm:$0xff]  ;;  %v324_v58 = vld [vmem:[%s3833_s10 + $0x70] sm:$0xff] }
  0x24   : > { %v325_v59 = vld [vmem:[%s3833_s10 + $0x78] sm:$0xff]  ;;  %v340_v60 = vld [vmem:[%s3833_s10 + $0xf0] sm:$0xff]  ;;  %v3897_v1 = vld [vmem:[%s5019_s2] ss:$0 sm:$0xff] }
  0x25   : > { %635 = vmatpush.bf16.msra.mxu1 %v2859_v46  ;;  %2901 = vmatpush.bf16.msra.mxu3 %v2859_v46  ;;  %v341_v61 = vld [vmem:[%s3833_s10 + $0xf8] sm:$0xff]  ;;  %v349_v62 = vpack.c.bf16 %v325_v59, %v324_v58 }
  0x26   : > { %430 = vmatpush.bf16.msra.mxu0 %v2849_v4  ;;  %2895 = vmatpush.bf16.msra.mxu2 %v2849_v4  ;;  %v357_v63 = vpack.c.bf16 %v341_v61, %v340_v60 }
  0x29   : > { %636 = vmatpush.bf16.msra.mxu1 %v2858_v47  ;;  %2902 = vmatpush.bf16.msra.mxu3 %v2858_v47 }
  0x2a   : > { %431 = vmatpush.bf16.msra.mxu0 %v2848_v5  ;;  %2896 = vmatpush.bf16.msra.mxu2 %v2848_v5 }
  0x2d   : > { %637 = vmatpush.bf16.msra.mxu1 %v2857_v52  ;;  %2903 = vmatpush.bf16.msra.mxu3 %v2857_v52 }
  0x2e   : > { %432 = vmatpush.bf16.msra.mxu0 %v2847_v6  ;;  %2897 = vmatpush.bf16.msra.mxu2 %v2847_v6 }
  0x31   : > { %638 = vmatpush.bf16.msra.mxu1 %v2856_v55  ;;  %2904 = vmatpush.bf16.msra.mxu3 %v2856_v55 }
  0x32   : > { %433 = vmatpush.bf16.msra.mxu0 %v2846_v7  ;;  %2898 = vmatpush.bf16.msra.mxu2 %v2846_v7 }
  0x35   : > { %434 = vmatmul.bf16.vlgmr.msra.gmra.mxu0 %v342_v12  ;;  %474 = vmatmul.bf16.vlgmr.msra.gmra.mxu2 %v350_v13 }
  0x36   : > { %639 = vmatpush.bf16.msra.mxu1 %v2855_v56  ;;  %2905 = vmatpush.bf16.msra.mxu3 %v2855_v56 }
  0x3a   : > { %640 = vmatpush.bf16.msra.mxu1 %v2854_v57  ;;  %2906 = vmatpush.bf16.msra.mxu3 %v2854_v57 }
  0x45   : > { %439 = vmatmul.bf16.gmra.mxu0 %v343_v18  ;;  %479 = vmatmul.bf16.gmra.mxu2 %v351_v19 }
  0x55   : > { %444 = vmatmul.bf16.gmra.mxu0 %v344_v24  ;;  %484 = vmatmul.bf16.gmra.mxu2 %v352_v25 }
  0x65   : > { %449 = vmatmul.bf16.gmra.mxu0 %v345_v30  ;;  %489 = vmatmul.bf16.gmra.mxu2 %v353_v31 }
  0x75   : > { %454 = vmatmul.bf16.gmra.mxu0 %v346_v36  ;;  %494 = vmatmul.bf16.gmra.mxu2 %v354_v37 }
  0x85   : > { %459 = vmatmul.bf16.gmra.mxu0 %v347_v43  ;;  %499 = vmatmul.bf16.gmra.mxu2 %v355_v44 }
  0x95   : > { %464 = vmatmul.bf16.gmra.mxu0 %v348_v53  ;;  %504 = vmatmul.bf16.gmra.mxu2 %v356_v54 }
  0xa5   : > { %469 = vmatmul.bf16.gmra.mxu0 %v349_v62  ;;  %509 = vmatmul.bf16.gmra.mxu2 %v357_v63 }
  0xb2   : > { %v435_v0 = vpop.f32.mrf.mxu0 }
  0xb3   : > { %v436_v2 = vadd.f32 %v3897_v1, %v435_v0 }
  0xb5   : > { %v515_v5 = vmax.f32 %v436_v2, 0.0 }
  0xb8   : > { %v475_v3 = vpop.f32.mrf.mxu2 }
  0xb9   : > { %v476_v8 = vadd.f32 %v3897_v1, %v475_v3 }
  0xba   : > { %v437_v4 = vpop.f32.mrf.mxu0 }
  0xbb   : > { %v438_v6 = vadd.f32 %v3897_v1, %v437_v4  ;;  %v531_v13 = vmax.f32 %v476_v8, 0.0 }
  0xbd   : > { %v516_v7 = vmax.f32 %v438_v6, 0.0 }
  0xbf   : > { %v547_v9 = vpack.c.bf16 %v516_v7, %v515_v5 }
  0xc0   : > { %v477_v10 = vpop.f32.mrf.mxu2 }
  0xc1   : > { %v478_v11 = vadd.f32 %v3897_v1, %v477_v10  ;;  %641 = vmatmul.bf16.vlgmr.msra.gmra.mxu1 %v547_v9 }
  0xc2   : > { %v440_v12 = vpop.f32.mrf.mxu0 }
  0xc3   : > { %v532_v14 = vmax.f32 %v478_v11, 0.0  ;;  %v441_v16 = vadd.f32 %v3897_v1, %v440_v12 }
  0xc5   : > { %v555_v15 = vpack.c.bf16 %v532_v14, %v531_v13  ;;  %v517_v19 = vmax.f32 %v441_v16, 0.0 }
  0xc7   : > { %681 = vmatmul.bf16.vlgmr.msra.gmra.mxu3 %v555_v15 }
  0xc8   : > { %v480_v17 = vpop.f32.mrf.mxu2 }
  0xc9   : > { %v481_v22 = vadd.f32 %v3897_v1, %v480_v17 }
  0xca   : > { %v442_v18 = vpop.f32.mrf.mxu0 }
  0xcb   : > { %v443_v20 = vadd.f32 %v3897_v1, %v442_v18  ;;  %v533_v27 = vmax.f32 %v481_v22, 0.0 }
  0xcd   : > { %v518_v21 = vmax.f32 %v443_v20, 0.0 }
  0xcf   : > { %v548_v23 = vpack.c.bf16 %v518_v21, %v517_v19 }
  0xd0   : > { %v482_v24 = vpop.f32.mrf.mxu2 }
  0xd1   : > { %v483_v25 = vadd.f32 %v3897_v1, %v482_v24  ;;  %646 = vmatmul.bf16.gmra.mxu1 %v548_v23 }
  0xd2   : > { %v445_v26 = vpop.f32.mrf.mxu0 }
  0xd3   : > { %v534_v28 = vmax.f32 %v483_v25, 0.0  ;;  %v446_v30 = vadd.f32 %v3897_v1, %v445_v26 }
  0xd5   : > { %v556_v29 = vpack.c.bf16 %v534_v28, %v533_v27  ;;  %v519_v33 = vmax.f32 %v446_v30, 0.0 }
  0xd7   : > { %686 = vmatmul.bf16.gmra.mxu3 %v556_v29 }
  0xd8   : > { %v485_v31 = vpop.f32.mrf.mxu2 }
  0xd9   : > { %v486_v36 = vadd.f32 %v3897_v1, %v485_v31 }
  0xda   : > { %v447_v32 = vpop.f32.mrf.mxu0 }
  0xdb   : > { %v448_v34 = vadd.f32 %v3897_v1, %v447_v32  ;;  %v535_v41 = vmax.f32 %v486_v36, 0.0 }
  0xdd   : > { %v520_v35 = vmax.f32 %v448_v34, 0.0 }
  0xdf   : > { %v549_v37 = vpack.c.bf16 %v520_v35, %v519_v33 }
  0xe0   : > { %v487_v38 = vpop.f32.mrf.mxu2 }
  0xe1   : > { %v488_v39 = vadd.f32 %v3897_v1, %v487_v38  ;;  %651 = vmatmul.bf16.gmra.mxu1 %v549_v37 }
  0xe2   : > { %v450_v40 = vpop.f32.mrf.mxu0 }
  0xe3   : > { %v536_v42 = vmax.f32 %v488_v39, 0.0  ;;  %v451_v44 = vadd.f32 %v3897_v1, %v450_v40 }
  0xe5   : > { %v557_v43 = vpack.c.bf16 %v536_v42, %v535_v41  ;;  %v521_v47 = vmax.f32 %v451_v44, 0.0 }
  0xe7   : > { %691 = vmatmul.bf16.gmra.mxu3 %v557_v43 }
  0xe8   : > { %v490_v45 = vpop.f32.mrf.mxu2 }
  0xe9   : > { %v491_v50 = vadd.f32 %v3897_v1, %v490_v45 }
  0xea   : > { %v452_v46 = vpop.f32.mrf.mxu0 }
  0xeb   : > { %v453_v48 = vadd.f32 %v3897_v1, %v452_v46  ;;  %v537_v55 = vmax.f32 %v491_v50, 0.0  ;;  %v3934_v50 = vld [vmem:[%s5019_s2 + $0x1] ss:$0 sm:$0xff] }
  0xed   : > { %v522_v49 = vmax.f32 %v453_v48, 0.0 }
  0xef   : > { %v550_v51 = vpack.c.bf16 %v522_v49, %v521_v47 }
  0xf0   : > { %v492_v52 = vpop.f32.mrf.mxu2 }
  0xf1   : > { %v493_v53 = vadd.f32 %v3897_v1, %v492_v52  ;;  %656 = vmatmul.bf16.gmra.mxu1 %v550_v51 }
  0xf2   : > { %v455_v54 = vpop.f32.mrf.mxu0 }
  0xf3   : > { %v538_v56 = vmax.f32 %v493_v53, 0.0  ;;  %v456_v58 = vadd.f32 %v3897_v1, %v455_v54 }
  0xf5   : > { %v558_v57 = vpack.c.bf16 %v538_v56, %v537_v55  ;;  %v523_v61 = vmax.f32 %v456_v58, 0.0 }
  0xf7   : > { %696 = vmatmul.bf16.gmra.mxu3 %v558_v57 }
  0xf8   : > { %v495_v59 = vpop.f32.mrf.mxu2 }
  0xf9   : > { %v496_v0 = vadd.f32 %v3897_v1, %v495_v59 }
  0xfa   : > { %v457_v60 = vpop.f32.mrf.mxu0 }
  0xfb   : > { %v458_v62 = vadd.f32 %v3897_v1, %v457_v60  ;;  %v539_v6 = vmax.f32 %v496_v0, 0.0 }
  0xfd   : > { %v524_v63 = vmax.f32 %v458_v62, 0.0 }
  0xff   : > { %v551_v2 = vpack.c.bf16 %v524_v63, %v523_v61 }
 0x100   : > { %v497_v3 = vpop.f32.mrf.mxu2 }
 0x101   : > { %v498_v4 = vadd.f32 %v3897_v1, %v497_v3  ;;  %661 = vmatmul.bf16.gmra.mxu1 %v551_v2 }
 0x102   : > { %v460_v5 = vpop.f32.mrf.mxu0 }
 0x103   : > { %v540_v7 = vmax.f32 %v498_v4, 0.0  ;;  %v461_v9 = vadd.f32 %v3897_v1, %v460_v5 }
 0x105   : > { %v559_v8 = vpack.c.bf16 %v540_v7, %v539_v6  ;;  %v525_v12 = vmax.f32 %v461_v9, 0.0 }
 0x107   : > { %701 = vmatmul.bf16.gmra.mxu3 %v559_v8 }
 0x108   : > { %v500_v10 = vpop.f32.mrf.mxu2 }
 0x109   : > { %v501_v15 = vadd.f32 %v3897_v1, %v500_v10 }
 0x10a   : > { %v462_v11 = vpop.f32.mrf.mxu0 }
 0x10b   : > { %v463_v13 = vadd.f32 %v3897_v1, %v462_v11  ;;  %v541_v20 = vmax.f32 %v501_v15, 0.0 }
 0x10d   : > { %v526_v14 = vmax.f32 %v463_v13, 0.0 }
 0x10f   : > { %v552_v16 = vpack.c.bf16 %v526_v14, %v525_v12 }
 0x110   : > { %v502_v17 = vpop.f32.mrf.mxu2 }
 0x111   : > { %v503_v18 = vadd.f32 %v3897_v1, %v502_v17  ;;  %666 = vmatmul.bf16.gmra.mxu1 %v552_v16 }
 0x112   : > { %v465_v19 = vpop.f32.mrf.mxu0 }
 0x113   : > { %v542_v21 = vmax.f32 %v503_v18, 0.0  ;;  %v466_v23 = vadd.f32 %v3897_v1, %v465_v19 }
 0x115   : > { %v560_v22 = vpack.c.bf16 %v542_v21, %v541_v20  ;;  %v527_v26 = vmax.f32 %v466_v23, 0.0 }
 0x117   : > { %706 = vmatmul.bf16.gmra.mxu3 %v560_v22 }
 0x118   : > { %v505_v24 = vpop.f32.mrf.mxu2 }
 0x119   : > { %v506_v29 = vadd.f32 %v3897_v1, %v505_v24 }
 0x11a   : > { %v467_v25 = vpop.f32.mrf.mxu0 }
 0x11b   : > { %v468_v27 = vadd.f32 %v3897_v1, %v467_v25  ;;  %v543_v34 = vmax.f32 %v506_v29, 0.0 }
 0x11d   : > { %v528_v28 = vmax.f32 %v468_v27, 0.0 }
 0x11f   : > { %v553_v30 = vpack.c.bf16 %v528_v28, %v527_v26 }
 0x120   : > { %v507_v31 = vpop.f32.mrf.mxu2 }
 0x121   : > { %v508_v32 = vadd.f32 %v3897_v1, %v507_v31  ;;  %671 = vmatmul.bf16.gmra.mxu1 %v553_v30 }
 0x122   : > { %v470_v33 = vpop.f32.mrf.mxu0 }
 0x123   : > { %v544_v35 = vmax.f32 %v508_v32, 0.0  ;;  %v471_v37 = vadd.f32 %v3897_v1, %v470_v33 }
 0x125   : > { %v561_v36 = vpack.c.bf16 %v544_v35, %v543_v34  ;;  %v529_v40 = vmax.f32 %v471_v37, 0.0 }
 0x127   : > { %711 = vmatmul.bf16.gmra.mxu3 %v561_v36 }
 0x128   : > { %v510_v38 = vpop.f32.mrf.mxu2 }
 0x129   : > { %v511_v43 = vadd.f32 %v3897_v1, %v510_v38 }
 0x12a   : > { %v472_v39 = vpop.f32.mrf.mxu0 }
 0x12b   : > { %v473_v41 = vadd.f32 %v3897_v1, %v472_v39  ;;  %v545_v47 = vmax.f32 %v511_v43, 0.0 }
 0x12d   : > { %v530_v42 = vmax.f32 %v473_v41, 0.0 }
 0x12f   : > { %v554_v44 = vpack.c.bf16 %v530_v42, %v529_v40 }
 0x130   : > { %v512_v45 = vpop.f32.mrf.mxu2 }
 0x131   : > { %v513_v46 = vadd.f32 %v3897_v1, %v512_v45  ;;  %676 = vmatmul.bf16.gmra.mxu1 %v554_v44 }
 0x133   : > { %v546_v48 = vmax.f32 %v513_v46, 0.0 }
 0x135   : > { %v562_v49 = vpack.c.bf16 %v546_v48, %v545_v47 }
 0x137   : > { %716 = vmatmul.bf16.gmra.mxu3 %v562_v49 }
 0x13e   : > { %v642_v51 = vpop.f32.mrf.mxu1 }
 0x13f   : > { %v3937_v52 = vadd.f32 %v3934_v50, %v642_v51 }
 0x141   : > { %v722_v53 = vmax.f32 %v3937_v52, 0.0  }
 0x146   : > { %v644_v54 = vpop.f32.mrf.mxu1 }
 0x147   : > { %v3941_v55 = vadd.f32 %v3934_v50, %v644_v54 }
 0x149   : > { %v723_v1 = vmax.f32 %v3941_v55, 0.0  }
 0x14a   : > { %v682_v56 = vpop.f32.mrf.mxu3 }
 0x14b   : > { %v3945_v57 = vadd.f32 %v3934_v50, %v682_v56 }
 0x14d   : > { %v738_v58 = vmax.f32 %v3945_v57, 0.0  }
 0x14e   : > { %v647_v59 = vpop.f32.mrf.mxu1 }
 0x14f   : > { %v3949_v60 = vadd.f32 %v3934_v50, %v647_v59 }
 0x151   : > { %v724_v61 = vmax.f32 %v3949_v60, 0.0  }
 0x152   : > { %v684_v62 = vpop.f32.mrf.mxu3 }
 0x153   : > { %v3953_v63 = vadd.f32 %v3934_v50, %v684_v62 }
 0x155   : > { %v739_v0 = vmax.f32 %v3953_v63, 0.0  }
 0x156   : > { %v649_v2 = vpop.f32.mrf.mxu1 }
 0x157   : > { %v3957_v3 = vadd.f32 %v3934_v50, %v649_v2 }
 0x159   : > { %v725_v4 = vmax.f32 %v3957_v3, 0.0  }
 0x15a   : > { %v687_v5 = vpop.f32.mrf.mxu3 }
 0x15b   : > { %v3961_v6 = vadd.f32 %v3934_v50, %v687_v5 }
 0x15d   : > { %v740_v7 = vmax.f32 %v3961_v6, 0.0  }
 0x15e   : > { %v652_v8 = vpop.f32.mrf.mxu1 }
 0x15f   : > { %v3965_v9 = vadd.f32 %v3934_v50, %v652_v8 }
 0x161   : > { %v726_v10 = vmax.f32 %v3965_v9, 0.0  }
 0x162   : > { %v689_v11 = vpop.f32.mrf.mxu3 }
 0x163   : > { %v3969_v12 = vadd.f32 %v3934_v50, %v689_v11 }
 0x165   : > { %v741_v13 = vmax.f32 %v3969_v12, 0.0  }
 0x166   : > { %v654_v14 = vpop.f32.mrf.mxu1 }
 0x167   : > { %v3973_v15 = vadd.f32 %v3934_v50, %v654_v14 }
 0x169   : > { %v727_v16 = vmax.f32 %v3973_v15, 0.0  }
 0x16a   : > { %v692_v17 = vpop.f32.mrf.mxu3 }
 0x16b   : > { %v3977_v18 = vadd.f32 %v3934_v50, %v692_v17 }
 0x16d   : > { %v742_v19 = vmax.f32 %v3977_v18, 0.0  }
 0x16e   : > { %v657_v20 = vpop.f32.mrf.mxu1 }
 0x16f   : > { %v3981_v21 = vadd.f32 %v3934_v50, %v657_v20 }
 0x171   : > { %v728_v22 = vmax.f32 %v3981_v21, 0.0  }
 0x172   : > { %v694_v23 = vpop.f32.mrf.mxu3 }
 0x173   : > { %v3985_v24 = vadd.f32 %v3934_v50, %v694_v23 }
 0x175   : > { %v743_v25 = vmax.f32 %v3985_v24, 0.0  }
 0x176   : > { %v659_v26 = vpop.f32.mrf.mxu1 }
 0x177   : > { %v3989_v27 = vadd.f32 %v3934_v50, %v659_v26 }
 0x179   : > { %v729_v28 = vmax.f32 %v3989_v27, 0.0  }
 0x17a   : > { %v697_v29 = vpop.f32.mrf.mxu3 }
 0x17b   : > { %v3993_v30 = vadd.f32 %v3934_v50, %v697_v29 }
 0x17d   : > { %v744_v31 = vmax.f32 %v3993_v30, 0.0  }
 0x17e   : > { %v662_v32 = vpop.f32.mrf.mxu1 }
 0x17f   : > { %v3997_v33 = vadd.f32 %v3934_v50, %v662_v32 }
 0x181   : > { %v730_v34 = vmax.f32 %v3997_v33, 0.0  }
 0x182   : > { %v699_v35 = vpop.f32.mrf.mxu3 }
 0x183   : > { %v700_v36 = vadd.f32 %v3934_v50, %v699_v35 }
 0x185   : > { %v745_v37 = vmax.f32 %v700_v36, 0.0  }
 0x186   : > { %v664_v38 = vpop.f32.mrf.mxu1 }
 0x187   : > { %v4002_v39 = vadd.f32 %v3934_v50, %v664_v38 }
 0x189   : > { %v731_v40 = vmax.f32 %v4002_v39, 0.0  }
 0x18a   : > { %v702_v41 = vpop.f32.mrf.mxu3 }
 0x18b   : > { %v703_v42 = vadd.f32 %v3934_v50, %v702_v41 }
 0x18d   : > { %v746_v43 = vmax.f32 %v703_v42, 0.0  }
 0x18e   : > { %v667_v44 = vpop.f32.mrf.mxu1 }
 0x18f   : > { %v668_v45 = vadd.f32 %v3934_v50, %v667_v44 }
 0x191   : > { %v732_v46 = vmax.f32 %v668_v45, 0.0  }
 0x192   : > { %v704_v47 = vpop.f32.mrf.mxu3 }
 0x193   : > { %v705_v48 = vadd.f32 %v3934_v50, %v704_v47 }
 0x195   : > { %v747_v49 = vmax.f32 %v705_v48, 0.0  }
 0x196   : > { %v669_v51 = vpop.f32.mrf.mxu1 }
 0x197   : > { %v670_v54 = vadd.f32 %v3934_v50, %v669_v51 }
 0x199   : > { %v733_v56 = vmax.f32 %v670_v54, 0.0  }
 0x19a   : > { %v707_v59 = vpop.f32.mrf.mxu3 }
 0x19b   : > { %v708_v62 = vadd.f32 %v3934_v50, %v707_v59 }
 0x19d   : > { %v748_v2 = vmax.f32 %v708_v62, 0.0  }
 0x19e   : > { %v672_v5 = vpop.f32.mrf.mxu1 }
 0x19f   : > { %v673_v8 = vadd.f32 %v3934_v50, %v672_v5 }
 0x1a1   : > { %v734_v11 = vmax.f32 %v673_v8, 0.0  }
 0x1a2   : > { %v709_v14 = vpop.f32.mrf.mxu3 }
 0x1a3   : > { %v710_v17 = vadd.f32 %v3934_v50, %v709_v14 }
 0x1a5   : > { %v749_v20 = vmax.f32 %v710_v17, 0.0  }
 0x1a6   : > { %v674_v23 = vpop.f32.mrf.mxu1 }
 0x1a7   : > { %v675_v26 = vadd.f32 %v3934_v50, %v674_v23 }
 0x1a9   : > { %v735_v29 = vmax.f32 %v675_v26, 0.0  }
 0x1aa   : > { %v712_v30 = vpop.f32.mrf.mxu3 }
 0x1ab   : > { %v713_v32 = vadd.f32 %v3934_v50, %v712_v30 }
 0x1ad   : > { %v750_v35 = vmax.f32 %v713_v32, 0.0  }
 0x1ae   : > { %v677_v36 = vpop.f32.mrf.mxu1 }
 0x1af   : > { %v678_v38 = vadd.f32 %v3934_v50, %v677_v36 }
 0x1b1   : > { %v736_v41 = vmax.f32 %v678_v38, 0.0  }
 0x1b2   : > { %v714_v42 = vpop.f32.mrf.mxu3 }
 0x1b3   : > { %v715_v44 = vadd.f32 %v3934_v50, %v714_v42 }
 0x1b5   : > { %v751_v45 = vmax.f32 %v715_v44, 0.0  }
 0x1b6   : > { %v679_v47 = vpop.f32.mrf.mxu1 }
 0x1b7   : > { %v680_v48 = vadd.f32 %v3934_v50, %v679_v47 }
 0x1b9   : > { %v737_v51 = vmax.f32 %v680_v48, 0.0  }
 0x1ba   : > { %v717_v54 = vpop.f32.mrf.mxu3 }
 0x1bb   : > { %v718_v59 = vadd.f32 %v3934_v50, %v717_v54 }
 0x1bd   : > { %v752_v62 = vmax.f32 %v718_v59, 0.0  }
 0x1c2   : > { %v719_v5 = vpop.f32.mrf.mxu3 }
 0x1c3   : > { %v720_v8 = vadd.f32 %v3934_v50, %v719_v5 }
 0x1c5   : > { %v753_v14 = vmax.f32 %v720_v8, 0.0  }
 0x1c6 LB: >> { %5065 = vst [vmem:[#allocation5_spill] sm:$0xff] %v3578_v14  ;;  %s4218_s18 = sshll.u32 %s3706_s25, 6  ;;  %s1014_s22 = scalar_lea.vmem %s5022_s5, %s3706_s25  ;;  %v792_v9 = vpack.c.bf16 %v3698_v1, %v3702_v53  ;;  %v797_v12 = vpack.c.bf16 %v3658_v56, %v3662_v46  ;;  %v793_v15 = vpack.c.bf16 %v3690_v4, %v3694_v61  ;;  %v4250_v18 = vpack.c.bf16 %v3650_v29, %v3654_v11  ;;  %s3706_s25 = sphi %s4116_s25, %s5104_s25   ;;  %v3702_v53 = vphi %v722_v53, %v4663_v53   ;;  %v3698_v1 = vphi %v723_v1, %v4668_v1   ;;  %v3694_v61 = vphi %v724_v61, %v4672_v61   ;;  %v3690_v4 = vphi %v725_v4, %v4678_v4   ;;  %v3686_v10 = vphi %v726_v10, %v4682_v10   ;;  %v3682_v16 = vphi %v727_v16, %v4688_v16   ;;  %v3678_v22 = vphi %v728_v22, %v4692_v22   ;;  %v3674_v28 = vphi %v729_v28, %v4697_v28   ;;  %v3670_v34 = vphi %v730_v34, %v4702_v34   ;;  %v3666_v40 = vphi %v731_v40, %v4709_v40   ;;  %v3662_v46 = vphi %v732_v46, %v4714_v46   ;;  %v3658_v56 = vphi %v733_v56, %v4721_v56   ;;  %v3654_v11 = vphi %v734_v11, %v4726_v11   ;;  %v3650_v29 = vphi %v735_v29, %v4733_v29   ;;  %v3646_v41 = vphi %v736_v41, %v4738_v41   ;;  %v3642_v51 = vphi %v737_v51, %v4745_v51   ;;  %v3638_v58 = vphi %v738_v58, %v4758_v58   ;;  %v3634_v0 = vphi %v739_v0, %v5103_v0   ;;  %v3630_v7 = vphi %v740_v7, %v4768_v7   ;;  %v3626_v13 = vphi %v741_v13, %v4773_v13   ;;  %v3622_v19 = vphi %v742_v19, %v4778_v19   ;;  %v3618_v25 = vphi %v743_v25, %v5102_v25   ;;  %v3614_v31 = vphi %v744_v31, %v4788_v31   ;;  %v3610_v37 = vphi %v745_v37, %v5101_v37   ;;  %v3606_v43 = vphi %v746_v43, %v4798_v43   ;;  %v3602_v49 = vphi %v747_v49, %v4803_v49   ;;  %v3598_v2 = vphi %v748_v2, %v4808_v2   ;;  %v3594_v20 = vphi %v749_v20, %v4813_v20   ;;  %v3590_v35 = vphi %v750_v35, %v4823_v35   ;;  %v3586_v45 = vphi %v751_v45, %v4829_v45   ;;  %v3582_v62 = vphi %v752_v62, %v4834_v62   ;;  %v3578_v14 = vphi %v753_v14, %v4839_v14  }
 0x1c7   : >> { %5066 = vst [vmem:[#allocation6_spill] sm:$0xff] %v3582_v62  ;;  %s4228_s26 = scalar_lea.vmem %s5020_s3, %s4218_s18  ;;  %s2117_s17 = scalar_lea.vmem %s5024_s7, %s3706_s25  ;;  %v794_v39 = vpack.c.bf16 %v3682_v16, %v3686_v10  ;;  %v4261_v17 = vpack.c.bf16 %v3642_v51, %v3646_v41  ;;  %v795_v36 = vpack.c.bf16 %v3674_v28, %v3678_v22  ;;  %v4268_v38 = vpack.c.bf16 %v3634_v0, %v3638_v58 }
 0x1c8   : >> { %5067 = vst [vmem:[#allocation7_spill] sm:$0xff] %v3586_v45  ;;  %v2870_v50 = vld [vmem:[%s4228_s26 + $0x38] sm:$0xff]  ;;  %v2869_v52 = vld [vmem:[%s4228_s26 + $0x30] sm:$0xff]  ;;  %v2868_v55 = vld [vmem:[%s4228_s26 + $0x28] sm:$0xff]  ;;  %s997_s23 = scalar_lea.vmem %s5021_s4, %s4218_s18  ;;  %v796_v42 = vpack.c.bf16 %v3666_v40, %v3670_v34  ;;  %v4275_v44 = vpack.c.bf16 %v3626_v13, %v3630_v7  ;;  %v4284_v5 = vpack.c.bf16 %v3618_v25, %v3622_v19  ;;  %vm1196_vm0 = vcmask 261120   ;;  %s4520_s12 = scalar_lea.vmem %s5023_s6, %s4218_s18 }
 0x1c9   : >> { %5068 = vst [vmem:[#allocation8_spill] sm:$0xff] %v3590_v35  ;;  %875 = vmatpush.bf16.msra.mxu0 %v2870_v50  ;;  %2907 = vmatpush.bf16.msra.mxu1 %v2870_v50  ;;  %v2867_v57 = vld [vmem:[%s4228_s26 + $0x20] sm:$0xff]  ;;  %v2866_v60 = vld [vmem:[%s4228_s26 + $0x18] sm:$0xff]  ;;  %v2865_v63 = vld [vmem:[%s4228_s26 + $0x10] sm:$0xff] }
 0x1ca   : >> { %5069 = vst [vmem:[#allocation9_spill] sm:$0xff] %v3594_v20  ;;  %2908 = vmatpush.bf16.msra.mxu2 %v2870_v50  ;;  %2909 = vmatpush.bf16.msra.mxu3 %v2870_v50  ;;  %v2864_v3 = vld [vmem:[%s4228_s26 + $0x8] sm:$0xff]  ;;  %v2863_v6 = vld [vmem:[%s4228_s26] sm:$0xff]  ;;  %v2879_v21 = vld [vmem:[%s997_s23 + $0x38] sm:$0xff] }
 0x1cb   : >> { %5070 = vst [vmem:[#allocation10_spill] sm:$0xff] %v3598_v2  ;;  %v2878_v24 = vld [vmem:[%s997_s23 + $0x30] sm:$0xff]  ;;  %v2877_v27 = vld [vmem:[%s997_s23 + $0x28] sm:$0xff]  ;;  %v2876_v33 = vld [vmem:[%s997_s23 + $0x20] sm:$0xff] }
 0x1cc   : >> { %5071 = vst [vmem:[#allocation11_spill] sm:$0xff] %v3602_v49  ;;  %v2875_v23 = vld [vmem:[%s997_s23 + $0x18] sm:$0xff]  ;;  %v2874_v26 = vld [vmem:[%s997_s23 + $0x10] sm:$0xff]  ;;  %v2873_v30 = vld [vmem:[%s997_s23 + $0x8] sm:$0xff] }
 0x1cd   : >> { %5072 = vst [vmem:[#allocation12_spill] sm:$0xff] %v3606_v43  ;;  %876 = vmatpush.bf16.msra.mxu0 %v2869_v52  ;;  %2910 = vmatpush.bf16.msra.mxu1 %v2869_v52  ;;  %v2872_v32 = vld [vmem:[%s997_s23] sm:$0xff]  ;;  %s759_s23 = sadd.s32 1, %s3706_s25  }
 0x1ce   : >> { %5073 = vst [vmem:[#allocation13_spill] sm:$0xff] %v3610_v37  ;;  %2911 = vmatpush.bf16.msra.mxu2 %v2869_v52  ;;  %2912 = vmatpush.bf16.msra.mxu3 %v2869_v52  ;;  %p4876_p11 = scmp.ge.s32.totalorder %s759_s23, 4  }
 0x1cf   : >> { %5074 = vst [vmem:[#allocation14_spill] sm:$0xff] %v3614_v31  ;;  %s2890_s26 = sshll.u32 (%p4876_p11), %s3776_s9, 10  ;;  %s2437_s18 = sshll.u32 (%p4876_p11), %s301_s13, 4  ;;  %s2438_s18 = int_to_ptr.vmem [resolvable:$true] %s2437_s18 }
 0x1d0   : >> { %5075 = vst [vmem:[#allocation15_spill] sm:$0xff] %v3618_v25  ;;  %s3400_s0 = scalar_lea.hbm (%p4876_p11), %s5025_s8, 2048 }
 0x1d1   : >> { %5076 = vst [vmem:[#allocation16_spill] sm:$0xff] %v3622_v19  ;;  %877 = vmatpush.bf16.msra.mxu0 %v2868_v55  ;;  %2913 = vmatpush.bf16.msra.mxu1 %v2868_v55 }
 0x1d2   : >> { %5077 = vst [vmem:[#allocation17_spill] sm:$0xff] %v3626_v13  ;;  %2914 = vmatpush.bf16.msra.mxu2 %v2868_v55  ;;  %2915 = vmatpush.bf16.msra.mxu3 %v2868_v55 }
 0x1d3   : >> { %5078 = vst [vmem:[#allocation18_spill] sm:$0xff] %v3630_v7 }
 0x1d4   : >> { %5079 = vst [vmem:[#allocation19_spill] sm:$0xff] %v3634_v0 }
 0x1d5   : >> { %5080 = vst [vmem:[#allocation20_spill] sm:$0xff] %v3638_v58  ;;  %878 = vmatpush.bf16.msra.mxu0 %v2867_v57  ;;  %2916 = vmatpush.bf16.msra.mxu1 %v2867_v57 }
 0x1d6   : >> { %5081 = vst [vmem:[#allocation21_spill] sm:$0xff] %v3642_v51  ;;  %2917 = vmatpush.bf16.msra.mxu2 %v2867_v57  ;;  %2918 = vmatpush.bf16.msra.mxu3 %v2867_v57  ;;  %v4293_v57 = vpack.c.bf16 %v3610_v37, %v3614_v31 }
 0x1d9   : >> { %879 = vmatpush.bf16.msra.mxu0 %v2866_v60  ;;  %2919 = vmatpush.bf16.msra.mxu1 %v2866_v60 }
 0x1da   : >> { %2920 = vmatpush.bf16.msra.mxu2 %v2866_v60  ;;  %2921 = vmatpush.bf16.msra.mxu3 %v2866_v60 }
 0x1dd   : >> { %880 = vmatpush.bf16.msra.mxu0 %v2865_v63  ;;  %2922 = vmatpush.bf16.msra.mxu1 %v2865_v63 }
 0x1de   : >> { %2923 = vmatpush.bf16.msra.mxu2 %v2865_v63  ;;  %2924 = vmatpush.bf16.msra.mxu3 %v2865_v63 }
 0x1e1   : >> { %881 = vmatpush.bf16.msra.mxu0 %v2864_v3  ;;  %2925 = vmatpush.bf16.msra.mxu1 %v2864_v3 }
 0x1e2   : >> { %2926 = vmatpush.bf16.msra.mxu2 %v2864_v3  ;;  %2927 = vmatpush.bf16.msra.mxu3 %v2864_v3 }
 0x1e5   : >> { %882 = vmatpush.bf16.msra.mxu0 %v2863_v6  ;;  %2928 = vmatpush.bf16.msra.mxu1 %v2863_v6 }
 0x1e6   : >> { %2929 = vmatpush.bf16.msra.mxu2 %v2863_v6  ;;  %2930 = vmatpush.bf16.msra.mxu3 %v2863_v6  ;;  %v4300_v6 = vpack.c.bf16 %v3586_v45, %v3590_v35 }
 0x1e8   : >> { %883 = vmatmul.bf16.vlgmr.msra.gmra.mxu0 %v792_v9  ;;  %908 = vmatmul.bf16.vlgmr.msra.gmra.mxu1 %v797_v12 }
 0x1e9   : >> { %1067 = vmatpush.bf16.msrb.mxu1 %v2879_v21  ;;  %933 = vmatmul.bf16.vlgmr.msra.gmra.mxu2 %v4284_v5 }
 0x1ea   : >> { %953 = vmatmul.bf16.vlgmr.msra.gmra.mxu3 %v4300_v6 }
 0x1ed   : >> { %1068 = vmatpush.bf16.msrb.mxu1 %v2878_v24 }
 0x1f1   : >> { %1069 = vmatpush.bf16.msrb.mxu1 %v2877_v27 }
 0x1f5   : >> { %1070 = vmatpush.bf16.msrb.mxu1 %v2876_v33 }
 0x1f8   : >> { %888 = vmatmul.bf16.gmra.mxu0 %v793_v15  ;;  %913 = vmatmul.bf16.gmra.mxu1 %v4250_v18 }
 0x1f9   : >> { %1071 = vmatpush.bf16.msrb.mxu1 %v2875_v23  ;;  %938 = vmatmul.bf16.gmra.mxu2 %v4293_v57 }
 0x1fd   : >> { %1072 = vmatpush.bf16.msrb.mxu1 %v2874_v26  ;;  %v4307_v26 = vpack.c.bf16 %v3602_v49, %v3606_v43 }
 0x201   : >> { %1073 = vmatpush.bf16.msrb.mxu1 %v2873_v30 }
 0x205   : >> { %1074 = vmatpush.bf16.msrb.mxu1 %v2872_v32 }
 0x208   : >> { %893 = vmatmul.bf16.gmra.mxu0 %v794_v39  ;;  %918 = vmatmul.bf16.gmra.mxu1 %v4261_v17 }
 0x209   : >> { %943 = vmatmul.bf16.gmra.mxu2 %v4307_v26 }
 0x218   : >> { %898 = vmatmul.bf16.gmra.mxu0 %v795_v36  ;;  %923 = vmatmul.bf16.gmra.mxu1 %v4268_v38 }
 0x228   : >> { %903 = vmatmul.bf16.gmra.mxu0 %v796_v42  ;;  %928 = vmatmul.bf16.gmra.mxu1 %v4275_v44 }
 0x238   : >> { %1075 = vmatmul.bf16.vlgmr.msrb.gmra.mxu1 %v792_v9 }
 0x248   : >> { %1080 = vmatmul.bf16.gmra.mxu1 %v793_v15 }
 0x258   : >> { %1085 = vmatmul.bf16.gmra.mxu1 %v794_v39 }
 0x265   : >> { %v4278_v47 = vpop.f32.mrf.mxu0  ;;  %v909_v48 = vpop.f32.mrf.mxu1 }
 0x268   : >> { %1090 = vmatmul.bf16.gmra.mxu1 %v795_v36 }
 0x26d   : >> { %v4280_v54 = vpop.f32.mrf.mxu0  ;;  %v911_v59 = vpop.f32.mrf.mxu1 }
 0x275   : >> { %v4287_v8 = vpop.f32.mrf.mxu0  ;;  %v914_v50 = vpop.f32.mrf.mxu1 }
 0x276   : >> { %v976_v27 = vpack.c.bf16 %v914_v50, %v914_v50  ;;  %v974_v50 = vpack.c.bf16 %v909_v48, %v909_v48 }
 0x278   : >> { %1095 = vmatmul.bf16.gmra.mxu1 %v796_v42 }
 0x27d   : >> { %v4289_v52 = vpop.f32.mrf.mxu0  ;;  %v916_v55 = vpop.f32.mrf.mxu1 }
 0x27e   : >> { %v977_v33 = vpack.c.bf16 %v916_v55, %v916_v55  ;;  %v975_v55 = vpack.c.bf16 %v911_v59, %v911_v59 }
 0x280   : >> { %v1185_v30 = vunpack.c.l.b16 %v977_v33 }
 0x285   : >> { %v4296_v60 = vpop.f32.mrf.mxu0  ;;  %v919_v63 = vpop.f32.mrf.mxu1 }
 0x286   : >> { %v978_v3 = vpack.c.bf16 %v919_v63, %v919_v63 }
 0x288   : >> { %1100 = vmatmul.bf16.gmra.mxu1 %v797_v12  ;;  %v1186_v21 = vunpack.c.l.b16 %v978_v3  ;;  %v1184_v12 = vunpack.c.l.b16 %v976_v27  ;;  %v4319_v3 = vpack.c.bf16 %v3578_v14, %v3582_v62 }
 0x28a   : >> { %v4315_v63 = vpack.c.b16 %v1185_v30, %v1184_v12  ;;  %958 = vmatmul.bf16.gmra.mxu3 %v4319_v3 }
 0x28d   : >> { %v896_v9 = vpop.f32.mrf.mxu0  ;;  %v921_v15 = vpop.f32.mrf.mxu1 }
 0x28e   : >> { %v979_v24 = vpack.c.bf16 %v921_v15, %v921_v15  ;;  %v1182_v15 = vunpack.c.l.b16 %v974_v50 }
 0x290   : >> { %v1187_v39 = vunpack.c.l.b16 %v979_v24  ;;  %v1216_v24 = vsel %vm1196_vm0, %v4315_v63, 0 }
 0x292   : >> { %v4303_v23 = vpack.c.b16 %v1187_v39, %v1186_v21  ;;  %v1183_v21 = vunpack.c.l.b16 %v975_v55 }
 0x294   : >> { %v1219_v32 = vsel %vm1196_vm0, %v4303_v23, 0  ;;  %v4326_v48 = vpack.c.b16 %v1183_v21, %v1182_v15 }
 0x295   : >> { %v899_v36 = vpop.f32.mrf.mxu0  ;;  %v4312_v42 = vpop.f32.mrf.mxu1  ;;  %1221 = vmatpush.bf16.xpose.msrb.mxu2 %v1219_v32 }
 0x296   : >> { %v1213_v59 = vsel %vm1196_vm0, %v4326_v48, 0  ;;  %v970_v14 = vpack.c.bf16 %v899_v36, %v899_v36 }
 0x298   : >> { %1105 = vmatmul.bf16.gmra.mxu1 %v4250_v18  ;;  %v805_v18 = vpack.c.bf16 %v3594_v20, %v3598_v2  ;;  %v1178_v2 = vunpack.c.l.b16 %v970_v14 }
 0x29a   : >> { %948 = vmatmul.bf16.gmra.mxu2 %v805_v18 }
 0x29d   : >> { %v901_v27 = vpop.f32.mrf.mxu0  ;;  %v4324_v33 = vpop.f32.mrf.mxu1  ;;  %1222 = vmatpush.bf16.xpose.msrb.mxu2 %v1216_v24 }
 0x29e   : >> { %v971_v15 = vpack.c.bf16 %v901_v27, %v901_v27 }
 0x2a0   : >> { %v1179_v45 = vunpack.c.l.b16 %v971_v15  ;;  %v964_v15 = vpack.c.bf16 %v4278_v47, %v4278_v47 }
 0x2a2   : >> { %v1191_v49 = vpack.c.b16 %v1179_v45, %v1178_v2 }
 0x2a4   : >> { %v1207_v27 = vsel %vm1196_vm0, %v1191_v49, 0 }
 0x2a5   : >> { %v904_v39 = vpop.f32.mrf.mxu0  ;;  %v4332_v12 = vpop.f32.mrf.mxu1  ;;  %1223 = vmatpush.bf16.xpose.msrb.mxu2 %v1213_v59  ;;  %v969_v59 = vpack.c.bf16 %v896_v9, %v896_v9 }
 0x2a6   : >> { %v972_v30 = vpack.c.bf16 %v904_v39, %v904_v39 }
 0x2a7   : >> { %v1177_v39 = vunpack.c.l.b16 %v969_v59 }
 0x2a8   : >> { %1110 = vmatmul.bf16.gmra.mxu1 %v4261_v17  ;;  %v1180_v21 = vunpack.c.l.b16 %v972_v30  ;;  %v968_v17 = vpack.c.bf16 %v4296_v60, %v4296_v60  ;;  %v965_v60 = vpack.c.bf16 %v4280_v54, %v4280_v54 }
 0x2aa   : >> { %v1176_v36 = vunpack.c.l.b16 %v968_v17 }
 0x2ad   : >> { %v906_v32 = vpop.f32.mrf.mxu0  ;;  %v4335_v50 = vpop.f32.mrf.mxu1 }
 0x2ae   : >> { %v973_v55 = vpack.c.bf16 %v906_v32, %v906_v32  ;;  %v967_v32 = vpack.c.bf16 %v4289_v52, %v4289_v52  ;;  %v1173_v52 = vunpack.c.l.b16 %v965_v60 }
 0x2b0   : >> { %v1181_v24 = vunpack.c.l.b16 %v973_v55  ;;  %v1190_v55 = vpack.c.b16 %v1177_v39, %v1176_v36  ;;  %v1175_v14 = vunpack.c.l.b16 %v967_v32 }
 0x2b2   : >> { %v1192_v62 = vpack.c.b16 %v1181_v24, %v1180_v21  ;;  %v1204_v2 = vsel %vm1196_vm0, %v1190_v55, 0 }
 0x2b4   : >> { %v1210_v35 = vsel %vm1196_vm0, %v1192_v62, 0 }
 0x2b5   : >> { %v4338_v20 = vpop.f32.mrf.mxu1  ;;  %1224 = vmatpush.bf16.xpose.msrb.mxu2 %v1210_v35  ;;  %v966_v35 = vpack.c.bf16 %v4287_v8, %v4287_v8  ;;  %v1172_v8 = vunpack.c.l.b16 %v964_v15  ;;  %v954_v15 = vpop.f32.mrf.mxu3 }
 0x2b7   : >> { %v1188_v59 = vpack.c.b16 %v1173_v52, %v1172_v8 }
 0x2b8   : >> { %1115 = vmatmul.bf16.gmra.mxu1 %v4268_v38  ;;  %v1174_v38 = vunpack.c.l.b16 %v966_v35  ;;  %v4362_v35 = vpop.f32.mrf.mxu2 }
 0x2b9   : >> { %v1198_v17 = vsel %vm1196_vm0, %v1188_v59, 0 }
 0x2ba   : >> { %v1189_v9 = vpack.c.b16 %v1175_v14, %v1174_v38 }
 0x2bc   : >> { %v1201_v21 = vsel %vm1196_vm0, %v1189_v9, 0 }
 0x2bd   : >> { %v1078_v30 = vpop.f32.mrf.mxu1  ;;  %1225 = vmatpush.bf16.xpose.msrb.mxu2 %v1207_v27 }
 0x2c0   : >> { %v4365_v14 = vpop.f32.mrf.mxu2 }
 0x2c5   : >> { %v1081_v45 = vpop.f32.mrf.mxu1  ;;  %1226 = vmatpush.bf16.xpose.msrb.mxu2 %v1204_v2 }
 0x2c8   : >> { %1120 = vmatmul.bf16.gmra.mxu1 %v4275_v44 }
 0x2cd   : >> { %v1083_v24 = vpop.f32.mrf.mxu1  ;;  %1227 = vmatpush.bf16.xpose.msrb.mxu2 %v1201_v21 }
 0x2d5   : >> { %v1086_v39 = vpop.f32.mrf.mxu1  ;;  %1228 = vmatpush.bf16.xpose.msrb.mxu2 %v1198_v17 }
 0x2d8   : >> { %1125 = vmatmul.bf16.gmra.mxu1 %v4284_v5 }
 0x2dc   : >> { %2772 = vmatmul.msk.bf16.vlgmr.msrb.gmra.mxu2 %vm1196_vm0, %v1188_v59 }
 0x2dd   : >> { %v1088_v54 = vpop.f32.mrf.mxu1 }
 0x2e5   : >> { %v1091_v44 = vpop.f32.mrf.mxu1 }
 0x2e8   : >> { %1130 = vmatmul.bf16.gmra.mxu1 %v4293_v57  ;;  %v4372_v57 = vld [vmem:[%s1014_s22] ss:$0 sm:$0xff] }
 0x2e9   : >> { %v1087_v38 = vadd.f32 %v4372_v57, %v1086_v39  ;;  %v1089_v60 = vadd.f32 %v4372_v57, %v1088_v54  ;;  %v1082_v52 = vadd.f32 %v4372_v57, %v1081_v45  ;;  %v1084_v21 = vadd.f32 %v4372_v57, %v1083_v24  ;;  %v956_v39 = vpop.f32.mrf.mxu3 }
 0x2eb   : >> { %v1532_v59 = vpack.c.bf16 %v1084_v21, %v1082_v52 }
 0x2ec   : >> { %2773 = vmatmul.msk.bf16.gmra.mxu2 %vm1196_vm0, %v1189_v9 }
 0x2ed   : >> { %v1093_v47 = vpop.f32.mrf.mxu1 }
 0x2f5   : >> { %v1096_v27 = vpop.f32.mrf.mxu1 }
 0x2f6   : >> { %v1097_v21 = vadd.f32 %v4372_v57, %v1096_v27  ;;  %v992_v27 = vpack.c.bf16 %v954_v15, %v954_v15  ;;  %v982_v15 = vpack.c.bf16 %v4332_v12, %v4332_v12 }
 0x2f8   : >> { %1135 = vmatmul.bf16.gmra.mxu1 %v4307_v26  ;;  %v1092_v26 = vadd.f32 %v4372_v57, %v1091_v44  ;;  %v1079_v44 = vadd.f32 %v4372_v57, %v1078_v30 }
 0x2fc   : >> { %2774 = vmatmul.msk.bf16.gmra.mxu2 %vm1196_vm0, %v1190_v55 }
 0x2fd   : >> { %v1098_v36 = vpop.f32.mrf.mxu1 }
 0x305   : >> { %v1101_v32 = vpop.f32.mrf.mxu1 }
 0x306   : >> { %v1102_v30 = vadd.f32 %v4372_v57, %v1101_v32 }
 0x308   : >> { %1140 = vmatmul.bf16.gmra.mxu1 %v805_v18  ;;  %v1094_v18 = vadd.f32 %v4372_v57, %v1093_v47 }
 0x30a   : >> { %v1534_v9 = vpack.c.bf16 %v1094_v18, %v1092_v26 }
 0x30c   : >> { %2775 = vmatmul.msk.bf16.gmra.mxu2 %vm1196_vm0, %v1191_v49  ;;  %v4378_v49 = vpop.f32.mrf.mxu2 }
 0x30d   : >> { %v1103_v5 = vpop.f32.mrf.mxu1  ;;  %v959_v52 = vpop.f32.mrf.mxu3 }
 0x30e   : >> { %v994_v32 = vpack.c.bf16 %v959_v52, %v959_v52  ;;  %v1622_v52 = vunpack.c.l.b16 %v982_v15 }
 0x314   : >> { %v4384_v17 = vpop.f32.mrf.mxu2 }
 0x315   : >> { %v1106_v2 = vpop.f32.mrf.mxu1 }
 0x316   : >> { %v1107_v47 = vadd.f32 %v4372_v57, %v1106_v2 }
 0x318   : >> { %1145 = vmatmul.bf16.gmra.mxu1 %v4300_v6  ;;  %v1533_v6 = vpack.c.bf16 %v1089_v60, %v1087_v38 }
 0x31c   : >> { %2776 = vmatmul.msk.bf16.gmra.mxu2 %vm1196_vm0, %v1192_v62  ;;  %v1077_v62 = vadd.f32 %v4372_v57, %v4338_v20  ;;  %v944_v20 = vpop.f32.mrf.mxu2 }
 0x31d   : >> { %v1108_v55 = vpop.f32.mrf.mxu1 }
 0x31e   : >> { %v1531_v45 = vpack.c.bf16 %v1079_v44, %v1077_v62  ;;  %v1109_v26 = vadd.f32 %v4372_v57, %v1108_v55  ;;  %v961_v62 = vpop.f32.mrf.mxu3 }
 0x31f   : >> { %v995_v44 = vpack.c.bf16 %v961_v62, %v961_v62 }
 0x320   : >> { %v1537_v60 = vpack.c.bf16 %v1109_v26, %v1107_v47  ;;  %v993_v47 = vpack.c.bf16 %v956_v39, %v956_v39  ;;  %v1632_v26 = vunpack.c.l.b16 %v992_v27 }
 0x324   : >> { %v946_v55 = vpop.f32.mrf.mxu2 }
 0x325   : >> { %v1111_v8 = vpop.f32.mrf.mxu1 }
 0x326   : >> { %v1112_v54 = vadd.f32 %v4372_v57, %v1111_v8 }
 0x328   : >> { %1150 = vmatmul.bf16.gmra.mxu1 %v4319_v3  ;;  %v1104_v3 = vadd.f32 %v4372_v57, %v1103_v5  ;;  %v1634_v5 = vunpack.c.l.b16 %v994_v32 }
 0x32a   : >> { %v1536_v8 = vpack.c.bf16 %v1104_v3, %v1102_v30 }
 0x32c   : >> { %2777 = vmatmul.msk.bf16.gmra.mxu2 %vm1196_vm0, %v4326_v48  ;;  %v1099_v48 = vadd.f32 %v4372_v57, %v1098_v36 }
 0x32d   : >> { %v1113_v24 = vpop.f32.mrf.mxu1 }
 0x32e   : >> { %v1114_v18 = vadd.f32 %v4372_v57, %v1113_v24  ;;  %v1535_v2 = vpack.c.bf16 %v1099_v48, %v1097_v21  ;;  %v949_v24 = vpop.f32.mrf.mxu2  ;;  %v988_v48 = vpack.c.bf16 %v944_v20, %v944_v20  ;;  %v987_v20 = vpack.c.bf16 %v4384_v17, %v4384_v17 }
 0x32f   : >> { %v990_v30 = vpack.c.bf16 %v949_v24, %v949_v24 }
 0x330   : >> { %v1538_v38 = vpack.c.bf16 %v1114_v18, %v1112_v54  ;;  %v1635_v54 = vunpack.c.l.b16 %v995_v44  ;;  %v1633_v18 = vunpack.c.l.b16 %v993_v47  ;;  %v1628_v32 = vunpack.c.l.b16 %v988_v48 }
 0x331   : >> { %v1627_v27 = vunpack.c.l.b16 %v987_v20 }
 0x332   : >> { %1539 = vmatpush.bf16.msrb.mxu3 %v1538_v38  ;;  %v4402_v36 = vpack.c.b16 %v1635_v54, %v1634_v5  ;;  %v4408_v38 = vpack.c.b16 %v1633_v18, %v1632_v26  ;;  %v984_v18 = vpack.c.bf16 %v4362_v35, %v4362_v35 }
 0x334   : >> { %v1663_v39 = vsel %vm1196_vm0, %v4408_v38, 0 }
 0x336   : >> { %1540 = vmatpush.bf16.msrb.mxu3 %v1537_v60  ;;  %v981_v60 = vpack.c.bf16 %v4324_v33, %v4324_v33  ;;  %v986_v33 = vpack.c.bf16 %v4378_v49, %v4378_v49  ;;  %v1624_v49 = vunpack.c.l.b16 %v984_v18 }
 0x338   : >> { %v1626_v24 = vunpack.c.l.b16 %v986_v33 }
 0x33a   : >> { %1541 = vmatpush.bf16.msrb.mxu3 %v1536_v8  ;;  %v989_v8 = vpack.c.bf16 %v946_v55, %v946_v55 }
 0x33c   : >> { %2778 = vmatmul.msk.bf16.gmra.mxu2 %vm1196_vm0, %v4315_v63  ;;  %v1666_v63 = vsel %vm1196_vm0, %v4402_v36, 0  ;;  %v1629_v44 = vunpack.c.l.b16 %v989_v8 }
 0x33e   : >> { %1542 = vmatpush.bf16.msrb.mxu3 %v1535_v2  ;;  %v4432_v55 = vpack.c.b16 %v1629_v44, %v1628_v32 }
 0x340   : >> { %v1657_v47 = vsel %vm1196_vm0, %v4432_v55, 0 }
 0x342   : >> { %1543 = vmatpush.bf16.msrb.mxu3 %v1534_v9  ;;  %v951_v9 = vpop.f32.mrf.mxu2 }
 0x346   : >> { %1544 = vmatpush.bf16.msrb.mxu3 %v1533_v6  ;;  %v991_v6 = vpack.c.bf16 %v951_v9, %v951_v9  ;;  %v4440_v9 = vpack.c.b16 %v1627_v27, %v1626_v24 }
 0x348   : >> { %v1631_v3 = vunpack.c.l.b16 %v991_v6  ;;  %v1654_v17 = vsel %vm1196_vm0, %v4440_v9, 0 }
 0x34a   : >> { %1545 = vmatpush.bf16.msrb.mxu3 %v1532_v59  ;;  %v983_v59 = vpack.c.bf16 %v4335_v50, %v4335_v50  ;;  %v1621_v50 = vunpack.c.l.b16 %v981_v60 }
 0x34c   : >> { %2779 = vmatmul.msk.bf16.gmra.mxu2 %vm1196_vm0, %v4303_v23  ;;  %v1630_v23 = vunpack.c.l.b16 %v990_v30  ;;  %v1623_v21 = vunpack.c.l.b16 %v983_v59 }
 0x34e   : >> { %1546 = vmatpush.bf16.msrb.mxu3 %v1531_v45  ;;  %v980_v45 = vpack.c.bf16 %v4312_v42, %v4312_v42  ;;  %v4420_v12 = vpack.c.b16 %v1631_v3, %v1630_v23  ;;  %v4422_v62 = vpack.c.b16 %v1623_v21, %v1622_v52 }
 0x350   : >> { %v1620_v2 = vunpack.c.l.b16 %v980_v45  ;;  %v1660_v5 = vsel %vm1196_vm0, %v4420_v12, 0  ;;  %v1648_v35 = vsel %vm1196_vm0, %v4422_v62, 0 }
 0x352   : >> { %1668 = vmatpush.bf16.xpose.msra.mxu3 %v1666_v63  ;;  %v4426_v54 = vpack.c.b16 %v1621_v50, %v1620_v2  ;;  %v985_v63 = vpack.c.bf16 %v4365_v14, %v4365_v14 }
 0x354   : >> { %v1625_v30 = vunpack.c.l.b16 %v985_v63  ;;  %v1645_v23 = vsel %vm1196_vm0, %v4426_v54, 0 }
 0x356   : >> { %v4444_v15 = vpack.c.b16 %v1625_v30, %v1624_v49 }
 0x358   : >> { %v1651_v59 = vsel %vm1196_vm0, %v4444_v15, 0 }
 0x35a   : >> { %1669 = vmatpush.bf16.xpose.msra.mxu3 %v1663_v39 }
 0x35f   : >> { %v1230_v42 = vpop.f32.mrf.mxu2 }
 0x362   : >> { %1670 = vmatpush.bf16.xpose.msra.mxu3 %v1660_v5 }
 0x367   : >> { %v1232_v26 = vpop.f32.mrf.mxu2 }
 0x36a   : >> { %1671 = vmatpush.bf16.xpose.msra.mxu3 %v1657_v47 }
 0x36f   : >> { %v1235_v6 = vpop.f32.mrf.mxu2 }
 0x372   : >> { %1672 = vmatpush.bf16.xpose.msra.mxu3 %v1654_v17 }
 0x377   : >> { %v1237_v39 = vpop.f32.mrf.mxu2 }
 0x37a   : >> { %1673 = vmatpush.bf16.xpose.msra.mxu3 %v1651_v59 }
 0x37f   : >> { %v1240_v14 = vpop.f32.mrf.mxu2 }
 0x380   : >> { %v1270_v5 = vmax.f32 %v1230_v42, %v1240_v14 }
 0x382   : >> { %1674 = vmatpush.bf16.xpose.msra.mxu3 %v1648_v35 }
 0x387   : >> { %v1242_v3 = vpop.f32.mrf.mxu2 }
 0x388   : >> { %v1271_v44 = vmax.f32 %v1232_v26, %v1242_v3 }
 0x38a   : >> { %1675 = vmatpush.bf16.xpose.msra.mxu3 %v1645_v23 }
 0x38f   : >> { %v1245_v45 = vpop.f32.mrf.mxu2 }
 0x390   : >> { %v1272_v33 = vmax.f32 %v1235_v6, %v1245_v45 }
 0x397   : >> { %v1247_v60 = vpop.f32.mrf.mxu2 }
 0x398   : >> { %v1273_v20 = vmax.f32 %v1237_v39, %v1247_v60 }
 0x39f   : >> { %v1250_v52 = vpop.f32.mrf.mxu2 }
 0x3a0   : >> { %v1274_v27 = vmax.f32 %v1270_v5, %v1250_v52 }
 0x3a7   : >> { %v1252_v21 = vpop.f32.mrf.mxu2 }
 0x3a8   : >> { %v1275_v24 = vmax.f32 %v1271_v44, %v1252_v21 }
 0x3af   : >> { %v1255_v48 = vpop.f32.mrf.mxu2 }
 0x3b0   : >> { %v1276_v47 = vmax.f32 %v1272_v33, %v1255_v48 }
 0x3b7   : >> { %v1257_v8 = vpop.f32.mrf.mxu2 }
 0x3b8   : >> { %v1277_v18 = vmax.f32 %v1273_v20, %v1257_v8 }
 0x3bf   : >> { %v4452_v2 = vpop.f32.mrf.mxu2 }
 0x3c0   : >> { %v1278_v30 = vmax.f32 %v1274_v27, %v4452_v2 }
 0x3c7   : >> { %v4454_v50 = vpop.f32.mrf.mxu2 }
 0x3c8   : >> { %v1279_v63 = vmax.f32 %v1275_v24, %v4454_v50 }
 0x3ca   : >> { %v1282_v35 = vmax.f32 %v1278_v30, %v1279_v63 }
 0x3cf   : >> { %v4456_v32 = vpop.f32.mrf.mxu2 }
 0x3d0   : >> { %v1280_v17 = vmax.f32 %v1276_v47, %v4456_v32 }
 0x3d7   : >> { %v4459_v49 = vpop.f32.mrf.mxu2 }
 0x3d8   : >> { %v1281_v59 = vmax.f32 %v1277_v18, %v4459_v49 }
 0x3da   : >> { %v1283_v23 = vmax.f32 %v1280_v17, %v1281_v59 }
 0x3dc   : >> { %v1284_v43 = vmax.f32 %v1282_v35, %v1283_v23 }
 0x3de   : >> { %v1285_v37 = vrot.slane %v1284_v43, 4 }
 0x3e0   : >> { %v1286_v31 = vmax.f32 %v1284_v43, %v1285_v37 }
 0x3e2   : >> { %v1287_v25 = vrot.slane %v1286_v31, 2 }
 0x3e4   : >> { %v1288_v44 = vmax.f32 %v1286_v31, %v1287_v25 }
 0x3e6   : >> { %v1289_v5 = vrot.slane %v1288_v44, 1 }
 0x3e8   : >> { %v1290_v33 = vmax.f32 %v1288_v44, %v1289_v5 }
 0x3ea   : >> { %v1291_v20 = vsub.f32 %v1230_v42, %v1290_v33  ;;  %v1292_v19 = vsub.f32 %v1232_v26, %v1290_v33  ;;  %v1293_v24 = vsub.f32 %v1235_v6, %v1290_v33  ;;  %v1294_v13 = vsub.f32 %v1237_v39, %v1290_v33 }
 0x3eb   : >> { %v1295_v7 = vsub.f32 %v1240_v14, %v1290_v33  ;;  %v1296_v0 = vsub.f32 %v1242_v3, %v1290_v33  ;;  %v1297_v51 = vsub.f32 %v1245_v45, %v1290_v33  ;;  %v1298_v30 = vsub.f32 %v1247_v60, %v1290_v33 }
 0x3ec   : >> { %v1307_v27 = vpack.c.bf16 %v1291_v20, %v1291_v20  ;;  %v1308_v58 = vpack.c.bf16 %v1292_v19, %v1292_v19  ;;  %v1309_v47 = vpack.c.bf16 %v1293_v24, %v1293_v24  ;;  %v1310_v18 = vpack.c.bf16 %v1294_v13, %v1294_v13 }
 0x3ed   : >> { %v1311_v63 = vpack.c.bf16 %v1295_v7, %v1295_v7  ;;  %v1312_v17 = vpack.c.bf16 %v1296_v0, %v1296_v0  ;;  %v1299_v25 = vsub.f32 %v1250_v52, %v1290_v33  ;;  %v1313_v31 = vpack.c.bf16 %v1297_v51, %v1297_v51 }
 0x3ee   : >> { %v1323_v59 = vunpack.c.l.bf16 %v1307_v27  ;;  %v1324_v37 = vunpack.c.l.bf16 %v1308_v58  ;;  %v1325_v43 = vunpack.c.l.bf16 %v1309_v47  ;;  %v1326_v35 = vunpack.c.l.bf16 %v1310_v18 }
 0x3ef   : >> { %v1327_v42 = vunpack.c.l.bf16 %v1311_v63  ;;  %v1300_v26 = vsub.f32 %v1252_v21, %v1290_v33  ;;  %v1314_v6 = vpack.c.bf16 %v1298_v30, %v1298_v30  ;;  %v1328_v39 = vunpack.c.l.bf16 %v1312_v17 }
 0x3f0   : >> { %v1339_v14 = vmul.f32 1.442695, %v1323_v59  ;;  %v1341_v3 = vmul.f32 1.442695, %v1324_v37  ;;  %v1343_v23 = vmul.f32 1.442695, %v1325_v43  ;;  %v1301_v19 = vsub.f32 %v1255_v48, %v1290_v33 }
 0x3f1   : >> { %v1315_v44 = vpack.c.bf16 %v1299_v25, %v1299_v25  ;;  %v1329_v45 = vunpack.c.l.bf16 %v1313_v31  ;;  %v1345_v13 = vmul.f32 1.442695, %v1326_v35  ;;  %v1302_v7 = vsub.f32 %v1257_v8, %v1290_v33 }
 0x3f2   : >> { %3248 = vpow2.f32 %v1339_v14  ;;  %v1347_v0 = vmul.f32 1.442695, %v1327_v42  ;;  %v1316_v60 = vpack.c.bf16 %v1300_v26, %v1300_v26  ;;  %v1330_v58 = vunpack.c.l.bf16 %v1314_v6 }
 0x3f3   : >> { %3250 = vpow2.f32 %v1341_v3  ;;  %v1349_v52 = vmul.f32 1.442695, %v1328_v39  ;;  %v1303_v51 = vsub.f32 %v4452_v2, %v1290_v33  ;;  %v1317_v21 = vpack.c.bf16 %v1301_v19, %v1301_v19 }
 0x3f4   : >> { %3252 = vpow2.f32 %v1343_v23  ;;  %v1331_v5 = vunpack.c.l.bf16 %v1315_v44  ;;  %v1351_v20 = vmul.f32 1.442695, %v1329_v45  ;;  %v1304_v24 = vsub.f32 %v4454_v50, %v1290_v33 }
 0x3f5   : >> { %3254 = vpow2.f32 %v1345_v13  ;;  %v1318_v48 = vpack.c.bf16 %v1302_v7, %v1302_v7  ;;  %v1332_v27 = vunpack.c.l.bf16 %v1316_v60  ;;  %v1353_v8 = vmul.f32 1.442695, %v1330_v58 }
 0x3f6   : >> { %3256 = vpow2.f32 %v1347_v0  ;;  %v1305_v18 = vsub.f32 %v4456_v32, %v1290_v33  ;;  %v1319_v63 = vpack.c.bf16 %v1303_v51, %v1303_v51  ;;  %v1333_v17 = vunpack.c.l.bf16 %v1317_v21 }
 0x3f7   : >> { %3258 = vpow2.f32 %v1349_v52  ;;  %v1355_v2 = vmul.f32 1.442695, %v1331_v5  ;;  %v1306_v43 = vsub.f32 %v4459_v49, %v1290_v33  ;;  %v1320_v25 = vpack.c.bf16 %v1304_v24, %v1304_v24 }
 0x3f8   : >> { %v3249_v47 = vpop.eup %3248  ;;  %3260 = vpow2.f32 %v1351_v20  ;;  %v1334_v31 = vunpack.c.l.bf16 %v1318_v48  ;;  %v1357_v42 = vmul.f32 1.442695, %v1332_v27  ;;  %v1321_v23 = vpack.c.bf16 %v1305_v18, %v1305_v18 }
 0x3f9   : >> { %v3251_v30 = vpop.eup %3250  ;;  %v1371_v59 = vpack.c.bf16 %v3249_v47, %v3249_v47  ;;  %3262 = vpow2.f32 %v1353_v8  ;;  %v1335_v19 = vunpack.c.l.bf16 %v1319_v63  ;;  %v1359_v44 = vmul.f32 1.442695, %v1333_v17 }
 0x3fa   : >> { %v3253_v37 = vpop.eup %3252  ;;  %v1372_v50 = vpack.c.bf16 %v3251_v30, %v3251_v30  ;;  %3264 = vpow2.f32 %v1355_v2  ;;  %v1322_v7 = vpack.c.bf16 %v1306_v43, %v1306_v43  ;;  %v1336_v0 = vunpack.c.l.bf16 %v1320_v25 }
 0x3fb   : >> { %v3255_v35 = vpop.eup %3254  ;;  %v1373_v26 = vpack.c.bf16 %v3253_v37, %v3253_v37  ;;  %v4468_v6 = vunpack.c.l.bf16 %v1371_v59  ;;  %3266 = vpow2.f32 %v1357_v42  ;;  %v1361_v60 = vmul.f32 1.442695, %v1334_v31 }
 0x3fc   : >> { %v3257_v39 = vpop.eup %3256  ;;  %v1374_v32 = vpack.c.bf16 %v3255_v35, %v3255_v35  ;;  %v4470_v14 = vunpack.c.l.bf16 %v1372_v50  ;;  %v1337_v5 = vunpack.c.l.bf16 %v1321_v23  ;;  %3268 = vpow2.f32 %v1359_v44 }
 0x3fd   : >> { %v3259_v3 = vpop.eup %3258  ;;  %v1375_v45 = vpack.c.bf16 %v3257_v39, %v3257_v39  ;;  %v4472_v49 = vunpack.c.l.bf16 %v1373_v26  ;;  %v1363_v20 = vmul.f32 1.442695, %v1335_v19  ;;  %v1338_v47 = vunpack.c.l.bf16 %v1322_v7 }
 0x3fe   : >> { %v1403_v33 = vadd.f32 %v4470_v14, %v4468_v6  ;;  %v3261_v13 = vpop.eup %3260  ;;  %v1376_v58 = vpack.c.bf16 %v3259_v3, %v3259_v3  ;;  %v4476_v52 = vunpack.c.l.bf16 %v1374_v32  ;;  %3270 = vpow2.f32 %v1361_v60 }
 0x3ff   : >> { %v3263_v21 = vpop.eup %3262  ;;  %v1377_v24 = vpack.c.bf16 %v3261_v13, %v3261_v13  ;;  %v4479_v48 = vunpack.c.l.bf16 %v1375_v45  ;;  %v1365_v18 = vmul.f32 1.442695, %v1336_v0  ;;  %3272 = vpow2.f32 %v1363_v20 }
 0x400   : >> { %v1404_v51 = vadd.f32 %v1403_v33, %v4472_v49  ;;  %v3265_v8 = vpop.eup %3264  ;;  %v1378_v63 = vpack.c.bf16 %v3263_v21, %v3263_v21  ;;  %v1392_v30 = vunpack.c.l.bf16 %v1376_v58  ;;  %v1367_v59 = vmul.f32 1.442695, %v1337_v5 }
 0x401   : >> { %v3267_v2 = vpop.eup %3266  ;;  %v1379_v37 = vpack.c.bf16 %v3265_v8, %v3265_v8  ;;  %v4483_v43 = vunpack.c.l.bf16 %v1377_v24  ;;  %3274 = vpow2.f32 %v1365_v18  ;;  %v1369_v50 = vmul.f32 1.442695, %v1338_v47 }
 0x402   : >> { %v1405_v27 = vadd.f32 %v1404_v51, %v4476_v52  ;;  %v3269_v31 = vpop.eup %3268  ;;  %v1380_v35 = vpack.c.bf16 %v3267_v2, %v3267_v2  ;;  %v4485_v42 = vunpack.c.l.bf16 %v1378_v63  ;;  %3276 = vpow2.f32 %v1367_v59 }
 0x403   : >> { %v1381_v32 = vpack.c.bf16 %v3269_v31, %v3269_v31  ;;  %v1395_v3 = vunpack.c.l.bf16 %v1379_v37  ;;  %3278 = vpow2.f32 %v1369_v50 }
 0x404   : >> { %v1406_v17 = vadd.f32 %v1405_v27, %v4479_v48  ;;  %v3271_v39 = vpop.eup %3270  ;;  %v1396_v45 = vunpack.c.l.bf16 %v1380_v35 }
 0x405   : >> { %v3273_v19 = vpop.eup %3272  ;;  %v1382_v44 = vpack.c.bf16 %v3271_v39, %v3271_v39  ;;  %v1397_v0 = vunpack.c.l.bf16 %v1381_v32 }
 0x406   : >> { %v1407_v25 = vadd.f32 %v1406_v17, %v1392_v30  ;;  %v1383_v7 = vpack.c.bf16 %v3273_v19, %v3273_v19 }
 0x407   : >> { %v3275_v13 = vpop.eup %3274  ;;  %v1398_v21 = vunpack.c.l.bf16 %v1382_v44 }
 0x408   : >> { %v1408_v26 = vadd.f32 %v1407_v25, %v4483_v43  ;;  %v3277_v58 = vpop.eup %3276  ;;  %v1384_v51 = vpack.c.bf16 %v3275_v13, %v3275_v13  ;;  %v1399_v27 = vunpack.c.l.bf16 %v1383_v7 }
 0x409   : >> { %v3279_v20 = vpop.eup %3278  ;;  %v1385_v24 = vpack.c.bf16 %v3277_v58, %v3277_v58 }
 0x40a   : >> { %v1409_v23 = vadd.f32 %v1408_v26, %v4485_v42  ;;  %v1386_v47 = vpack.c.bf16 %v3279_v20, %v3279_v20  ;;  %v1400_v18 = vunpack.c.l.bf16 %v1384_v51 }
 0x40b   : >> { %v1401_v17 = vunpack.c.l.bf16 %v1385_v24 }
 0x40c   : >> { %v1410_v33 = vadd.f32 %v1409_v23, %v1395_v3  ;;  %v1402_v59 = vunpack.c.l.bf16 %v1386_v47 }
 0x40e   : >> { %v1411_v60 = vadd.f32 %v1410_v33, %v1396_v45 }
 0x410   : >> { %v1412_v5 = vadd.f32 %v1411_v60, %v1397_v0 }
 0x412   : >> { %v1413_v8 = vadd.f32 %v1412_v5, %v1398_v21 }
 0x414   : >> { %v1414_v63 = vadd.f32 %v1413_v8, %v1399_v27 }
 0x416   : >> { %v1415_v2 = vadd.f32 %v1414_v63, %v1400_v18 }
 0x418   : >> { %v1416_v37 = vadd.f32 %v1415_v2, %v1401_v17 }
 0x41a   : >> { %v1417_v25 = vadd.f32 %v1416_v37, %v1402_v59 }
 0x41c   : >> { %v1418_v31 = vrot.slane %v1417_v25, 4 }
 0x41e   : >> { %v1419_v50 = vadd.f32 %v1418_v31, %v1417_v25 }
 0x420   : >> { %v1420_v35 = vrot.slane %v1419_v50, 2 }
 0x422   : >> { %v1421_v26 = vadd.f32 %v1420_v35, %v1419_v50 }
 0x424   : >> { %v1422_v39 = vrot.slane %v1421_v26, 1 }
 0x426   : >> { %v1423_v32 = vadd.f32 %v1422_v39, %v1421_v26 }
 0x428   : >> { %3280 = vrcp.f32 %v1423_v32 }
 0x42e   : >> { %v3281_v23 = vpop.eup %3280 }
 0x42f   : >> { %v1425_v19 = vpack.c.bf16 %v3281_v23, %v3281_v23 }
 0x431   : >> { %v1426_v44 = vunpack.c.l.bf16 %v1425_v19 }
 0x433   : >> { %v1427_v33 = vmul.f32 %v1426_v44, %v4468_v6  ;;  %v1428_v13 = vmul.f32 %v1426_v44, %v4470_v14  ;;  %v1431_v7 = vmul.f32 %v1426_v44, %v4479_v48  ;;  %v1432_v60 = vmul.f32 %v1426_v44, %v1392_v30 }
 0x434   : >> { %v1429_v58 = vmul.f32 %v1426_v44, %v4472_v49  ;;  %v1430_v51 = vmul.f32 %v1426_v44, %v4476_v52  ;;  %v1437_v8 = vmul.f32 %v1426_v44, %v1397_v0  ;;  %v1438_v47 = vmul.f32 %v1426_v44, %v1398_v21 }
 0x435   : >> { %v1443_v5 = vpack.c.bf16 %v1428_v13, %v1427_v33  ;;  %v1445_v20 = vpack.c.bf16 %v1432_v60, %v1431_v7  ;;  %v1439_v14 = vmul.f32 %v1426_v44, %v1399_v27  ;;  %v1440_v48 = vmul.f32 %v1426_v44, %v1400_v18  ;;  %v1116_v7 = vpop.f32.mrf.mxu1 }
 0x436   : >> { %v1444_v24 = vpack.c.bf16 %v1430_v51, %v1429_v58  ;;  %v1448_v6 = vpack.c.bf16 %v1438_v47, %v1437_v8  ;;  %v1435_v49 = vmul.f32 %v1426_v44, %v1395_v3  ;;  %v1436_v25 = vmul.f32 %v1426_v44, %v1396_v45 }
 0x437   : >> { %1547 = vmatmul.bf16.vlgmr.msrb.gmra.mxu3 %v1443_v5  ;;  %v1455_v63 = vunpack.c.l.bf16 %v1445_v20  ;;  %v1451_v2 = vunpack.c.l.bf16 %v1443_v5  ;;  %v4494_v30 = vpack.c.bf16 %v1440_v48, %v1439_v14  ;;  %v1456_v52 = vunpack.c.h.bf16 %v1445_v20 }
 0x438   : >> { %v1453_v37 = vunpack.c.l.bf16 %v1444_v24  ;;  %v1452_v31 = vunpack.c.h.bf16 %v1443_v5  ;;  %v1433_v50 = vmul.f32 %v1426_v44, %v4483_v43  ;;  %v1434_v0 = vmul.f32 %v1426_v44, %v4485_v42 }
 0x439   : >> { %1475 = vadd.xlane.f32.xlu2 %v1455_v63  ;;  %1467 = vadd.xlane.f32.xlu0 %v1451_v2  ;;  %v1454_v21 = vunpack.c.h.bf16 %v1444_v24  ;;  %v1447_v35 = vpack.c.bf16 %v1436_v25, %v1435_v49  ;;  %v1462_v3 = vunpack.c.h.bf16 %v1448_v6  ;;  %v1441_v32 = vmul.f32 %v1426_v44, %v1401_v17  ;;  %v2887_v49 = vld [vmem:[%s4520_s12 + $0x30] sm:$0xff] }
 0x43a   : >> { %1471 = vadd.xlane.f32.xlu1 %v1453_v37  ;;  %v1446_v26 = vpack.c.bf16 %v1434_v0, %v1433_v50  ;;  %v1442_v23 = vmul.f32 %v1426_v44, %v1402_v59  ;;  %v1461_v43 = vunpack.c.l.bf16 %v1448_v6  ;;  %v1463_v33 = vunpack.c.l.bf16 %v4494_v30  ;;  %v2888_v37 = vld [vmem:[%s4520_s12 + $0x38] sm:$0xff] }
 0x43b   : >> { %v1459_v39 = vunpack.c.l.bf16 %v1447_v35  ;;  %v1460_v45 = vunpack.c.h.bf16 %v1447_v35  ;;  %v1464_v13 = vunpack.c.h.bf16 %v4494_v30  ;;  %v4501_v17 = vadd.f32 %v4372_v57, %v1116_v7  ;;  %2170 = vmatpush.bf16.msrb.mxu0 %v2888_v37  ;;  %2931 = vmatpush.bf16.msrb.mxu3 %v2888_v37 }
 0x43c   : >> { %v1457_v27 = vunpack.c.l.bf16 %v1446_v26  ;;  %v1458_v18 = vunpack.c.h.bf16 %v1446_v26  ;;  %v1450_v42 = vpack.c.bf16 %v1442_v23, %v1441_v32 }
 0x43d   : >> { %v1118_v59 = vpop.f32.mrf.mxu1 }
 0x43e   : >> { %v1465_v19 = vunpack.c.l.bf16 %v1450_v42  ;;  %v1466_v60 = vunpack.c.h.bf16 %v1450_v42  ;;  %v4504_v44 = vadd.f32 %v4372_v57, %v1118_v59 }
 0x43f   : >> { %2171 = vmatpush.bf16.msrb.mxu0 %v2887_v49  ;;  %2932 = vmatpush.bf16.msrb.mxu3 %v2887_v49 }
 0x440   : >> { %v1978_v58 = vpack.c.bf16 %v4504_v44, %v4501_v17 }
 0x441   : >> { %1477 = vadd.xlane.f32.xlu2 %v1456_v52  ;;  %1469 = vadd.xlane.f32.xlu0 %v1452_v31  ;;  %v2886_v52 = vld [vmem:[%s4520_s12 + $0x28] sm:$0xff]  ;;  %v2885_v31 = vld [vmem:[%s4520_s12 + $0x20] sm:$0xff] }
 0x442   : >> { %1473 = vadd.xlane.f32.xlu1 %v1454_v21 }
 0x443   : >> { %2172 = vmatpush.bf16.msrb.mxu0 %v2886_v52  ;;  %2933 = vmatpush.bf16.msrb.mxu3 %v2886_v52 }
 0x445   : >> { %v1121_v51 = vpop.f32.mrf.mxu1 }
 0x446   : >> { %v4509_v5 = vadd.f32 %v4372_v57, %v1121_v51 }
 0x447   : >> { %1552 = vmatmul.bf16.gmra.mxu3 %v1444_v24  ;;  %2173 = vmatpush.bf16.msrb.mxu0 %v2885_v31 }
 0x448   : >> { %2934 = vmatpush.bf16.msrb.mxu3 %v2885_v31 }
 0x449   : >> { %1483 = vadd.xlane.f32.xlu2 %v1459_v39  ;;  %1479 = vadd.xlane.f32.xlu0 %v1457_v27  ;;  %v2882_v39 = vld [vmem:[%s4520_s12 + $0x8] sm:$0xff]  ;;  %v2881_v27 = vld [vmem:[%s4520_s12] sm:$0xff] }
 0x44a   : >> { %1481 = vadd.xlane.f32.xlu1 %v1458_v18 }
 0x451   : >> { %1489 = vadd.xlane.f32.xlu2 %v1462_v3  ;;  %1485 = vadd.xlane.f32.xlu0 %v1460_v45 }
 0x452   : >> { %1487 = vadd.xlane.f32.xlu1 %v1461_v43 }
 0x457   : >> { %1557 = vmatmul.bf16.gmra.mxu3 %v1445_v20  ;;  %v1123_v20 = vpop.f32.mrf.mxu1 }
 0x458   : >> { %v4512_v24 = vadd.f32 %v4372_v57, %v1123_v20 }
 0x459   : >> { %1495 = vadd.xlane.f32.xlu2 %v1465_v19  ;;  %1491 = vadd.xlane.f32.xlu0 %v1463_v33 }
 0x45a   : >> { %1493 = vadd.xlane.f32.xlu1 %v1464_v13  ;;  %v1979_v8 = vpack.c.bf16 %v4512_v24, %v4509_v5 }
 0x45f   : >> { %v1126_v47 = vpop.f32.mrf.mxu1 }
 0x460   : >> { %v4523_v63 = vadd.f32 %v4372_v57, %v1126_v47 }
 0x461   : >> { %1497 = vadd.xlane.f32.xlu0 %v1466_v60 }
 0x467   : >> { %1562 = vmatmul.bf16.gmra.mxu3 %v1446_v26  ;;  %v1128_v2 = vpop.f32.mrf.mxu1 }
 0x468   : >> { %v4527_v14 = vadd.f32 %v4372_v57, %v1128_v2 }
 0x46a   : >> { %v1980_v48 = vpack.c.bf16 %v4527_v14, %v4523_v63 }
 0x46f   : >> { %v1131_v25 = vpop.f32.mrf.mxu1 }
 0x477   : >> { %1567 = vmatmul.bf16.gmra.mxu3 %v1447_v35  ;;  %v1133_v50 = vpop.f32.mrf.mxu1  ;;  %v2884_v35 = vld [vmem:[%s4520_s12 + $0x18] sm:$0xff] }
 0x478   : >> { %v4539_v0 = vadd.f32 %v4372_v57, %v1133_v50  ;;  %2174 = vmatpush.bf16.msrb.mxu0 %v2884_v35  ;;  %2935 = vmatpush.bf16.msrb.mxu3 %v2884_v35 }
 0x47f   : >> { %v4545_v26 = vpop.f32.mrf.mxu1 }
 0x487   : >> { %1572 = vmatmul.bf16.gmra.mxu3 %v1448_v6  ;;  %v4535_v6 = vadd.f32 %v4372_v57, %v1131_v25  ;;  %v4549_v18 = vpop.f32.mrf.mxu1 }
 0x489   : >> { %v1981_v21 = vpack.c.bf16 %v4539_v0, %v4535_v6 }
 0x48f   : >> { %v1141_v45 = vpop.f32.mrf.mxu1 }
 0x497   : >> { %1577 = vmatmul.bf16.gmra.mxu3 %v4494_v30  ;;  %v2883_v30 = vld [vmem:[%s4520_s12 + $0x10] sm:$0xff]  ;;  %v1143_v19 = vpop.f32.mrf.mxu1  ;;  %s2436_s12 = scalar_lea.hbm (%p4876_p11), %s5025_s8, %s2890_s26 }
 0x498   : >> { %2175 = vmatpush.bf16.msrb.mxu0 %v2883_v30  ;;  %2936 = vmatpush.bf16.msrb.mxu3 %v2883_v30  ;;  %s2439_s19 = sshll.u32 (%p4876_p11), %s2436_s12, 4  ;;  %s2440_s19 = int_to_ptr.hbm [resolvable:$true] %s2439_s19 }
 0x49c   : >> { %2176 = vmatpush.bf16.msrb.mxu0 %v2882_v39  ;;  %2937 = vmatpush.bf16.msrb.mxu3 %v2882_v39 }
 0x49f   : >> { %v1146_v60 = vpop.f32.mrf.mxu1 }
 0x4a0   : >> { %2177 = vmatpush.bf16.msrb.mxu0 %v2881_v27  ;;  %2938 = vmatpush.bf16.msrb.mxu3 %v2881_v27 }
 0x4a7   : >> { %1582 = vmatmul.bf16.gmra.mxu3 %v1450_v42  ;;  %v1148_v52 = vpop.f32.mrf.mxu1 }
 0x4ac   : >> { %v1468_v3 = vpop.xlane.xlu0 %1467  ;;  %v1476_v50 = vpop.xlane.xlu2 %1475 }
 0x4ad   : >> { %v1499_v23 = vadd.f32 1e-09, %v1468_v3  ;;  %v1472_v13 = vpop.xlane.xlu1 %1471 }
 0x4ae   : >> { %v1501_v49 = vadd.f32 1e-09, %v1472_v13 }
 0x4af   : >> { %3282 = vrcp.f32 %v1499_v23  ;;  %v1151_v39 = vpop.f32.mrf.mxu1 }
 0x4b4   : >> { %v1470_v32 = vpop.xlane.xlu0 %1469  ;;  %v1478_v23 = vpop.xlane.xlu2 %1477 }
 0x4b5   : >> { %v1500_v43 = vadd.f32 1e-09, %v1470_v32  ;;  %v3283_v42 = vpop.eup %3282  ;;  %v1474_v47 = vpop.xlane.xlu1 %1473 }
 0x4b6   : >> { %v1502_v25 = vadd.f32 1e-09, %v1474_v47  ;;  %v1149_v47 = vadd.f32 %v4372_v57, %v1148_v52 }
 0x4b7   : >> { %2780 = vmatmul.msk.bf16.vlgmr.msra.gmra.mxu3 %vm1196_vm0, %v4426_v54  ;;  %3284 = vrcp.f32 %v1500_v43 }
 0x4b8   : >> { %3286 = vrcp.f32 %v1501_v49  ;;  %v1142_v49 = vadd.f32 %v4372_v57, %v1141_v45 }
 0x4b9   : >> { %3288 = vrcp.f32 %v1502_v25 }
 0x4ba   : >> { %v1548_v33 = vpop.f32.mrf.mxu3 }
 0x4bb   : >> { %v1588_v7 = vmul.f32 %v3283_v42, %v1548_v33  ;;  %v1504_v42 = vadd.f32 1e-09, %v1478_v23 }
 0x4bd   : >> { %v3285_v59 = vpop.eup %3284  ;;  %v2051_v2 = vsub.f32 %v3702_v53, %v1588_v7  ;;  %v1152_v7 = vadd.f32 %v4372_v57, %v1151_v39  ;;  %v1480_v39 = vpop.xlane.xlu0 %1479 }
 0x4be   : >> { %v3287_v35 = vpop.eup %3286 }
 0x4bf   : >> { %v3289_v27 = vpop.eup %3288 }
 0x4c2   : >> { %v1550_v51 = vpop.f32.mrf.mxu3 }
 0x4c3   : >> { %v1589_v20 = vmul.f32 %v3285_v59, %v1550_v51  ;;  %v1153_v59 = vpop.f32.mrf.mxu1 }
 0x4c5   : >> { %v2052_v37 = vsub.f32 %v3698_v1, %v1589_v20  ;;  %v1147_v20 = vadd.f32 %v4372_v57, %v1146_v60  ;;  %v1139_v60 = vadd.f32 %v4372_v57, %v4549_v18 }
 0x4c7   : >> { %2781 = vmatmul.msk.bf16.gmra.mxu3 %vm1196_vm0, %v4422_v62  ;;  %v2083_v54 = vpack.c.bf16 %v2052_v37, %v2051_v2  ;;  %v1503_v62 = vadd.f32 1e-09, %v1476_v50  ;;  %v1154_v2 = vadd.f32 %v4372_v57, %v1153_v59 }
 0x4c9   : >> { %2178 = vmatmul.bf16.vlgmr.msrb.gmra.mxu0 %v2083_v54  ;;  %3290 = vrcp.f32 %v1503_v62  ;;  %v1985_v37 = vpack.c.bf16 %v1154_v2, %v1152_v7  ;;  %v1984_v54 = vpack.c.bf16 %v1149_v47, %v1147_v20  ;;  %v1486_v7 = vpop.xlane.xlu0 %1485 }
 0x4ca   : >> { %v1553_v31 = vpop.f32.mrf.mxu3  ;;  %3292 = vrcp.f32 %v1504_v42  ;;  %v1508_v0 = vadd.f32 1e-09, %v1486_v7 }
 0x4cb   : >> { %v1590_v30 = vmul.f32 %v3287_v35, %v1553_v31  ;;  %1986 = vmatpush.bf16.msra.mxu2 %v1985_v37  ;;  %v1137_v35 = vadd.f32 %v4372_v57, %v4545_v26 }
 0x4cd   : >> { %v2053_v43 = vsub.f32 %v3694_v61, %v1590_v30  ;;  %v1982_v23 = vpack.c.bf16 %v1139_v60, %v1137_v35 }
 0x4cf   : >> { %v3291_v25 = vpop.eup %3290  ;;  %1987 = vmatpush.bf16.msra.mxu2 %v1984_v54 }
 0x4d0   : >> { %v3293_v50 = vpop.eup %3292 }
 0x4d2   : >> { %v1555_v3 = vpop.f32.mrf.mxu3 }
 0x4d3   : >> { %v1591_v32 = vmul.f32 %v3289_v27, %v1555_v3  ;;  %v1482_v3 = vpop.xlane.xlu1 %1481 }
 0x4d5   : >> { %v2054_v33 = vsub.f32 %v3690_v4, %v1591_v32  ;;  %v1505_v32 = vadd.f32 1e-09, %v1480_v39 }
 0x4d7   : >> { %2782 = vmatmul.msk.bf16.gmra.mxu3 %vm1196_vm0, %v4444_v15  ;;  %v2084_v13 = vpack.c.bf16 %v2054_v33, %v2053_v43  ;;  %v1144_v15 = vadd.f32 %v4372_v57, %v1143_v19  ;;  %v1506_v43 = vadd.f32 1e-09, %v1482_v3  ;;  %3294 = vrcp.f32 %v1505_v32 }
 0x4d9   : >> { %2183 = vmatmul.bf16.gmra.mxu0 %v2084_v13  ;;  %v1983_v52 = vpack.c.bf16 %v1144_v15, %v1142_v49  ;;  %3296 = vrcp.f32 %v1506_v43 }
 0x4da   : >> { %v1558_v51 = vpop.f32.mrf.mxu3 }
 0x4db   : >> { %v1592_v31 = vmul.f32 %v3291_v25, %v1558_v51  ;;  %1988 = vmatpush.bf16.msra.mxu2 %v1983_v52  ;;  %v1488_v2 = vpop.xlane.xlu1 %1487 }
 0x4dc   : >> { %v1509_v37 = vadd.f32 1e-09, %v1488_v2 }
 0x4dd   : >> { %v2055_v45 = vsub.f32 %v3686_v10, %v1592_v31  ;;  %v3295_v18 = vpop.eup %3294  ;;  %v1492_v31 = vpop.xlane.xlu0 %1491 }
 0x4df   : >> { %1989 = vmatpush.bf16.msra.mxu2 %v1982_v23  ;;  %v3297_v62 = vpop.eup %3296 }
 0x4e2   : >> { %v1560_v30 = vpop.f32.mrf.mxu3 }
 0x4e3   : >> { %v1593_v27 = vmul.f32 %v3293_v50, %v1560_v30  ;;  %1990 = vmatpush.bf16.msra.mxu2 %v1981_v21  ;;  %v1494_v35 = vpop.xlane.xlu1 %1493  ;;  %v1511_v30 = vadd.f32 1e-09, %v1492_v31 }
 0x4e4   : >> { %v1512_v39 = vadd.f32 1e-09, %v1494_v35 }
 0x4e5   : >> { %v2056_v19 = vsub.f32 %v3682_v16, %v1593_v27  ;;  %v1498_v43 = vpop.xlane.xlu0 %1497 }
 0x4e7   : >> { %2783 = vmatmul.msk.bf16.gmra.mxu3 %vm1196_vm0, %v4440_v9  ;;  %v2085_v26 = vpack.c.bf16 %v2056_v19, %v2055_v45  ;;  %1991 = vmatpush.bf16.msra.mxu2 %v1980_v48  ;;  %v1484_v9 = vpop.xlane.xlu2 %1483 }
 0x4e8   : >> { %v1507_v20 = vadd.f32 1e-09, %v1484_v9 }
 0x4e9   : >> { %2188 = vmatmul.bf16.gmra.mxu0 %v2085_v26 }
 0x4ea   : >> { %v1563_v57 = vpop.f32.mrf.mxu3  ;;  %3298 = vrcp.f32 %v1507_v20 }
 0x4eb   : >> { %v1594_v33 = vmul.f32 %v3295_v18, %v1563_v57  ;;  %1992 = vmatpush.bf16.msra.mxu2 %v1979_v8  ;;  %3300 = vrcp.f32 %v1508_v0 }
 0x4ec   : >> { %3302 = vrcp.f32 %v1509_v37 }
 0x4ed   : >> { %v2057_v59 = vsub.f32 %v3678_v22, %v1594_v33 }
 0x4ef   : >> { %1993 = vmatpush.bf16.msra.mxu2 %v1978_v58  ;;  %v1490_v24 = vpop.xlane.xlu2 %1489 }
 0x4f0   : >> { %v3299_v14 = vpop.eup %3298  ;;  %v1510_v15 = vadd.f32 1e-09, %v1490_v24 }
 0x4f1   : >> { %v3301_v21 = vpop.eup %3300 }
 0x4f2   : >> { %v1565_v13 = vpop.f32.mrf.mxu3  ;;  %3304 = vrcp.f32 %v1510_v15  ;;  %v3303_v44 = vpop.eup %3302 }
 0x4f3   : >> { %v1595_v42 = vmul.f32 %v3297_v62, %v1565_v13  ;;  %3306 = vrcp.f32 %v1511_v30  ;;  %v1514_v62 = vadd.f32 1e-09, %v1498_v43 }
 0x4f4   : >> { %3308 = vrcp.f32 %v1512_v39 }
 0x4f5   : >> { %v2058_v51 = vsub.f32 %v3674_v28, %v1595_v42 }
 0x4f7   : >> { %2784 = vmatmul.msk.bf16.gmra.mxu3 %vm1196_vm0, %v4432_v55  ;;  %v2086_v6 = vpack.c.bf16 %v2058_v51, %v2057_v59  ;;  %v1496_v23 = vpop.xlane.xlu2 %1495 }
 0x4f8   : >> { %v3305_v54 = vpop.eup %3304  ;;  %v1513_v33 = vadd.f32 1e-09, %v1496_v23 }
 0x4f9   : >> { %2193 = vmatmul.bf16.gmra.mxu0 %v2086_v6  ;;  %v3307_v3 = vpop.eup %3306  ;;  %v5082_v6 = vld [vmem:[#allocation21_spill] sm:$0xff] }
 0x4fa   : >> { %v1568_v63 = vpop.f32.mrf.mxu3  ;;  %v3309_v19 = vpop.eup %3308  ;;  %3310 = vrcp.f32 %v1513_v33 }
 0x4fb   : >> { %v1596_v48 = vmul.f32 %v3299_v14, %v1568_v63  ;;  %3312 = vrcp.f32 %v1514_v62 }
 0x4fd   : >> { %v2059_v8 = vsub.f32 %v3670_v34, %v1596_v48 }
 0x500   : >> { %v3311_v9 = vpop.eup %3310 }
 0x501   : >> { %v3313_v7 = vpop.eup %3312 }
 0x502   : >> { %v1570_v47 = vpop.f32.mrf.mxu3 }
 0x503   : >> { %v1597_v5 = vmul.f32 %v3301_v21, %v1570_v47 }
 0x505   : >> { %v2060_v55 = vsub.f32 %v3666_v40, %v1597_v5 }
 0x507   : >> { %2785 = vmatmul.msk.bf16.gmra.mxu3 %vm1196_vm0, %v4420_v12  ;;  %v2087_v49 = vpack.c.bf16 %v2060_v55, %v2059_v8 }
 0x509   : >> { %2198 = vmatmul.bf16.gmra.mxu0 %v2087_v49 }
 0x50a   : >> { %v1573_v17 = vpop.f32.mrf.mxu3 }
 0x50b   : >> { %v1598_v58 = vmul.f32 %v3303_v44, %v1573_v17 }
 0x50d   : >> { %v2061_v60 = vsub.f32 %v3662_v46, %v1598_v58 }
 0x512   : >> { %v1575_v25 = vpop.f32.mrf.mxu3 }
 0x513   : >> { %v1599_v50 = vmul.f32 %v3305_v54, %v1575_v25 }
 0x515   : >> { %v2062_v52 = vsub.f32 %v3658_v56, %v1599_v50 }
 0x517   : >> { %2786 = vmatmul.msk.bf16.gmra.mxu3 %vm1196_vm0, %v4408_v38  ;;  %v2088_v12 = vpack.c.bf16 %v2062_v52, %v2061_v60 }
 0x519   : >> { %2203 = vmatmul.bf16.gmra.mxu0 %v2088_v12 }
 0x51a   : >> { %v1578_v27 = vpop.f32.mrf.mxu3 }
 0x51b   : >> { %v1600_v45 = vmul.f32 %v3307_v3, %v1578_v27 }
 0x51d   : >> { %v2063_v57 = vsub.f32 %v3654_v11, %v1600_v45 }
 0x522   : >> { %v1580_v32 = vpop.f32.mrf.mxu3 }
 0x523   : >> { %v1601_v26 = vmul.f32 %v3309_v19, %v1580_v32 }
 0x525   : >> { %v2064_v18 = vsub.f32 %v3650_v29, %v1601_v26 }
 0x527   : >> { %2787 = vmatmul.msk.bf16.gmra.mxu3 %vm1196_vm0, %v4402_v36  ;;  %v2089_v38 = vpack.c.bf16 %v2064_v18, %v2063_v57 }
 0x529   : >> { %2208 = vmatmul.bf16.gmra.mxu0 %v2089_v38 }
 0x52a   : >> { %v1583_v13 = vpop.f32.mrf.mxu3 }
 0x52b   : >> { %v1602_v42 = vmul.f32 %v3311_v9, %v1583_v13 }
 0x52d   : >> { %v2065_v20 = vsub.f32 %v3646_v41, %v1602_v42 }
 0x532   : >> { %v1585_v59 = vpop.f32.mrf.mxu3 }
 0x533   : >> { %v1603_v51 = vmul.f32 %v3313_v7, %v1585_v59 }
 0x535   : >> { %v2066_v0 = vsub.f32 %v5082_v6, %v1603_v51 }
 0x537   : >> { %v2090_v63 = vpack.c.bf16 %v2066_v0, %v2065_v20 }
 0x539   : >> { %2213 = vmatmul.bf16.gmra.mxu0 %v2090_v63 }
 0x53a   : >> { %v1677_v14 = vpop.f32.mrf.mxu3 }
 0x542   : >> { %v1679_v48 = vpop.f32.mrf.mxu3 }
 0x54a   : >> { %v1682_v36 = vpop.f32.mrf.mxu3 }
 0x552   : >> { %v1684_v21 = vpop.f32.mrf.mxu3 }
 0x55a   : >> { %v1687_v47 = vpop.f32.mrf.mxu3 }
 0x55b   : >> { %v1717_v54 = vmax.f32 %v1677_v14, %v1687_v47 }
 0x562   : >> { %v1689_v2 = vpop.f32.mrf.mxu3 }
 0x563   : >> { %v1718_v58 = vmax.f32 %v1679_v48, %v1689_v2 }
 0x56a   : >> { %v1692_v5 = vpop.f32.mrf.mxu3 }
 0x56b   : >> { %v1719_v25 = vmax.f32 %v1682_v36, %v1692_v5 }
 0x572   : >> { %v1694_v24 = vpop.f32.mrf.mxu3 }
 0x573   : >> { %v1720_v31 = vmax.f32 %v1684_v21, %v1694_v24 }
 0x57a   : >> { %v1697_v8 = vpop.f32.mrf.mxu3 }
 0x57b   : >> { %v1721_v35 = vmax.f32 %v1717_v54, %v1697_v8 }
 0x582   : >> { %v1699_v55 = vpop.f32.mrf.mxu3 }
 0x583   : >> { %v1722_v50 = vmax.f32 %v1718_v58, %v1699_v55 }
 0x58a   : >> { %v1702_v37 = vpop.f32.mrf.mxu3 }
 0x58b   : >> { %v1723_v60 = vmax.f32 %v1719_v25, %v1702_v37 }
 0x592   : >> { %v1704_v49 = vpop.f32.mrf.mxu3 }
 0x593   : >> { %v1724_v52 = vmax.f32 %v1720_v31, %v1704_v49 }
 0x59a   : >> { %v4605_v15 = vpop.f32.mrf.mxu3 }
 0x59b   : >> { %v1725_v39 = vmax.f32 %v1721_v35, %v4605_v15 }
 0x5a2   : >> { %v4607_v17 = vpop.f32.mrf.mxu3 }
 0x5a3   : >> { %v1726_v30 = vmax.f32 %v1722_v50, %v4607_v17 }
 0x5a5   : >> { %v1729_v45 = vmax.f32 %v1725_v39, %v1726_v30 }
 0x5aa   : >> { %v4609_v44 = vpop.f32.mrf.mxu3 }
 0x5ab   : >> { %v1727_v27 = vmax.f32 %v1723_v60, %v4609_v44 }
 0x5b2   : >> { %v4612_v12 = vpop.f32.mrf.mxu3 }
 0x5b3   : >> { %v1728_v3 = vmax.f32 %v1724_v52, %v4612_v12 }
 0x5b5   : >> { %v1730_v19 = vmax.f32 %v1727_v27, %v1728_v3 }
 0x5b7   : >> { %v1731_v32 = vmax.f32 %v1729_v45, %v1730_v19 }
 0x5b9   : >> { %v1732_v23 = vrot.slane %v1731_v32, 4 }
 0x5bb   : >> { %v1733_v26 = vmax.f32 %v1731_v32, %v1732_v23 }
 0x5bd   : >> { %v1734_v43 = vrot.slane %v1733_v26, 2 }
 0x5bf   : >> { %v1735_v57 = vmax.f32 %v1733_v26, %v1734_v43 }
 0x5c1   : >> { %v1736_v18 = vrot.slane %v1735_v57, 1 }
 0x5c3   : >> { %v1737_v33 = vmax.f32 %v1735_v57, %v1736_v18 }
 0x5c5   : >> { %v1738_v38 = vsub.f32 %v1677_v14, %v1737_v33  ;;  %v1739_v62 = vsub.f32 %v1679_v48, %v1737_v33  ;;  %v1740_v13 = vsub.f32 %v1682_v36, %v1737_v33  ;;  %v1741_v9 = vsub.f32 %v1684_v21, %v1737_v33 }
 0x5c6   : >> { %v1742_v42 = vsub.f32 %v1687_v47, %v1737_v33  ;;  %v1743_v7 = vsub.f32 %v1689_v2, %v1737_v33  ;;  %v1744_v0 = vsub.f32 %v1692_v5, %v1737_v33  ;;  %v1745_v54 = vsub.f32 %v1694_v24, %v1737_v33 }
 0x5c7   : >> { %v1754_v59 = vpack.c.bf16 %v1738_v38, %v1738_v38  ;;  %v1755_v51 = vpack.c.bf16 %v1739_v62, %v1739_v62  ;;  %v1756_v20 = vpack.c.bf16 %v1740_v13, %v1740_v13  ;;  %v1757_v63 = vpack.c.bf16 %v1741_v9, %v1741_v9 }
 0x5c8   : >> { %v1758_v58 = vpack.c.bf16 %v1742_v42, %v1742_v42  ;;  %v1759_v25 = vpack.c.bf16 %v1743_v7, %v1743_v7  ;;  %v1746_v60 = vsub.f32 %v1697_v8, %v1737_v33  ;;  %v1760_v52 = vpack.c.bf16 %v1744_v0, %v1744_v0 }
 0x5c9   : >> { %v1770_v31 = vunpack.c.l.bf16 %v1754_v59  ;;  %v1771_v50 = vunpack.c.l.bf16 %v1755_v51  ;;  %v1772_v35 = vunpack.c.l.bf16 %v1756_v20  ;;  %v1773_v30 = vunpack.c.l.bf16 %v1757_v63 }
 0x5ca   : >> { %v1774_v14 = vunpack.c.l.bf16 %v1758_v58  ;;  %v1747_v48 = vsub.f32 %v1699_v55, %v1737_v33  ;;  %v1761_v36 = vpack.c.bf16 %v1745_v54, %v1745_v54  ;;  %v1775_v21 = vunpack.c.l.bf16 %v1759_v25 }
 0x5cb   : >> { %v1786_v47 = vmul.f32 1.442695, %v1770_v31  ;;  %v1788_v2 = vmul.f32 1.442695, %v1771_v50  ;;  %v1790_v39 = vmul.f32 1.442695, %v1772_v35  ;;  %v1748_v27 = vsub.f32 %v1702_v37, %v1737_v33 }
 0x5cc   : >> { %v1762_v3 = vpack.c.bf16 %v1746_v60, %v1746_v60  ;;  %v1776_v5 = vunpack.c.l.bf16 %v1760_v52  ;;  %v1792_v45 = vmul.f32 1.442695, %v1773_v30  ;;  %v1749_v19 = vsub.f32 %v1704_v49, %v1737_v33 }
 0x5cd   : >> { %3314 = vpow2.f32 %v1786_v47  ;;  %v1794_v24 = vmul.f32 1.442695, %v1774_v14  ;;  %v1763_v32 = vpack.c.bf16 %v1747_v48, %v1747_v48  ;;  %v1777_v23 = vunpack.c.l.bf16 %v1761_v36 }
 0x5ce   : >> { %3316 = vpow2.f32 %v1788_v2  ;;  %v1796_v8 = vmul.f32 1.442695, %v1775_v21  ;;  %v1750_v26 = vsub.f32 %v4605_v15, %v1737_v33  ;;  %v1764_v55 = vpack.c.bf16 %v1748_v27, %v1748_v27 }
 0x5cf   : >> { %3318 = vpow2.f32 %v1790_v39  ;;  %v1778_v43 = vunpack.c.l.bf16 %v1762_v3  ;;  %v1798_v57 = vmul.f32 1.442695, %v1776_v5  ;;  %v1751_v18 = vsub.f32 %v4607_v17, %v1737_v33 }
 0x5d0   : >> { %3320 = vpow2.f32 %v1792_v45  ;;  %v1765_v37 = vpack.c.bf16 %v1749_v19, %v1749_v19  ;;  %v1779_v38 = vunpack.c.l.bf16 %v1763_v32  ;;  %v1800_v49 = vmul.f32 1.442695, %v1777_v23 }
 0x5d1   : >> { %3322 = vpow2.f32 %v1794_v24  ;;  %v1752_v13 = vsub.f32 %v4609_v44, %v1737_v33  ;;  %v1766_v9 = vpack.c.bf16 %v1750_v26, %v1750_v26  ;;  %v1780_v7 = vunpack.c.l.bf16 %v1764_v55 }
 0x5d2   : >> { %3324 = vpow2.f32 %v1796_v8  ;;  %v1802_v15 = vmul.f32 1.442695, %v1778_v43  ;;  %v1753_v20 = vsub.f32 %v4612_v12, %v1737_v33  ;;  %v1767_v0 = vpack.c.bf16 %v1751_v18, %v1751_v18 }
 0x5d3   : >> { %v3315_v62 = vpop.eup %3314  ;;  %3326 = vpow2.f32 %v1798_v57  ;;  %v1781_v63 = vunpack.c.l.bf16 %v1765_v37  ;;  %v1804_v54 = vmul.f32 1.442695, %v1779_v38  ;;  %v1768_v52 = vpack.c.bf16 %v1752_v13, %v1752_v13 }
 0x5d4   : >> { %v3317_v42 = vpop.eup %3316  ;;  %v1818_v59 = vpack.c.bf16 %v3315_v62, %v3315_v62  ;;  %3328 = vpow2.f32 %v1800_v49  ;;  %v1782_v30 = vunpack.c.l.bf16 %v1766_v9  ;;  %v1806_v14 = vmul.f32 1.442695, %v1780_v7 }
 0x5d5   : >> { %v3319_v51 = vpop.eup %3318  ;;  %v1819_v17 = vpack.c.bf16 %v3317_v42, %v3317_v42  ;;  %3330 = vpow2.f32 %v1802_v15  ;;  %v1769_v21 = vpack.c.bf16 %v1753_v20, %v1753_v20  ;;  %v1783_v47 = vunpack.c.l.bf16 %v1767_v0 }
 0x5d6   : >> { %v3321_v58 = vpop.eup %3320  ;;  %v1820_v25 = vpack.c.bf16 %v3319_v51, %v3319_v51  ;;  %v4621_v31 = vunpack.c.l.bf16 %v1818_v59  ;;  %3332 = vpow2.f32 %v1804_v54  ;;  %v1808_v2 = vmul.f32 1.442695, %v1781_v63 }
 0x5d7   : >> { %v3323_v50 = vpop.eup %3322  ;;  %v1821_v44 = vpack.c.bf16 %v3321_v58, %v3321_v58  ;;  %v4623_v35 = vunpack.c.l.bf16 %v1819_v17  ;;  %v1784_v45 = vunpack.c.l.bf16 %v1768_v52  ;;  %3334 = vpow2.f32 %v1806_v14 }
 0x5d8   : >> { %v3325_v60 = vpop.eup %3324  ;;  %v1822_v48 = vpack.c.bf16 %v3323_v50, %v3323_v50  ;;  %v4625_v12 = vunpack.c.l.bf16 %v1820_v25  ;;  %v1810_v19 = vmul.f32 1.442695, %v1782_v30  ;;  %v1785_v26 = vunpack.c.l.bf16 %v1769_v21 }
 0x5d9   : >> { %v1850_v33 = vadd.f32 %v4623_v35, %v4621_v31  ;;  %v3327_v36 = vpop.eup %3326  ;;  %v1823_v39 = vpack.c.bf16 %v3325_v60, %v3325_v60  ;;  %v4629_v27 = vunpack.c.l.bf16 %v1821_v44  ;;  %3336 = vpow2.f32 %v1808_v2 }
 0x5da   : >> { %v3329_v5 = vpop.eup %3328  ;;  %v1824_v24 = vpack.c.bf16 %v3327_v36, %v3327_v36  ;;  %v4632_v32 = vunpack.c.l.bf16 %v1822_v48  ;;  %v1812_v55 = vmul.f32 1.442695, %v1783_v47  ;;  %3338 = vpow2.f32 %v1810_v19 }
 0x5db   : >> { %v1851_v3 = vadd.f32 %v1850_v33, %v4625_v12  ;;  %v3331_v8 = vpop.eup %3330  ;;  %v1825_v43 = vpack.c.bf16 %v3329_v5, %v3329_v5  ;;  %v4635_v57 = vunpack.c.l.bf16 %v1823_v39  ;;  %v1814_v38 = vmul.f32 1.442695, %v1784_v45 }
 0x5dc   : >> { %v3333_v37 = vpop.eup %3332  ;;  %v1826_v49 = vpack.c.bf16 %v3331_v8, %v3331_v8  ;;  %v4638_v62 = vunpack.c.l.bf16 %v1824_v24  ;;  %3340 = vpow2.f32 %v1812_v55  ;;  %v1816_v42 = vmul.f32 1.442695, %v1785_v26 }
 0x5dd   : >> { %v1852_v23 = vadd.f32 %v1851_v3, %v4629_v27  ;;  %v3335_v9 = vpop.eup %3334  ;;  %v1827_v7 = vpack.c.bf16 %v3333_v37, %v3333_v37  ;;  %v4641_v15 = vunpack.c.l.bf16 %v1825_v43  ;;  %3342 = vpow2.f32 %v1814_v38 }
 0x5de   : >> { %v1828_v20 = vpack.c.bf16 %v3335_v9, %v3335_v9  ;;  %v1842_v0 = vunpack.c.l.bf16 %v1826_v49  ;;  %3344 = vpow2.f32 %v1816_v42 }
 0x5df   : >> { %v1853_v18 = vadd.f32 %v1852_v23, %v4632_v32  ;;  %v3337_v51 = vpop.eup %3336  ;;  %v1843_v54 = vunpack.c.l.bf16 %v1827_v7 }
 0x5e0   : >> { %v3339_v17 = vpop.eup %3338  ;;  %v1829_v58 = vpack.c.bf16 %v3337_v51, %v3337_v51  ;;  %v1844_v60 = vunpack.c.l.bf16 %v1828_v20 }
 0x5e1   : >> { %v1854_v13 = vadd.f32 %v1853_v18, %v4635_v57  ;;  %v1830_v44 = vpack.c.bf16 %v3339_v17, %v3339_v17 }
 0x5e2   : >> { %v3341_v50 = vpop.eup %3340  ;;  %v1845_v48 = vunpack.c.l.bf16 %v1829_v58 }
 0x5e3   : >> { %v1855_v59 = vadd.f32 %v1854_v13, %v4638_v62  ;;  %v3343_v30 = vpop.eup %3342  ;;  %v1831_v14 = vpack.c.bf16 %v3341_v50, %v3341_v50  ;;  %v1846_v47 = vunpack.c.l.bf16 %v1830_v44 }
 0x5e4   : >> { %v3345_v36 = vpop.eup %3344  ;;  %v1832_v21 = vpack.c.bf16 %v3343_v30, %v3343_v30 }
 0x5e5   : >> { %v1856_v63 = vadd.f32 %v1855_v59, %v4641_v15  ;;  %v1833_v39 = vpack.c.bf16 %v3345_v36, %v3345_v36  ;;  %v1847_v3 = vunpack.c.l.bf16 %v1831_v14 }
 0x5e6   : >> { %v1848_v45 = vunpack.c.l.bf16 %v1832_v21 }
 0x5e7   : >> { %v1857_v25 = vadd.f32 %v1856_v63, %v1842_v0  ;;  %v1849_v24 = vunpack.c.l.bf16 %v1833_v39 }
 0x5e9   : >> { %v1858_v52 = vadd.f32 %v1857_v25, %v1843_v54 }
 0x5eb   : >> { %v1859_v33 = vadd.f32 %v1858_v52, %v1844_v60 }
 0x5ed   : >> { %v1860_v2 = vadd.f32 %v1859_v33, %v1845_v48 }
 0x5ef   : >> { %v1861_v5 = vadd.f32 %v1860_v2, %v1846_v47 }
 0x5f1   : >> { %v1862_v19 = vadd.f32 %v1861_v5, %v1847_v3 }
 0x5f3   : >> { %v1863_v23 = vadd.f32 %v1862_v19, %v1848_v45 }
 0x5f5   : >> { %v1864_v8 = vadd.f32 %v1863_v23, %v1849_v24 }
 0x5f7   : >> { %v1865_v26 = vrot.slane %v1864_v8, 4 }
 0x5f9   : >> { %v1866_v55 = vadd.f32 %v1865_v26, %v1864_v8  ;;  %v2179_v8 = vpop.f32.mrf.mxu0 }
 0x5fb   : >> { %v1867_v43 = vrot.slane %v1866_v55, 2 }
 0x5fd   : >> { %v1868_v18 = vadd.f32 %v1867_v43, %v1866_v55 }
 0x5ff   : >> { %v1869_v37 = vrot.slane %v1868_v18, 1 }
 0x601   : >> { %v1870_v38 = vadd.f32 %v1869_v37, %v1868_v18  ;;  %v2181_v37 = vpop.f32.mrf.mxu0 }
 0x603   : >> { %3346 = vrcp.f32 %v1870_v38 }
 0x609   : >> { %v3347_v49 = vpop.eup %3346 }
 0x60a   : >> { %v1872_v13 = vpack.c.bf16 %v3347_v49, %v3347_v49 }
 0x60c   : >> { %v1873_v9 = vunpack.c.l.bf16 %v1872_v13 }
 0x60e   : >> { %v1874_v42 = vmul.f32 %v1873_v9, %v4621_v31  ;;  %v1875_v7 = vmul.f32 %v1873_v9, %v4623_v35  ;;  %v1876_v59 = vmul.f32 %v1873_v9, %v4625_v12  ;;  %v1877_v51 = vmul.f32 %v1873_v9, %v4629_v27 }
 0x60f   : >> { %v1878_v17 = vmul.f32 %v1873_v9, %v4632_v32  ;;  %v1884_v58 = vmul.f32 %v1873_v9, %v1844_v60  ;;  %v1885_v25 = vmul.f32 %v1873_v9, %v1845_v48  ;;  %v1879_v30 = vmul.f32 %v1873_v9, %v4635_v57 }
 0x610   : >> { %v1890_v20 = vpack.c.bf16 %v1875_v7, %v1874_v42  ;;  %v1891_v63 = vpack.c.bf16 %v1877_v51, %v1876_v59  ;;  %v1886_v35 = vmul.f32 %v1873_v9, %v1846_v47  ;;  %v1887_v12 = vmul.f32 %v1873_v9, %v1847_v3 }
 0x611   : >> { %v1895_v31 = vpack.c.bf16 %v1885_v25, %v1884_v58  ;;  %v1892_v14 = vpack.c.bf16 %v1879_v30, %v1878_v17  ;;  %v1882_v33 = vmul.f32 %v1873_v9, %v1842_v0  ;;  %v1883_v36 = vmul.f32 %v1873_v9, %v1843_v54 }
 0x612   : >> { %1994 = vmatmul.bf16.vlgmr.msra.gmra.mxu2 %v1890_v20  ;;  %v1900_v50 = vunpack.c.l.bf16 %v1891_v63  ;;  %v1899_v44 = vunpack.c.h.bf16 %v1890_v20  ;;  %v1898_v52 = vunpack.c.l.bf16 %v1890_v20  ;;  %v1896_v27 = vpack.c.bf16 %v1887_v12, %v1886_v35 }
 0x613   : >> { %v1903_v21 = vunpack.c.h.bf16 %v1892_v14  ;;  %v1902_v32 = vunpack.c.l.bf16 %v1892_v14  ;;  %v1880_v60 = vmul.f32 %v1873_v9, %v4638_v62  ;;  %v1881_v48 = vmul.f32 %v1873_v9, %v4641_v15 }
 0x614   : >> { %1918 = vadd.xlane.f32.xlu0 %v1900_v50  ;;  %1916 = vadd.xlane.f32.xlu2 %v1899_v44  ;;  %v1901_v2 = vunpack.c.h.bf16 %v1891_v63  ;;  %v1894_v57 = vpack.c.bf16 %v1883_v36, %v1882_v33  ;;  %v1909_v0 = vunpack.c.h.bf16 %v1895_v31  ;;  %v1908_v54 = vunpack.c.l.bf16 %v1895_v31 }
 0x615   : >> { %1914 = vadd.xlane.f32.xlu1 %v1898_v52  ;;  %v1893_v39 = vpack.c.bf16 %v1881_v48, %v1880_v60  ;;  %v1888_v19 = vmul.f32 %v1873_v9, %v1848_v45  ;;  %v1889_v23 = vmul.f32 %v1873_v9, %v1849_v24  ;;  %v1911_v55 = vunpack.c.h.bf16 %v1896_v27  ;;  %v2184_v45 = vpop.f32.mrf.mxu0  ;;  %v4658_v24 = vld [vmem:[%s2117_s17] ss:$0 sm:$0xff]  ;;  %s2821_s17 = sshll.u32 %s3706_s25, 7  ;;  %s5104_s25 = smov %s759_s23 }
 0x616   : >> { %v1906_v5 = vunpack.c.l.bf16 %v1894_v57  ;;  %v1907_v62 = vunpack.c.h.bf16 %v1894_v57  ;;  %v1910_v43 = vunpack.c.l.bf16 %v1896_v27  ;;  %v2180_v49 = vadd.f32 %v4658_v24, %v2179_v8  ;;  %s4820_s21 = scalar_lea.vmem %s301_s13, %s2821_s17 [#allocation2]  ;;  %s5105_s17 = sand.u32 (%p4876_p11), 1, %s3566_s28  }
 0x617   : >> { %v1905_v47 = vunpack.c.h.bf16 %v1893_v39  ;;  %v1904_v3 = vunpack.c.l.bf16 %v1893_v39  ;;  %v1897_v15 = vpack.c.bf16 %v1889_v23, %v1888_v19  ;;  %v2182_v42 = vadd.f32 %v4658_v24, %v2181_v37  ;;  %s2424_s25 = scalar_lea.sflag (%p4876_p11), [#allocation3], %s5105_s17 }
 0x618   : >> { %v2259_v13 = vmax.f32 %v2180_v49, 0.0  ;;  %v2185_v59 = vadd.f32 %v4658_v24, %v2184_v45 }
 0x619   : >> { %v1912_v26 = vunpack.c.l.bf16 %v1897_v15  ;;  %v1913_v18 = vunpack.c.h.bf16 %v1897_v15  ;;  %v2260_v7 = vmax.f32 %v2182_v42, 0.0 }
 0x61a   : >> { %v4663_v53 = vadd.f32 %v3702_v53, %v2259_v13   ;;  %v2261_v20 = vmax.f32 %v2185_v59, 0.0 }
 0x61b   : >> { %v4668_v1 = vadd.f32 %v3698_v1, %v2260_v7  }
 0x61c   : >> { %1924 = vadd.xlane.f32.xlu0 %v1903_v21  ;;  %1922 = vadd.xlane.f32.xlu2 %v1902_v32  ;;  %v4672_v61 = vadd.f32 %v3694_v61, %v2261_v20  }
 0x61d   : >> { %1920 = vadd.xlane.f32.xlu1 %v1901_v2  ;;  %v2186_v38 = vpop.f32.mrf.mxu0 }
 0x622   : >> { %1999 = vmatmul.bf16.gmra.mxu2 %v1891_v63  ;;  %v2187_v63 = vadd.f32 %v4658_v24, %v2186_v38 }
 0x624   : >> { %1930 = vadd.xlane.f32.xlu0 %v1906_v5  ;;  %1928 = vadd.xlane.f32.xlu2 %v1905_v47  ;;  %v2262_v58 = vmax.f32 %v2187_v63, 0.0 }
 0x625   : >> { %1926 = vadd.xlane.f32.xlu1 %v1904_v3  ;;  %v2189_v9 = vpop.f32.mrf.mxu0 }
 0x626   : >> { %v2190_v25 = vadd.f32 %v4658_v24, %v2189_v9  ;;  %v4678_v4 = vadd.f32 %v3690_v4, %v2262_v58  }
 0x628   : >> { %v2263_v50 = vmax.f32 %v2190_v25, 0.0 }
 0x62a   : >> { %v4682_v10 = vadd.f32 %v3686_v10, %v2263_v50  }
 0x62c   : >> { %1936 = vadd.xlane.f32.xlu0 %v1909_v0  ;;  %1934 = vadd.xlane.f32.xlu2 %v1908_v54 }
 0x62d   : >> { %1932 = vadd.xlane.f32.xlu1 %v1907_v62  ;;  %v2191_v51 = vpop.f32.mrf.mxu0 }
 0x62e   : >> { %v2192_v52 = vadd.f32 %v4658_v24, %v2191_v51 }
 0x630   : >> { %v2264_v30 = vmax.f32 %v2192_v52, 0.0 }
 0x632   : >> { %2004 = vmatmul.bf16.gmra.mxu2 %v1892_v14  ;;  %v4688_v16 = vadd.f32 %v3682_v16, %v2264_v30   ;;  %v5086_v30 = vld [vmem:[#allocation17_spill] sm:$0xff] }
 0x634   : >> { %1942 = vadd.xlane.f32.xlu0 %v1912_v26  ;;  %1940 = vadd.xlane.f32.xlu2 %v1911_v55  ;;  %v5083_v26 = vld [vmem:[#allocation20_spill] sm:$0xff] }
 0x635   : >> { %1938 = vadd.xlane.f32.xlu1 %v1910_v43  ;;  %v2194_v17 = vpop.f32.mrf.mxu0  ;;  %v5084_v43 = vld [vmem:[#allocation19_spill] sm:$0xff] }
 0x636   : >> { %v2195_v35 = vadd.f32 %v4658_v24, %v2194_v17 }
 0x638   : >> { %v2265_v12 = vmax.f32 %v2195_v35, 0.0 }
 0x63a   : >> { %v4692_v22 = vadd.f32 %v3678_v22, %v2265_v12  }
 0x63d   : >> { %1944 = vadd.xlane.f32.xlu1 %v1913_v18  ;;  %v2196_v44 = vpop.f32.mrf.mxu0 }
 0x63e   : >> { %v2197_v14 = vadd.f32 %v4658_v24, %v2196_v44  ;;  %v5085_v44 = vld [vmem:[#allocation18_spill] sm:$0xff] }
 0x640   : >> { %v2266_v36 = vmax.f32 %v2197_v14, 0.0 }
 0x642   : >> { %2009 = vmatmul.bf16.gmra.mxu2 %v1893_v39  ;;  %v4697_v28 = vadd.f32 %v3674_v28, %v2266_v36  }
 0x652   : >> { %2014 = vmatmul.bf16.gmra.mxu2 %v1894_v57 }
 0x65d   : >> { %2323 = vxpose.xlu2.b32.start [1/16] %v4663_v53, 128 }
 0x662   : >> { %2019 = vmatmul.bf16.gmra.mxu2 %v1895_v31  ;;  %v2199_v31 = vpop.f32.mrf.mxu0 }
 0x663   : >> { %v2200_v60 = vadd.f32 %v4658_v24, %v2199_v31 }
 0x665   : >> { %2324 = vxpose.xlu2.b32.cont [2/16] %v4668_v1, 128  ;;  %v2267_v39 = vmax.f32 %v2200_v60, 0.0 }
 0x667   : >> { %v4702_v34 = vadd.f32 %v3670_v34, %v2267_v39  }
 0x66d   : >> { %2325 = vxpose.xlu2.b32.cont [3/16] %v4672_v61, 128 }
 0x672   : >> { %2024 = vmatmul.bf16.gmra.mxu2 %v1896_v27  ;;  %v2201_v27 = vpop.f32.mrf.mxu0 }
 0x673   : >> { %v2202_v47 = vadd.f32 %v4658_v24, %v2201_v27 }
 0x675   : >> { %2326 = vxpose.xlu2.b32.cont [4/16] %v4678_v4, 128  ;;  %v2268_v62 = vmax.f32 %v2202_v47, 0.0 }
 0x677   : >> { %v4709_v40 = vadd.f32 %v3666_v40, %v2268_v62  }
 0x67a   : >> { %v2204_v57 = vpop.f32.mrf.mxu0 }
 0x67b   : >> { %v2205_v38 = vadd.f32 %v4658_v24, %v2204_v57 }
 0x67d   : >> { %2327 = vxpose.xlu2.b32.cont [5/16] %v4682_v10, 128  ;;  %v2269_v9 = vmax.f32 %v2205_v38, 0.0 }
 0x67f   : >> { %v4714_v46 = vadd.f32 %v3662_v46, %v2269_v9  }
 0x682   : >> { %2029 = vmatmul.bf16.gmra.mxu2 %v1897_v15  ;;  %v2206_v15 = vpop.f32.mrf.mxu0 }
 0x683   : >> { %v2207_v59 = vadd.f32 %v4658_v24, %v2206_v15 }
 0x685   : >> { %2328 = vxpose.xlu2.b32.cont [6/16] %v4688_v16, 128  ;;  %v2270_v25 = vmax.f32 %v2207_v59, 0.0 }
 0x687   : >> { %v1917_v21 = vpop.xlane.xlu2 %1916  ;;  %v1919_v19 = vpop.xlane.xlu0 %1918  ;;  %v4721_v56 = vadd.f32 %v3658_v56, %v2270_v25   ;;  %v5090_v25 = vld [vmem:[#allocation13_spill] sm:$0xff] }
 0x688   : >> { %v1915_v33 = vpop.xlane.xlu1 %1914  ;;  %v1947_v48 = vadd.f32 1e-09, %v1917_v21  ;;  %v1948_v37 = vadd.f32 1e-09, %v1919_v19 }
 0x689   : >> { %v1946_v32 = vadd.f32 1e-09, %v1915_v33 }
 0x68a   : >> { %v2209_v42 = vpop.f32.mrf.mxu0 }
 0x68b   : >> { %3348 = vrcp.f32 %v1946_v32  ;;  %v2210_v14 = vadd.f32 %v4658_v24, %v2209_v42 }
 0x68c   : >> { %3350 = vrcp.f32 %v1947_v48 }
 0x68d   : >> { %2329 = vxpose.xlu2.b32.cont [7/16] %v4692_v22, 128  ;;  %3352 = vrcp.f32 %v1948_v37  ;;  %v2271_v21 = vmax.f32 %v2210_v14, 0.0 }
 0x68f   : >> { %v1923_v17 = vpop.xlane.xlu2 %1922  ;;  %v1925_v50 = vpop.xlane.xlu0 %1924  ;;  %v4726_v11 = vadd.f32 %v3654_v11, %v2271_v21  }
 0x690   : >> { %v1921_v8 = vpop.xlane.xlu1 %1920  ;;  %v1950_v35 = vadd.f32 1e-09, %v1923_v17  ;;  %v1951_v27 = vadd.f32 1e-09, %v1925_v50  ;;  %v5089_v17 = vld [vmem:[#allocation14_spill] sm:$0xff] }
 0x691   : >> { %v3349_v5 = vpop.eup %3348  ;;  %v1949_v49 = vadd.f32 1e-09, %v1921_v8 }
 0x692   : >> { %v3351_v0 = vpop.eup %3350  ;;  %v2211_v33 = vpop.f32.mrf.mxu0 }
 0x693   : >> { %3354 = vrcp.f32 %v1949_v49  ;;  %v3353_v7 = vpop.eup %3352  ;;  %v2212_v60 = vadd.f32 %v4658_v24, %v2211_v33 }
 0x694   : >> { %3356 = vrcp.f32 %v1950_v35 }
 0x695   : >> { %v1995_v2 = vpop.f32.mrf.mxu2  ;;  %2330 = vxpose.xlu2.b32.cont [8/16] %v4697_v28, 128  ;;  %3358 = vrcp.f32 %v1951_v27 }
 0x696   : >> { %v2035_v3 = vmul.f32 %v3349_v5, %v1995_v2 }
 0x697   : >> { %v1931_v59 = vpop.xlane.xlu0 %1930 }
 0x698   : >> { %v2067_v55 = vsub.f32 %v5083_v26, %v2035_v3  ;;  %v1927_v5 = vpop.xlane.xlu1 %1926  ;;  %v2272_v3 = vmax.f32 %v2212_v60, 0.0 }
 0x699   : >> { %v3355_v20 = vpop.eup %3354  ;;  %v1952_v15 = vadd.f32 1e-09, %v1927_v5 }
 0x69a   : >> { %v3357_v32 = vpop.eup %3356  ;;  %v2214_v39 = vpop.f32.mrf.mxu0  ;;  %v4733_v29 = vadd.f32 %v3650_v29, %v2272_v3  }
 0x69b   : >> { %v3359_v2 = vpop.eup %3358  ;;  %3360 = vrcp.f32 %v1952_v15 }
 0x69d   : >> { %v1997_v54 = vpop.f32.mrf.mxu2  ;;  %2331 = vxpose.xlu2.b32.cont [9/16] %v4702_v34, 128 }
 0x69e   : >> { %v2036_v23 = vmul.f32 %v3351_v0, %v1997_v54  ;;  %v1929_v0 = vpop.xlane.xlu2 %1928  ;;  %v5087_v54 = vld [vmem:[#allocation16_spill] sm:$0xff] }
 0x69f   : >> { %v1937_v60 = vpop.xlane.xlu0 %1936 }
 0x6a0   : >> { %v2068_v18 = vsub.f32 %v5084_v43, %v2036_v23  ;;  %v5088_v23 = vld [vmem:[#allocation15_spill] sm:$0xff] }
 0x6a1   : >> { %v3361_v49 = vpop.eup %3360 }
 0x6a2   : >> { %v2091_v45 = vpack.c.bf16 %v2068_v18, %v2067_v55  ;;  %v2215_v55 = vadd.f32 %v4658_v24, %v2214_v39  ;;  %v1953_v18 = vadd.f32 1e-09, %v1929_v0  ;;  %v2216_v38 = vpop.f32.mrf.mxu0 }
 0x6a4   : >> { %2218 = vmatmul.bf16.gmra.mxu0 %v2091_v45  ;;  %v2273_v45 = vmax.f32 %v2215_v55, 0.0  ;;  %3362 = vrcp.f32 %v1953_v18 }
 0x6a5   : >> { %v2000_v13 = vpop.f32.mrf.mxu2  ;;  %2332 = vxpose.xlu2.b32.cont [10/16] %v4709_v40, 128 }
 0x6a6   : >> { %v2037_v51 = vmul.f32 %v3353_v7, %v2000_v13  ;;  %v4738_v41 = vadd.f32 %v3646_v41, %v2273_v45   ;;  %v2217_v13 = vadd.f32 %v4658_v24, %v2216_v38  ;;  %v1935_v21 = vpop.xlane.xlu2 %1934  ;;  %v5094_v38 = vld [vmem:[#allocation9_spill] sm:$0xff] }
 0x6a8   : >> { %v2069_v52 = vsub.f32 %v5085_v44, %v2037_v51 }
 0x6aa   : >> { %v3363_v42 = vpop.eup %3362 }
 0x6ad   : >> { %v2002_v63 = vpop.f32.mrf.mxu2  ;;  %2333 = vxpose.xlu2.b32.cont [11/16] %v4714_v46, 128 }
 0x6ae   : >> { %v2038_v58 = vmul.f32 %v3355_v20, %v2002_v63  ;;  %v2274_v20 = vmax.f32 %v2217_v13, 0.0  ;;  %v1933_v63 = vpop.xlane.xlu1 %1932  ;;  %v1941_v18 = vpop.xlane.xlu2 %1940 }
 0x6af   : >> { %v1955_v35 = vadd.f32 1e-09, %v1933_v63 }
 0x6b0   : >> { %v2070_v31 = vsub.f32 %v5086_v30, %v2038_v58 }
 0x6b2   : >> { %v2092_v12 = vpack.c.bf16 %v2070_v31, %v2069_v52  ;;  %v1954_v52 = vadd.f32 1e-09, %v1931_v59 }
 0x6b4   : >> { %2223 = vmatmul.bf16.gmra.mxu0 %v2092_v12  ;;  %3364 = vrcp.f32 %v1954_v52 }
 0x6b5   : >> { %v2005_v36 = vpop.f32.mrf.mxu2  ;;  %2334 = vxpose.xlu2.b32.cont [12/16] %v4721_v56, 128  ;;  %3366 = vrcp.f32 %v1955_v35  ;;  %v5095_v35 = vld [vmem:[#allocation8_spill] sm:$0xff] }
 0x6b6   : >> { %v2039_v48 = vmul.f32 %v3357_v32, %v2005_v36 }
 0x6b8   : >> { %v2071_v19 = vsub.f32 %v5087_v54, %v2039_v48  ;;  %v5091_v48 = vld [vmem:[#allocation12_spill] sm:$0xff] }
 0x6ba   : >> { %v3365_v14 = vpop.eup %3364 }
 0x6bb   : >> { %v3367_v33 = vpop.eup %3366 }
 0x6bd   : >> { %v2007_v57 = vpop.f32.mrf.mxu2  ;;  %2335 = vxpose.xlu2.b32.cont [13/16] %v4726_v11, 128 }
 0x6be   : >> { %v2040_v47 = vmul.f32 %v3359_v2, %v2007_v57  ;;  %v5092_v57 = vld [vmem:[#allocation11_spill] sm:$0xff] }
 0x6c0   : >> { %v2072_v62 = vsub.f32 %v5088_v23, %v2040_v47  ;;  %v1957_v47 = vadd.f32 1e-09, %v1937_v60 }
 0x6c2   : >> { %v2093_v8 = vpack.c.bf16 %v2072_v62, %v2071_v19 }
 0x6c4   : >> { %2228 = vmatmul.bf16.gmra.mxu0 %v2093_v8  ;;  %v1939_v8 = vpop.xlane.xlu1 %1938 }
 0x6c5   : >> { %v2010_v37 = vpop.f32.mrf.mxu2  ;;  %2336 = vxpose.xlu2.b32.cont [14/16] %v4733_v29, 128  ;;  %v1958_v13 = vadd.f32 1e-09, %v1939_v8 }
 0x6c6   : >> { %v2041_v9 = vmul.f32 %v3361_v49, %v2010_v37  ;;  %v5093_v37 = vld [vmem:[#allocation10_spill] sm:$0xff] }
 0x6c8   : >> { %v2073_v58 = vsub.f32 %v5089_v17, %v2041_v9 }
 0x6cd   : >> { %v2012_v7 = vpop.f32.mrf.mxu2  ;;  %2337 = vxpose.xlu2.b32.cont [15/16] %v4738_v41, 128 }
 0x6ce   : >> { %v2042_v51 = vmul.f32 %v3363_v42, %v2012_v7  ;;  %v1959_v42 = vadd.f32 1e-09, %v1941_v18 }
 0x6d0   : >> { %v2074_v50 = vsub.f32 %v5090_v25, %v2042_v51  ;;  %v4745_v51 = vadd.f32 %v5082_v6, %v2274_v20   ;;  %v1956_v6 = vadd.f32 1e-09, %v1935_v21 }
 0x6d2   : >> { %v2094_v31 = vpack.c.bf16 %v2074_v50, %v2073_v58  ;;  %3368 = vrcp.f32 %v1956_v6  ;;  %v1943_v50 = vpop.xlane.xlu0 %1942 }
 0x6d3   : >> { %3370 = vrcp.f32 %v1957_v47  ;;  %v5097_v47 = vld [vmem:[#allocation6_spill] sm:$0xff] }
 0x6d4   : >> { %2233 = vmatmul.bf16.gmra.mxu0 %v2094_v31  ;;  %3372 = vrcp.f32 %v1958_v13  ;;  %v1945_v31 = vpop.xlane.xlu1 %1944 }
 0x6d5   : >> { %v2015_v12 = vpop.f32.mrf.mxu2  ;;  %2338 = vxpose.xlu2.b32.end [16/16] %v4745_v51, 128  ;;  %3374 = vrcp.f32 %v1959_v42  ;;  %v1961_v21 = vadd.f32 1e-09, %v1945_v31 }
 0x6d6   : >> { %v2043_v27 = vmul.f32 %v3365_v14, %v2015_v12  ;;  %v5096_v14 = vld [vmem:[#allocation7_spill] sm:$0xff] }
 0x6d8   : >> { %v2075_v2 = vsub.f32 %v5091_v48, %v2043_v27  ;;  %v3369_v0 = vpop.eup %3368 }
 0x6d9   : >> { %v3371_v62 = vpop.eup %3370 }
 0x6da   : >> { %v3373_v59 = vpop.eup %3372 }
 0x6db   : >> { %v3375_v63 = vpop.eup %3374 }
 0x6dd   : >> { %v2017_v36 = vpop.f32.mrf.mxu2 }
 0x6de   : >> { %v2044_v32 = vmul.f32 %v3367_v33, %v2017_v36  ;;  %v1960_v33 = vadd.f32 1e-09, %v1943_v50 }
 0x6e0   : >> { %v2076_v39 = vsub.f32 %v5092_v57, %v2044_v32  ;;  %3376 = vrcp.f32 %v1960_v33 }
 0x6e1   : >> { %3378 = vrcp.f32 %v1961_v21 }
 0x6e2   : >> { %v2095_v5 = vpack.c.bf16 %v2076_v39, %v2075_v2 }
 0x6e4   : >> { %2238 = vmatmul.bf16.gmra.mxu0 %v2095_v5 }
 0x6e5   : >> { %v2020_v3 = vpop.f32.mrf.mxu2 }
 0x6e6   : >> { %v2045_v19 = vmul.f32 %v3369_v0, %v2020_v3  ;;  %v3377_v60 = vpop.eup %3376  ;;  %v5098_v0 = vld [vmem:[#allocation5_spill] sm:$0xff] }
 0x6e7   : >> { %v3379_v39 = vpop.eup %3378 }
 0x6e8   : >> { %v2077_v45 = vsub.f32 %v5093_v37, %v2045_v19 }
 0x6ed   : >> { %v2022_v15 = vpop.f32.mrf.mxu2 }
 0x6ee   : >> { %v2046_v55 = vmul.f32 %v3371_v62, %v2022_v15 }
 0x6f0   : >> { %v2078_v49 = vsub.f32 %v5094_v38, %v2046_v55 }
 0x6f2   : >> { %v2096_v9 = vpack.c.bf16 %v2078_v49, %v2077_v45 }
 0x6f4   : >> { %2243 = vmatmul.bf16.gmra.mxu0 %v2096_v9 }
 0x6f5   : >> { %v2025_v7 = vpop.f32.mrf.mxu2 }
 0x6f6   : >> { %v2047_v20 = vmul.f32 %v3373_v59, %v2025_v7 }
 0x6f8   : >> { %v2079_v12 = vsub.f32 %v5095_v35, %v2047_v20 }
 0x6fd   : >> { %v2027_v58 = vpop.f32.mrf.mxu2 }
 0x6fe   : >> { %v2048_v52 = vmul.f32 %v3375_v63, %v2027_v58 }
 0x700   : >> { %v2080_v27 = vsub.f32 %v5096_v14, %v2048_v52 }
 0x702   : >> { %v2097_v36 = vpack.c.bf16 %v2080_v27, %v2079_v12 }
 0x704   : >> { %2248 = vmatmul.bf16.gmra.mxu0 %v2097_v36 }
 0x705   : >> { %v2030_v32 = vpop.f32.mrf.mxu2 }
 0x706   : >> { %v2049_v2 = vmul.f32 %v3377_v60, %v2030_v32 }
 0x708   : >> { %v2081_v3 = vsub.f32 %v5097_v47, %v2049_v2 }
 0x70d   : >> { %v2032_v6 = vpop.f32.mrf.mxu2 }
 0x70e   : >> { %v2050_v5 = vmul.f32 %v3379_v39, %v2032_v6 }
 0x710   : >> { %v2082_v19 = vsub.f32 %v5098_v0, %v2050_v5 }
 0x712   : >> { %v2098_v62 = vpack.c.bf16 %v2082_v19, %v2081_v3 }
 0x714   : >> { %2253 = vmatmul.bf16.vlgmr.msrb.gmra.mxu3 %v2098_v62 }
 0x721   : >> { %v2219_v15 = vpop.f32.mrf.mxu0 }
 0x722   : >> { %v2220_v8 = vadd.f32 %v4658_v24, %v2219_v15 }
 0x724   : >> { %v2275_v55 = vmax.f32 %v2220_v8, 0.0 }
 0x726   : >> { %v4758_v58 = vadd.f32 %v5083_v26, %v2275_v55  }
 0x728   : >> { %2373 = vxpose.xlu0.b32.start [1/16] %v4758_v58, 128 }
 0x729   : >> { %v2221_v18 = vpop.f32.mrf.mxu0 }
 0x72a   : >> { %v2222_v45 = vadd.f32 %v4658_v24, %v2221_v18  ;;  %v2339_v18 = vpop.trf.xlu2 }
 0x72b   : >> { %2357 = vst [vmem:[%s4820_s21] sm:$0xff] %v2339_v18 }
 0x72c   : >> { %v2276_v49 = vmax.f32 %v2222_v45, 0.0 }
 0x72e   : >> { %v4763_v13 = vadd.f32 %v5084_v43, %v2276_v49  }
 0x730   : >> { %v5099_v9 = vmov %v4763_v13 }
 0x731   : >> { %2374 = vxpose.xlu0.b32.cont [2/16] %v5099_v9, 128  ;;  %v2224_v42 = vpop.f32.mrf.mxu0 }
 0x732   : >> { %v2225_v7 = vadd.f32 %v4658_v24, %v2224_v42 }
 0x734   : >> { %v2277_v59 = vmax.f32 %v2225_v7, 0.0 }
 0x736   : >> { %v4768_v7 = vadd.f32 %v5085_v44, %v2277_v59  }
 0x739   : >> { %2375 = vxpose.xlu0.b32.cont [3/16] %v4768_v7, 128  ;;  %v2226_v26 = vpop.f32.mrf.mxu0 }
 0x73a   : >> { %v2227_v20 = vadd.f32 %v4658_v24, %v2226_v26 }
 0x73c   : >> { %v2278_v63 = vmax.f32 %v2227_v20, 0.0 }
 0x73e   : >> { %v4773_v13 = vadd.f32 %v5086_v30, %v2278_v63  }
 0x741   : >> { %2376 = vxpose.xlu0.b32.cont [4/16] %v4773_v13, 128  ;;  %v2229_v43 = vpop.f32.mrf.mxu0 }
 0x742   : >> { %v2230_v50 = vadd.f32 %v4658_v24, %v2229_v43 }
 0x744   : >> { %v2279_v52 = vmax.f32 %v2230_v50, 0.0 }
 0x746   : >> { %v4778_v19 = vadd.f32 %v5087_v54, %v2279_v52  }
 0x749   : >> { %2377 = vxpose.xlu0.b32.cont [5/16] %v4778_v19, 128  ;;  %v2231_v44 = vpop.f32.mrf.mxu0 }
 0x74a   : >> { %v2232_v31 = vadd.f32 %v4658_v24, %v2231_v44  ;;  %v2340_v44 = vpop.trf.xlu2 }
 0x74b   : >> { %2358 = vst [vmem:[%s4820_s21 + $0x8] sm:$0xff] %v2340_v44 }
 0x74c   : >> { %v2280_v12 = vmax.f32 %v2232_v31, 0.0 }
 0x74e   : >> { %v4783_v27 = vadd.f32 %v5088_v23, %v2280_v12  }
 0x751   : >> { %2378 = vxpose.xlu0.b32.cont [6/16] %v4783_v27, 128  ;;  %v2234_v30 = vpop.f32.mrf.mxu0 }
 0x752   : >> { %v2235_v33 = vadd.f32 %v4658_v24, %v2234_v30 }
 0x754   : >> { %v2281_v36 = vmax.f32 %v2235_v33, 0.0 }
 0x756   : >> { %v4788_v31 = vadd.f32 %v5089_v17, %v2281_v36  }
 0x759   : >> { %2379 = vxpose.xlu0.b32.cont [7/16] %v4788_v31, 128  ;;  %v2236_v54 = vpop.f32.mrf.mxu0 }
 0x75a   : >> { %v2237_v21 = vadd.f32 %v4658_v24, %v2236_v54 }
 0x75c   : >> { %v2282_v32 = vmax.f32 %v2237_v21, 0.0 }
 0x75e   : >> { %v4793_v60 = vadd.f32 %v5090_v25, %v2282_v32  }
 0x761   : >> { %2380 = vxpose.xlu0.b32.cont [8/16] %v4793_v60, 128  ;;  %v2239_v23 = vpop.f32.mrf.mxu0 }
 0x762   : >> { %v2240_v2 = vadd.f32 %v4658_v24, %v2239_v23 }
 0x764   : >> { %v2283_v39 = vmax.f32 %v2240_v2, 0.0 }
 0x766   : >> { %v4798_v43 = vadd.f32 %v5091_v48, %v2283_v39  }
 0x769   : >> { %2381 = vxpose.xlu0.b32.cont [9/16] %v4798_v43, 128  ;;  %v2241_v17 = vpop.f32.mrf.mxu0 }
 0x76a   : >> { %v2242_v6 = vadd.f32 %v4658_v24, %v2241_v17 }
 0x76c   : >> { %v2284_v5 = vmax.f32 %v2242_v6, 0.0 }
 0x76e   : >> { %v4803_v49 = vadd.f32 %v5092_v57, %v2284_v5  }
 0x771   : >> { %2382 = vxpose.xlu0.b32.cont [10/16] %v4803_v49, 128  ;;  %v2244_v25 = vpop.f32.mrf.mxu0 }
 0x772   : >> { %v2245_v3 = vadd.f32 %v4658_v24, %v2244_v25 }
 0x774   : >> { %v2285_v62 = vmax.f32 %v2245_v3, 0.0 }
 0x776   : >> { %v4808_v2 = vadd.f32 %v5093_v37, %v2285_v62  }
 0x779   : >> { %2383 = vxpose.xlu0.b32.cont [11/16] %v4808_v2, 128  ;;  %v2246_v48 = vpop.f32.mrf.mxu0 }
 0x77a   : >> { %v2247_v15 = vadd.f32 %v4658_v24, %v2246_v48 }
 0x77c   : >> { %v2286_v8 = vmax.f32 %v2247_v15, 0.0 }
 0x77e   : >> { %v4813_v20 = vadd.f32 %v5094_v38, %v2286_v8  }
 0x781   : >> { %2384 = vxpose.xlu0.b32.cont [12/16] %v4813_v20, 128  ;;  %v2249_v57 = vpop.f32.mrf.mxu0 }
 0x782   : >> { %v2250_v55 = vadd.f32 %v4658_v24, %v2249_v57 }
 0x784   : >> { %v2287_v37 = vmax.f32 %v2250_v55, 0.0 }
 0x786   : >> { %v4823_v35 = vadd.f32 %v5095_v35, %v2287_v37  }
 0x789   : >> { %2385 = vxpose.xlu0.b32.cont [13/16] %v4823_v35, 128  ;;  %v2251_v38 = vpop.f32.mrf.mxu0 }
 0x78a   : >> { %v2252_v45 = vadd.f32 %v4658_v24, %v2251_v38 }
 0x78c   : >> { %v2288_v42 = vmax.f32 %v2252_v45, 0.0 }
 0x78e   : >> { %v4829_v45 = vadd.f32 %v5096_v14, %v2288_v42  }
 0x791   : >> { %2386 = vxpose.xlu0.b32.cont [14/16] %v4829_v45, 128 }
 0x797   : >> { %v2254_v59 = vpop.f32.mrf.mxu3 }
 0x798   : >> { %v2255_v26 = vadd.f32 %v4658_v24, %v2254_v59 }
 0x79a   : >> { %v2289_v63 = vmax.f32 %v2255_v26, 0.0 }
 0x79c   : >> { %v4834_v62 = vadd.f32 %v5097_v47, %v2289_v63   ;;  %v2341_v47 = vpop.trf.xlu2 }
 0x79d   : >> { %2359 = vst [vmem:[%s4820_s21 + $0x10] sm:$0xff] %v2341_v47 }
 0x79e   : >> { %2387 = vxpose.xlu0.b32.cont [15/16] %v4834_v62, 128 }
 0x79f   : >> { %v2256_v50 = vpop.f32.mrf.mxu3 }
 0x7a0   : >> { %v2257_v52 = vadd.f32 %v4658_v24, %v2256_v50 }
 0x7a2   : >> { %v2290_v14 = vmax.f32 %v2257_v52, 0.0 }
 0x7a4   : >> { %v4839_v14 = vadd.f32 %v5098_v0, %v2290_v14   ;;  %v2342_v12 = vpop.trf.xlu2 }
 0x7a5   : >> { %2360 = vst [vmem:[%s4820_s21 + $0x18] sm:$0xff] %v2342_v12 }
 0x7a6   : >> { %2388 = vxpose.xlu0.b32.end [16/16] %v4839_v14, 128 }
 0x7ac   : >> { %v2343_v30 = vpop.trf.xlu2 }
 0x7ad   : >> { %2361 = vst [vmem:[%s4820_s21 + $0x20] sm:$0xff] %v2343_v30 }
 0x7b4   : >> { %v2344_v0 = vpop.trf.xlu2 }
 0x7b5   : >> { %2362 = vst [vmem:[%s4820_s21 + $0x28] sm:$0xff] %v2344_v0  ;;  %v5103_v0 = vmov %v5099_v9 }
 0x7bc   : >> { %v2345_v36 = vpop.trf.xlu2 }
 0x7bd   : >> { %2363 = vst [vmem:[%s4820_s21 + $0x30] sm:$0xff] %v2345_v36 }
 0x7c4   : >> { %v2346_v21 = vpop.trf.xlu2 }
 0x7c5   : >> { %2364 = vst [vmem:[%s4820_s21 + $0x38] sm:$0xff] %v2346_v21 }
 0x7cc   : >> { %v2347_v23 = vpop.trf.xlu2 }
 0x7cd   : >> { %2365 = vst [vmem:[%s4820_s21 + $0x40] sm:$0xff] %v2347_v23 }
 0x7d2   : >> { %v2389_v24 = vpop.trf.xlu0 }
 0x7d3   : >> { %2823 = vst [vmem:[%s4820_s21 + $0x200] sm:$0xff] %v2389_v24 }
 0x7d4   : >> { %v2348_v17 = vpop.trf.xlu2 }
 0x7d5   : >> { %2366 = vst [vmem:[%s4820_s21 + $0x48] sm:$0xff] %v2348_v17 }
 0x7da   : >> { %v2390_v33 = vpop.trf.xlu0 }
 0x7db   : >> { %2824 = vst [vmem:[%s4820_s21 + $0x208] sm:$0xff] %v2390_v33 }
 0x7dc   : >> { %v2349_v5 = vpop.trf.xlu2 }
 0x7dd   : >> { %2367 = vst [vmem:[%s4820_s21 + $0x50] sm:$0xff] %v2349_v5 }
 0x7e2   : >> { %v2391_v54 = vpop.trf.xlu0 }
 0x7e3   : >> { %2825 = vst [vmem:[%s4820_s21 + $0x210] sm:$0xff] %v2391_v54 }
 0x7e4   : >> { %v2350_v3 = vpop.trf.xlu2 }
 0x7e5   : >> { %2368 = vst [vmem:[%s4820_s21 + $0x58] sm:$0xff] %v2350_v3 }
 0x7ea   : >> { %v2392_v32 = vpop.trf.xlu0 }
 0x7eb   : >> { %2826 = vst [vmem:[%s4820_s21 + $0x218] sm:$0xff] %v2392_v32 }
 0x7ec   : >> { %v2351_v15 = vpop.trf.xlu2 }
 0x7ed   : >> { %2369 = vst [vmem:[%s4820_s21 + $0x60] sm:$0xff] %v2351_v15 }
 0x7f2   : >> { %v2393_v39 = vpop.trf.xlu0 }
 0x7f3   : >> { %2827 = vst [vmem:[%s4820_s21 + $0x220] sm:$0xff] %v2393_v39 }
 0x7f4   : >> { %v2352_v57 = vpop.trf.xlu2 }
 0x7f5   : >> { %2370 = vst [vmem:[%s4820_s21 + $0x68] sm:$0xff] %v2352_v57 }
 0x7fa   : >> { %v2394_v6 = vpop.trf.xlu0 }
 0x7fb   : >> { %2828 = vst [vmem:[%s4820_s21 + $0x228] sm:$0xff] %v2394_v6 }
 0x7fc   : >> { %v2353_v37 = vpop.trf.xlu2 }
 0x7fd   : >> { %2371 = vst [vmem:[%s4820_s21 + $0x70] sm:$0xff] %v2353_v37  ;;  %v5101_v37 = vmov %v4793_v60 }
 0x802   : >> { %v2395_v25 = vpop.trf.xlu0 }
 0x803   : >> { %2829 = vst [vmem:[%s4820_s21 + $0x230] sm:$0xff] %v2395_v25  ;;  %v5102_v25 = vmov %v4783_v27 }
 0x804   : >> { %v2354_v38 = vpop.trf.xlu2 }
 0x805   : >> { %2372 = vst [vmem:[%s4820_s21 + $0x78] sm:$0xff] %v2354_v38 }
 0x80a   : >> { %v2396_v48 = vpop.trf.xlu0 }
 0x80b   : >> { %2830 = vst [vmem:[%s4820_s21 + $0x238] sm:$0xff] %v2396_v48 }
 0x812   : >> { %v2397_v8 = vpop.trf.xlu0 }
 0x813   : >> { %2831 = vst [vmem:[%s4820_s21 + $0x240] sm:$0xff] %v2397_v8 }
 0x81a   : >> { %v2398_v55 = vpop.trf.xlu0 }
 0x81b   : >> { %2832 = vst [vmem:[%s4820_s21 + $0x248] sm:$0xff] %v2398_v55 }
 0x822   : >> { %v2399_v18 = vpop.trf.xlu0 }
 0x823   : >> { %2833 = vst [vmem:[%s4820_s21 + $0x250] sm:$0xff] %v2399_v18 }
 0x82a   : >> { %v2400_v42 = vpop.trf.xlu0 }
 0x82b   : >> { %2834 = vst [vmem:[%s4820_s21 + $0x258] sm:$0xff] %v2400_v42 }
 0x832   : >> { %v2401_v59 = vpop.trf.xlu0 }
 0x833   : >> { %2835 = vst [vmem:[%s4820_s21 + $0x260] sm:$0xff] %v2401_v59 }
 0x83a   : >> { %v2402_v26 = vpop.trf.xlu0 }
 0x83b   : >> { %2836 = vst [vmem:[%s4820_s21 + $0x268] sm:$0xff] %v2402_v26 }
 0x842   : >> { %v2403_v63 = vpop.trf.xlu0 }
 0x843   : >> { %2837 = vst [vmem:[%s4820_s21 + $0x270] sm:$0xff] %v2403_v63 }
 0x847   : > { %758 = sbr.rel (!%p4876_p11) target bundleno = 454 (0x1c6), region = 103 }
 0x84a   : >> { %v2404_v50 = vpop.trf.xlu0 }
 0x84b   : >> { %2838 = vst [vmem:[%s4820_s21 + $0x278] sm:$0xff] %v2404_v50  ;;  %s3394_s21 = sshra.s32 (%p4876_p11), %s2440_s19, 4  ;;  %s3395_s21 = int_to_ptr.hbm [resolvable:$true] %s3394_s21 }
 0x84c   : > { %s3396_s23 = scalar_lea.hbm %s3395_s21, 1024  ;;  %p3401_p1 = scmp.lt.s32.totalorder %s3395_s21, %s5025_s8 }
 0x84d   : > { %p3397_p12 = scmp.ne.s32.totalorder %s3395_s21, %s3396_s23  ;;  %p3402_p2 = scmp.lt.s32.totalorder %s3400_s0, %s3396_s23 }
 0x84f   : > { %p3398_p13 = pnand %p3397_p12, %p3793_p5  ;;  %p3403_p3 = por %p3402_p2, %p3401_p1 }
 0x851   : > { %p3399_p0 = pneg %p3398_p13 }
 0x853   : > { %p3404_p4 = pnand %p3403_p3, %p3399_p0 }
 0x855   : > { %3407 = shalt.err (!%p3404_p4)
}
 0x856   : > { %s3708_s20 = smov 128   ;;  %s3709_s13 = smov 8  }
 0x857   : > { %2939 = dma.vmem_to_hbm [thread:$0]  (%p3793_p5), %s2438_s18, 16384, %s2440_s19, %s2424_s25, %s3708_s20, %s3708_s20, %s3709_s13  }
 0x858 PF: > { %p2945_p7 = scmp.ge.s32.totalorder %s3574_s30, 2  ;;  %s2454_s10 = sand.u32 1, %s3562_s27  }
 0x859   : > { %s2455_s12 = scalar_lea.sflag [#allocation3], %s2454_s10 }
 0x85a   : > { %p2942_p8 = pnand %p2945_p7, %p3797_p6 }
 0x85c   : > { %p2943_p9 = pneg %p2942_p8 }
 0x85e   : > { %3557 = dma.done.wait (%p2943_p9), %s2455_s12, 16384  }
 0x85f   : > { %3559 = vsyncadd (%p2943_p9), %s2455_s12, 4294950912  ;;  %p18_p10 = scmp.ge.s32.totalorder %s3780_s11, 4   ;;  %s5106_s27 = smov %s3566_s28 }
 0x860   : > { %s5107_s28 = smov %s3570_s29  ;;  %s5108_s29 = smov %s3791_s14 }
 0x861   : > { %s5109_s30 = smov %s3780_s11  ;;  %20 = sbr.rel (!%p18_p10) target bundleno = 5 (0x5), region = 114 }
 0x866   :  { %2461 = vsyncpa [#allocation3], 1 }
 0x867   :  { %2463 = vsyncpa [#allocation3 + $0x1], 1 }

</bundles_post_ra>
